<compile_context>
chip_gen: v5e
topology: v5e:2x2
jax: 0.10.0
libtpu: 0.0.40
codegen_flags: <defaults>
</compile_context>

<pallas_src>
import functools
import math

import jax
import jax.numpy as jnp
from jax.experimental import pallas as pl
from jax.experimental.pallas import tpu as pltpu

_LN_EPS = 1e-5  # nn.LayerNorm default

# Exact (erf-based) GELU, as in torch.nn.GELU().  erf via Abramowitz & Stegun
# 7.1.26 rational approximation; reciprocal and exp both go to the EUP slot.
_ERF_P = 0.3275911
_ERF_A = (0.254829592, -0.284496736, 1.421413741, -1.453152027, 1.061405429)


def _erf(x):
    ax = jnp.abs(x)
    t = pl.reciprocal(1.0 + _ERF_P * ax, approx=True)       # EUP, otherwise idle here
    poly = t * (_ERF_A[0] + t * (_ERF_A[1] + t * (_ERF_A[2]
                + t * (_ERF_A[3] + t * _ERF_A[4]))))
    y = 1.0 - poly * jnp.exp(-ax * ax)
    return jnp.where(x >= 0.0, y, -y)


def _gelu(x):
    return 0.5 * x * (1.0 + _erf(x * (1.0 / math.sqrt(2.0))))


def _layernorm(y, g, b, eps):
    mu = jnp.mean(y, axis=-1, keepdims=True)
    var = jnp.mean((y - mu) ** 2, axis=-1, keepdims=True)    # biased, like nn.LayerNorm
    return (y - mu) * jax.lax.rsqrt(var + eps) * g + b


def _mha(q, k, v, wo, bo, n_heads, mask):
    """Multi-head attention body.  q already carries the 1/sqrt(Dh) scale.

    Heads are concatenated in VMEM so the output projection is a single
    lane-dense (Sq, D) @ (D, D) matmul (full-K MXU utilization)."""
    d = q.shape[-1]
    dh = d // n_heads
    heads = []
    for h in range(n_heads):                                  # static unrolled loop
        qh = q[:, h * dh:(h + 1) * dh]                        # (Sq, Dh)
        kh = k[:, h * dh:(h + 1) * dh]                        # (Sk, Dh)
        vh = v[:, h * dh:(h + 1) * dh]                        # (Sk, Dh)
        s = jax.lax.dot_general(qh, kh, (((1,), (1,)), ((), ())),
                                preferred_element_type=jnp.float32)       # (Sq, Sk)
        if mask is not None:
            s = s + mask
        s = s - jnp.max(s, axis=-1, keepdims=True)
        p = jnp.exp(s)
        p = p * pl.reciprocal(jnp.sum(p, axis=-1, keepdims=True), approx=True)
        heads.append(jnp.dot(p, vh, preferred_element_type=jnp.float32))  # (Sq, Dh)
    o = jnp.concatenate(heads, axis=-1) if n_heads > 1 else heads[0]      # (Sq, D)
    return jnp.dot(o, wo, preferred_element_type=jnp.float32) + bo


# ----------------------------------------------------------------------------
# Fused DecoderBlock kernel:
#   x1 = LN( SelfAttn(x, mask)         + x  )
#   x2 = LN( CrossAttn(x1, enc, emask) + x1 )
#   x3 = LN( FFN(x2)                   + x2 )
#   out = x3            (or x3 @ Wout + bout for the last block)
# All intermediates stay in VMEM; one HBM round trip per block.
# ----------------------------------------------------------------------------
def _decoder_block_kernel(x_ref, enc_ref,
                          wqkv_ref, bqkv_ref, wo1_ref, bo1_ref, g1_ref, bln1_ref,
                          wq2_ref, bq2_ref, wkv2_ref, bkv2_ref, wo2_ref, bo2_ref,
                          g2_ref, bln2_ref,
                          w1_ref, bf1_ref, w2_ref, bf2_ref, g3_ref, bln3_ref,
                          *rest, n_heads, scale, has_mask, has_enc_mask, has_out):
    idx = 0
    mask = None
    enc_mask = None
    if has_mask:
        mask = rest[idx][0].astype(jnp.float32)               # (St, St)
        idx += 1
    if has_enc_mask:
        enc_mask = rest[idx][0].astype(jnp.float32)           # (St, Se)
        idx += 1
    if has_out:
        ow_ref, ob_ref = rest[idx], rest[idx + 1]
        idx += 2
    o_ref = rest[idx]

    x = x_ref[0]                                              # (St, D)
    enc = enc_ref[0]                                          # (Se, D)
    d = x.shape[-1]

    # ---- Sub-layer 1: masked self-attention (+residual +LayerNorm) ----------
    # Fused Q|K|V projection: one lane-dense (St, D) @ (D, 3D) matmul.
    qkv = jnp.dot(x, wqkv_ref[...], preferred_element_type=jnp.float32) + bqkv_ref[...]
    q = qkv[:, :d] * scale                                    # scale applied once
    a1 = _mha(q, qkv[:, d:2 * d], qkv[:, 2 * d:],
              wo1_ref[...], bo1_ref[...], n_heads, mask)
    x1 = _layernorm(a1 + x.astype(jnp.float32), g1_ref[...], bln1_ref[...], _LN_EPS)

    # ---- Sub-layer 2: encoder-decoder attention (Q from decoder, K/V enc) ---
    q2 = (jnp.dot(x1, wq2_ref[...], preferred_element_type=jnp.float32)
          + bq2_ref[...]) * scale
    kv2 = jnp.dot(enc, wkv2_ref[...], preferred_element_type=jnp.float32) + bkv2_ref[...]
    a2 = _mha(q2, kv2[:, :d], kv2[:, d:],
              wo2_ref[...], bo2_ref[...], n_heads, enc_mask)
    x2 = _layernorm(a2 + x1, g2_ref[...], bln2_ref[...], _LN_EPS)

    # ---- Sub-layer 3: position-wise FFN (+residual +LayerNorm) --------------
    h = _gelu(jnp.dot(x2, w1_ref[...], preferred_element_type=jnp.float32) + bf1_ref[...])
    y3 = jnp.dot(h, w2_ref[...], preferred_element_type=jnp.float32) + bf2_ref[...] + x2
    x3 = _layernorm(y3, g3_ref[...], bln3_ref[...], _LN_EPS)

    # ---- Optional final output projection folded into the last block --------
    if has_out:
        x3 = jnp.dot(x3, ow_ref[...], preferred_element_type=jnp.float32) + ob_ref[...]
    o_ref[0] = x3.astype(o_ref.dtype)


def decoder_block(x, enc_out, p, n_heads, mask_add=None, enc_mask_add=None,
                  out_w=None, out_b=None):
    """One fused DecoderBlock.  x: (B, St, D); enc_out: (B, Se, D)."""
    bsz, st, d = x.shape
    se = enc_out.shape[1]
    hid = p["w1"].shape[1]
    dh = d // n_heads
    # NOTE: MultiHeadAttention source not given; standard 1/sqrt(head_dim) scaling.
    scale = 1.0 / math.sqrt(dh)
    has_mask = mask_add is not None
    has_enc_mask = enc_mask_add is not None
    has_out = out_w is not None
    dout = out_w.shape[1] if has_out else d

    kern = functools.partial(_decoder_block_kernel, n_heads=n_heads, scale=scale,
                             has_mask=has_mask, has_enc_mask=has_enc_mask,
                             has_out=has_out)

    def wspec(shape):
        # Weight / bias: VMEM-resident across the batch grid (constant block idx).
        # TODO(synk): pipeline_mode=pl.Buffered(1) to single-buffer the resident
        # weights (saves a full weight copy of VMEM on v7x's 64 MiB).
        return pl.BlockSpec(shape, lambda i, _n=len(shape): (0,) * _n)

    in_specs = [
        pl.BlockSpec((1, st, d), lambda i: (i, 0, 0)),        # x
        pl.BlockSpec((1, se, d), lambda i: (i, 0, 0)),        # encoder_out
        wspec((d, 3 * d)), wspec((1, 3 * d)),                 # self-attn fused QKV
        wspec((d, d)), wspec((1, d)),                         # self-attn Wo, bo
        wspec((1, d)), wspec((1, d)),                         # ln1 gamma, beta
        wspec((d, d)), wspec((1, d)),                         # cross-attn Wq, bq
        wspec((d, 2 * d)), wspec((1, 2 * d)),                 # cross-attn fused KV
        wspec((d, d)), wspec((1, d)),                         # cross-attn Wo, bo
        wspec((1, d)), wspec((1, d)),                         # ln2 gamma, beta
        wspec((d, hid)), wspec((1, hid)),                     # FFN W1, b1
        wspec((hid, d)), wspec((1, d)),                       # FFN W2, b2
        wspec((1, d)), wspec((1, d)),                         # ln3 gamma, beta
    ]
    args = [
        x, enc_out,
        p["sa_wqkv"], p["sa_bqkv"].reshape(1, 3 * d),
        p["sa_wo"], p["sa_bo"].reshape(1, d),
        p["ln1_g"].reshape(1, d), p["ln1_b"].reshape(1, d),
        p["ca_wq"], p["ca_bq"].reshape(1, d),
        p["ca_wkv"], p["ca_bkv"].reshape(1, 2 * d),
        p["ca_wo"], p["ca_bo"].reshape(1, d),
        p["ln2_g"].reshape(1, d), p["ln2_b"].reshape(1, d),
        p["w1"], p["b1"].reshape(1, hid),
        p["w2"], p["b2"].reshape(1, d),
        p["ln3_g"].reshape(1, d), p["ln3_b"].reshape(1, d),
    ]
    if has_mask:
        in_specs.append(pl.BlockSpec((1, st, st), lambda i: (i, 0, 0)))
        args.append(mask_add)                                  # upcast in-kernel
    if has_enc_mask:
        in_specs.append(pl.BlockSpec((1, st, se), lambda i: (i, 0, 0)))
        args.append(enc_mask_add)
    if has_out:
        in_specs.append(wspec((d, dout)))
        in_specs.append(wspec((1, dout)))
        args.append(out_w)
        args.append(out_b.reshape(1, dout))

    # TODO(synk): for realistic S/D add a query row-tile grid axis (256-512
    # rows, K/V full) so the (Sq, Sk) score tile and hidden FFN activation are
    # bounded and the parallel grid is batch x row-tile (keeps v7x's 2nd TC
    # busy when B is 1/odd).  At St=8 the sublane minimum makes this moot.
    return pl.pallas_call(
        kern,
        out_shape=jax.ShapeDtypeStruct((bsz, st, dout), x.dtype),
        grid=(bsz,),
        in_specs=in_specs,
        out_specs=pl.BlockSpec((1, st, dout), lambda i: (i, 0, 0)),
        compiler_params=pltpu.CompilerParams(
            dimension_semantics=("parallel",),
            vmem_limit_bytes=48 * 1024 * 1024),
    )(*args)


# ----------------------------------------------------------------------------
# Standalone output projection (only used if there are zero decoder blocks;
# otherwise it is folded into the last block's kernel).
# ----------------------------------------------------------------------------
def _out_proj_kernel(x_ref, w_ref, b_ref, o_ref):
    o_ref[0] = (jnp.dot(x_ref[0], w_ref[...], preferred_element_type=jnp.float32)
                + b_ref[...]).astype(o_ref.dtype)


def out_proj(x, w, b):
    bsz, s, d = x.shape
    dout = w.shape[1]
    return pl.pallas_call(
        _out_proj_kernel,
        out_shape=jax.ShapeDtypeStruct((bsz, s, dout), x.dtype),
        grid=(bsz,),
        in_specs=[
            pl.BlockSpec((1, s, d), lambda i: (i, 0, 0)),
            pl.BlockSpec((d, dout), lambda i: (0, 0)),
            pl.BlockSpec((1, dout), lambda i: (0, 0)),
        ],
        out_specs=pl.BlockSpec((1, s, dout), lambda i: (i, 0, 0)),
        compiler_params=pltpu.CompilerParams(dimension_semantics=("parallel",)),
    )(x, w, b.reshape(1, dout))


# ----------------------------------------------------------------------------
# Model glue
# ----------------------------------------------------------------------------
@functools.partial(jax.jit, static_argnames=("n_heads",))
def transformer_decoder(trg, encoder_out, params, n_heads,
                        mask_add=None, enc_mask_add=None):
    x = trg
    blocks = params["blocks"]
    out_w = params.get("out_w")
    out_b = params.get("out_b")
    n = len(blocks)
    for i, p in enumerate(blocks):
        last = (i == n - 1)
        x = decoder_block(x, encoder_out, p, n_heads, mask_add, enc_mask_add,
                          out_w=out_w if last else None,
                          out_b=out_b if last else None)
    if n == 0 and out_w is not None:
        x = out_proj(x, out_w, out_b)
    return x


# ----------------------------------------------------------------------------
# Deterministic parameter init (PyTorch-style nn.Linear uniform init)
# ----------------------------------------------------------------------------
def _init_linear(key, din, dout):
    k1, k2 = jax.random.split(key)
    bound = 1.0 / math.sqrt(din)
    w = jax.random.uniform(k1, (din, dout), jnp.float32, -bound, bound)
    b = jax.random.uniform(k2, (dout,), jnp.float32, -bound, bound)
    return w, b


def _init_mha(key, d):
    ks = jax.random.split(key, 4)
    wq, bq = _init_linear(ks[0], d, d)
    wk, bk = _init_linear(ks[1], d, d)
    wv, bv = _init_linear(ks[2], d, d)
    wo, bo = _init_linear(ks[3], d, d)
    return dict(wq=wq, bq=bq, wk=wk, bk=bk, wv=wv, bv=bv, wo=wo, bo=bo)


def _init_block(key, d, hid):
    ks = jax.random.split(key, 4)
    sa = _init_mha(ks[0], d)
    ca = _init_mha(ks[1], d)
    w1, b1 = _init_linear(ks[2], d, hid)
    w2, b2 = _init_linear(ks[3], hid, d)
    return dict(
        # self-attention: fused (D, 3D) Q|K|V projection (single activation stream)
        sa_wqkv=jnp.concatenate([sa["wq"], sa["wk"], sa["wv"]], axis=1),
        sa_bqkv=jnp.concatenate([sa["bq"], sa["bk"], sa["bv"]], axis=0),
        sa_wo=sa["wo"], sa_bo=sa["bo"],
        ln1_g=jnp.ones((d,), jnp.float32), ln1_b=jnp.zeros((d,), jnp.float32),
        # cross-attention: Q from decoder, fused (D, 2D) K|V from encoder
        ca_wq=ca["wq"], ca_bq=ca["bq"],
        ca_wkv=jnp.concatenate([ca["wk"], ca["wv"]], axis=1),
        ca_bkv=jnp.concatenate([ca["bk"], ca["bv"]], axis=0),
        ca_wo=ca["wo"], ca_bo=ca["bo"],
        ln2_g=jnp.ones((d,), jnp.float32), ln2_b=jnp.zeros((d,), jnp.float32),
        # FFN
        w1=w1, b1=b1, w2=w2, b2=b2,
        ln3_g=jnp.ones((d,), jnp.float32), ln3_b=jnp.zeros((d,), jnp.float32),
    )


def init_params(key, n_blocks, d, hid, output_dim=None):
    ks = jax.random.split(key, n_blocks + 1)
    blocks = [_init_block(ks[i], d, hid) for i in range(n_blocks)]
    out_w = out_b = None
    if output_dim is not None:
        out_w, out_b = _init_linear(ks[-1], d, output_dim)
    return dict(blocks=blocks, out_w=out_w, out_b=out_b)


# ----------------------------------------------------------------------------
if __name__ == "__main__":
    # small config: emb_dim=32, heads=4, hid_dim=64, decoder_blocks=2, output_dim=16
    B, S_TRG, S_ENC = 2, 8, 10
    EMB, HEADS, HID = 32, 4, 64
    N_BLOCKS, OUT_DIM = 2, 16

    key = jax.random.PRNGKey(0)
    k_p, k_trg, k_enc = jax.random.split(key, 3)

    params = init_params(k_p, N_BLOCKS, EMB, HID, OUT_DIM)
    trg = jax.random.normal(k_trg, (B, S_TRG, EMB), jnp.float32)
    encoder_out = jax.random.normal(k_enc, (B, S_ENC, EMB), jnp.float32)

    out = transformer_decoder(trg, encoder_out, params, n_heads=HEADS)
    out = jax.block_until_ready(out)
    assert out.shape == (B, S_TRG, OUT_DIM), out.shape
    assert bool(jnp.all(jnp.isfinite(out)))
    print("KERNEL_OK")
</pallas_src>

<mosaic_0001>
module attributes {stable_mosaic.version = 11 : i64} {
  func.func @_decoder_block_kernel(%arg0: i32, %arg1: memref<1x8x32xf32, #tpu.memory_space<vmem>>, %arg2: memref<1x10x32xf32, #tpu.memory_space<vmem>>, %arg3: memref<32x96xf32, #tpu.memory_space<vmem>>, %arg4: memref<1x96xf32, #tpu.memory_space<vmem>>, %arg5: memref<32x32xf32, #tpu.memory_space<vmem>>, %arg6: memref<1x32xf32, #tpu.memory_space<vmem>>, %arg7: memref<1x32xf32, #tpu.memory_space<vmem>>, %arg8: memref<1x32xf32, #tpu.memory_space<vmem>>, %arg9: memref<32x32xf32, #tpu.memory_space<vmem>>, %arg10: memref<1x32xf32, #tpu.memory_space<vmem>>, %arg11: memref<32x64xf32, #tpu.memory_space<vmem>>, %arg12: memref<1x64xf32, #tpu.memory_space<vmem>>, %arg13: memref<32x32xf32, #tpu.memory_space<vmem>>, %arg14: memref<1x32xf32, #tpu.memory_space<vmem>>, %arg15: memref<1x32xf32, #tpu.memory_space<vmem>>, %arg16: memref<1x32xf32, #tpu.memory_space<vmem>>, %arg17: memref<32x64xf32, #tpu.memory_space<vmem>>, %arg18: memref<1x64xf32, #tpu.memory_space<vmem>>, %arg19: memref<64x32xf32, #tpu.memory_space<vmem>>, %arg20: memref<1x32xf32, #tpu.memory_space<vmem>>, %arg21: memref<1x32xf32, #tpu.memory_space<vmem>>, %arg22: memref<1x32xf32, #tpu.memory_space<vmem>>, %arg23: memref<1x8x32xf32, #tpu.memory_space<vmem>>) attributes {dimension_semantics = [#tpu.dimension_semantics<parallel>], iteration_bounds = array<i64: 2>, scalar_prefetch = 0 : i64, scratch_operands = 0 : i64, tpu.core_type = #tpu.core_type<tc>, window_params = [{transform_indices = @transform_0, window_bounds = array<i64: 1, 8, 32>}, {transform_indices = @transform_1, window_bounds = array<i64: 1, 10, 32>}, {pipeline_mode = #tpu.pipeline_mode<synchronous>, transform_indices = @transform_2, window_bounds = array<i64: 32, 96>}, {pipeline_mode = #tpu.pipeline_mode<synchronous>, transform_indices = @transform_3, window_bounds = array<i64: 1, 96>}, {pipeline_mode = #tpu.pipeline_mode<synchronous>, transform_indices = @transform_4, window_bounds = array<i64: 32, 32>}, {pipeline_mode = #tpu.pipeline_mode<synchronous>, transform_indices = @transform_5, window_bounds = array<i64: 1, 32>}, {pipeline_mode = #tpu.pipeline_mode<synchronous>, transform_indices = @transform_6, window_bounds = array<i64: 1, 32>}, {pipeline_mode = #tpu.pipeline_mode<synchronous>, transform_indices = @transform_7, window_bounds = array<i64: 1, 32>}, {pipeline_mode = #tpu.pipeline_mode<synchronous>, transform_indices = @transform_8, window_bounds = array<i64: 32, 32>}, {pipeline_mode = #tpu.pipeline_mode<synchronous>, transform_indices = @transform_9, window_bounds = array<i64: 1, 32>}, {pipeline_mode = #tpu.pipeline_mode<synchronous>, transform_indices = @transform_10, window_bounds = array<i64: 32, 64>}, {pipeline_mode = #tpu.pipeline_mode<synchronous>, transform_indices = @transform_11, window_bounds = array<i64: 1, 64>}, {pipeline_mode = #tpu.pipeline_mode<synchronous>, transform_indices = @transform_12, window_bounds = array<i64: 32, 32>}, {pipeline_mode = #tpu.pipeline_mode<synchronous>, transform_indices = @transform_13, window_bounds = array<i64: 1, 32>}, {pipeline_mode = #tpu.pipeline_mode<synchronous>, transform_indices = @transform_14, window_bounds = array<i64: 1, 32>}, {pipeline_mode = #tpu.pipeline_mode<synchronous>, transform_indices = @transform_15, window_bounds = array<i64: 1, 32>}, {pipeline_mode = #tpu.pipeline_mode<synchronous>, transform_indices = @transform_16, window_bounds = array<i64: 32, 64>}, {pipeline_mode = #tpu.pipeline_mode<synchronous>, transform_indices = @transform_17, window_bounds = array<i64: 1, 64>}, {pipeline_mode = #tpu.pipeline_mode<synchronous>, transform_indices = @transform_18, window_bounds = array<i64: 64, 32>}, {pipeline_mode = #tpu.pipeline_mode<synchronous>, transform_indices = @transform_19, window_bounds = array<i64: 1, 32>}, {pipeline_mode = #tpu.pipeline_mode<synchronous>, transform_indices = @transform_20, window_bounds = array<i64: 1, 32>}, {pipeline_mode = #tpu.pipeline_mode<synchronous>, transform_indices = @transform_21, window_bounds = array<i64: 1, 32>}, {transform_indices = @transform_22, window_bounds = array<i64: 1, 8, 32>}]} {
    %c0 = arith.constant 0 : index
    %c0_0 = arith.constant 0 : index
    %c0_1 = arith.constant 0 : index
    %0 = vector.load %arg1[%c0, %c0_0, %c0_1] : memref<1x8x32xf32, #tpu.memory_space<vmem>>, vector<1x8x32xf32>
    %1 = vector.shape_cast %0 : vector<1x8x32xf32> to vector<8x32xf32>
    %c0_2 = arith.constant 0 : index
    %c0_3 = arith.constant 0 : index
    %c0_4 = arith.constant 0 : index
    %2 = vector.load %arg2[%c0_2, %c0_3, %c0_4] : memref<1x10x32xf32, #tpu.memory_space<vmem>>, vector<1x10x32xf32>
    %3 = vector.shape_cast %2 : vector<1x10x32xf32> to vector<10x32xf32>
    %c0_5 = arith.constant 0 : index
    %c0_6 = arith.constant 0 : index
    %4 = vector.load %arg3[%c0_5, %c0_6] : memref<32x96xf32, #tpu.memory_space<vmem>>, vector<32x96xf32>
    %cst = arith.constant dense<0.000000e+00> : vector<8x96xf32>
    %5 = tpu.matmul %1, %4, %cst {dimension_numbers = #tpu.dot_dimension_numbers<[1], [0], [0], [1], [0, 0, 1, 1], [], []>} : vector<8x32xf32>, vector<32x96xf32>, vector<8x96xf32> -> vector<8x96xf32>
    %c0_7 = arith.constant 0 : index
    %c0_8 = arith.constant 0 : index
    %6 = vector.load %arg4[%c0_7, %c0_8] : memref<1x96xf32, #tpu.memory_space<vmem>>, vector<1x96xf32>
    %7 = vector.broadcast %6 : vector<1x96xf32> to vector<8x96xf32>
    %8 = arith.addf %5, %7 : vector<8x96xf32>
    %9 = vector.extract_strided_slice %8 {offsets = [0, 0], sizes = [8, 32], strides = [1, 1]} : vector<8x96xf32> to vector<8x32xf32>
    %cst_9 = arith.constant 0.353553385 : f32
    %10 = vector.broadcast %cst_9 : f32 to vector<8x32xf32>
    %11 = arith.mulf %9, %10 : vector<8x32xf32>
    %12 = vector.extract_strided_slice %8 {offsets = [0, 32], sizes = [8, 32], strides = [1, 1]} : vector<8x96xf32> to vector<8x32xf32>
    %13 = vector.extract_strided_slice %8 {offsets = [0, 64], sizes = [8, 32], strides = [1, 1]} : vector<8x96xf32> to vector<8x32xf32>
    %c0_10 = arith.constant 0 : index
    %c0_11 = arith.constant 0 : index
    %14 = vector.load %arg5[%c0_10, %c0_11] : memref<32x32xf32, #tpu.memory_space<vmem>>, vector<32x32xf32>
    %c0_12 = arith.constant 0 : index
    %c0_13 = arith.constant 0 : index
    %15 = vector.load %arg6[%c0_12, %c0_13] : memref<1x32xf32, #tpu.memory_space<vmem>>, vector<1x32xf32>
    %16 = vector.extract_strided_slice %11 {offsets = [0, 0], sizes = [8, 8], strides = [1, 1]} : vector<8x32xf32> to vector<8x8xf32>
    %17 = vector.extract_strided_slice %12 {offsets = [0, 0], sizes = [8, 8], strides = [1, 1]} : vector<8x32xf32> to vector<8x8xf32>
    %18 = vector.extract_strided_slice %13 {offsets = [0, 0], sizes = [8, 8], strides = [1, 1]} : vector<8x32xf32> to vector<8x8xf32>
    %cst_14 = arith.constant dense<0.000000e+00> : vector<8x8xf32>
    %19 = tpu.matmul %16, %17, %cst_14 {dimension_numbers = #tpu.dot_dimension_numbers<[1], [1], [0], [0], [0, 0, 1, 0], [], []>} : vector<8x8xf32>, vector<8x8xf32>, vector<8x8xf32> -> vector<8x8xf32>
    %cst_15 = arith.constant dense<0xFF800000> : vector<8xf32>
    %20 = vector.multi_reduction <maximumf>, %19, %cst_15 [1] : vector<8x8xf32> to vector<8xf32>
    %21 = vector.shape_cast %20 : vector<8xf32> to vector<8x1xf32>
    %22 = vector.broadcast %21 : vector<8x1xf32> to vector<8x8xf32>
    %23 = arith.subf %19, %22 : vector<8x8xf32>
    %24 = math.exp %23 : vector<8x8xf32>
    %cst_16 = arith.constant dense<0.000000e+00> : vector<8xf32>
    %25 = vector.multi_reduction <add>, %24, %cst_16 [1] : vector<8x8xf32> to vector<8xf32>
    %26 = vector.shape_cast %25 : vector<8xf32> to vector<8x1xf32>
    %27 = tpu.reciprocal %26 {approx = true} : vector<8x1xf32> -> vector<8x1xf32>
    %28 = vector.broadcast %27 : vector<8x1xf32> to vector<8x8xf32>
    %29 = arith.mulf %24, %28 : vector<8x8xf32>
    %cst_17 = arith.constant dense<0.000000e+00> : vector<8x8xf32>
    %30 = tpu.matmul %29, %18, %cst_17 {dimension_numbers = #tpu.dot_dimension_numbers<[1], [0], [0], [1], [0, 0, 1, 1], [], []>} : vector<8x8xf32>, vector<8x8xf32>, vector<8x8xf32> -> vector<8x8xf32>
    %31 = vector.extract_strided_slice %11 {offsets = [0, 8], sizes = [8, 8], strides = [1, 1]} : vector<8x32xf32> to vector<8x8xf32>
    %32 = vector.extract_strided_slice %12 {offsets = [0, 8], sizes = [8, 8], strides = [1, 1]} : vector<8x32xf32> to vector<8x8xf32>
    %33 = vector.extract_strided_slice %13 {offsets = [0, 8], sizes = [8, 8], strides = [1, 1]} : vector<8x32xf32> to vector<8x8xf32>
    %cst_18 = arith.constant dense<0.000000e+00> : vector<8x8xf32>
    %34 = tpu.matmul %31, %32, %cst_18 {dimension_numbers = #tpu.dot_dimension_numbers<[1], [1], [0], [0], [0, 0, 1, 0], [], []>} : vector<8x8xf32>, vector<8x8xf32>, vector<8x8xf32> -> vector<8x8xf32>
    %cst_19 = arith.constant dense<0xFF800000> : vector<8xf32>
    %35 = vector.multi_reduction <maximumf>, %34, %cst_19 [1] : vector<8x8xf32> to vector<8xf32>
    %36 = vector.shape_cast %35 : vector<8xf32> to vector<8x1xf32>
    %37 = vector.broadcast %36 : vector<8x1xf32> to vector<8x8xf32>
    %38 = arith.subf %34, %37 : vector<8x8xf32>
    %39 = math.exp %38 : vector<8x8xf32>
    %cst_20 = arith.constant dense<0.000000e+00> : vector<8xf32>
    %40 = vector.multi_reduction <add>, %39, %cst_20 [1] : vector<8x8xf32> to vector<8xf32>
    %41 = vector.shape_cast %40 : vector<8xf32> to vector<8x1xf32>
    %42 = tpu.reciprocal %41 {approx = true} : vector<8x1xf32> -> vector<8x1xf32>
    %43 = vector.broadcast %42 : vector<8x1xf32> to vector<8x8xf32>
    %44 = arith.mulf %39, %43 : vector<8x8xf32>
    %cst_21 = arith.constant dense<0.000000e+00> : vector<8x8xf32>
    %45 = tpu.matmul %44, %33, %cst_21 {dimension_numbers = #tpu.dot_dimension_numbers<[1], [0], [0], [1], [0, 0, 1, 1], [], []>} : vector<8x8xf32>, vector<8x8xf32>, vector<8x8xf32> -> vector<8x8xf32>
    %46 = vector.extract_strided_slice %11 {offsets = [0, 16], sizes = [8, 8], strides = [1, 1]} : vector<8x32xf32> to vector<8x8xf32>
    %47 = vector.extract_strided_slice %12 {offsets = [0, 16], sizes = [8, 8], strides = [1, 1]} : vector<8x32xf32> to vector<8x8xf32>
    %48 = vector.extract_strided_slice %13 {offsets = [0, 16], sizes = [8, 8], strides = [1, 1]} : vector<8x32xf32> to vector<8x8xf32>
    %cst_22 = arith.constant dense<0.000000e+00> : vector<8x8xf32>
    %49 = tpu.matmul %46, %47, %cst_22 {dimension_numbers = #tpu.dot_dimension_numbers<[1], [1], [0], [0], [0, 0, 1, 0], [], []>} : vector<8x8xf32>, vector<8x8xf32>, vector<8x8xf32> -> vector<8x8xf32>
    %cst_23 = arith.constant dense<0xFF800000> : vector<8xf32>
    %50 = vector.multi_reduction <maximumf>, %49, %cst_23 [1] : vector<8x8xf32> to vector<8xf32>
    %51 = vector.shape_cast %50 : vector<8xf32> to vector<8x1xf32>
    %52 = vector.broadcast %51 : vector<8x1xf32> to vector<8x8xf32>
    %53 = arith.subf %49, %52 : vector<8x8xf32>
    %54 = math.exp %53 : vector<8x8xf32>
    %cst_24 = arith.constant dense<0.000000e+00> : vector<8xf32>
    %55 = vector.multi_reduction <add>, %54, %cst_24 [1] : vector<8x8xf32> to vector<8xf32>
    %56 = vector.shape_cast %55 : vector<8xf32> to vector<8x1xf32>
    %57 = tpu.reciprocal %56 {approx = true} : vector<8x1xf32> -> vector<8x1xf32>
    %58 = vector.broadcast %57 : vector<8x1xf32> to vector<8x8xf32>
    %59 = arith.mulf %54, %58 : vector<8x8xf32>
    %cst_25 = arith.constant dense<0.000000e+00> : vector<8x8xf32>
    %60 = tpu.matmul %59, %48, %cst_25 {dimension_numbers = #tpu.dot_dimension_numbers<[1], [0], [0], [1], [0, 0, 1, 1], [], []>} : vector<8x8xf32>, vector<8x8xf32>, vector<8x8xf32> -> vector<8x8xf32>
    %61 = vector.extract_strided_slice %11 {offsets = [0, 24], sizes = [8, 8], strides = [1, 1]} : vector<8x32xf32> to vector<8x8xf32>
    %62 = vector.extract_strided_slice %12 {offsets = [0, 24], sizes = [8, 8], strides = [1, 1]} : vector<8x32xf32> to vector<8x8xf32>
    %63 = vector.extract_strided_slice %13 {offsets = [0, 24], sizes = [8, 8], strides = [1, 1]} : vector<8x32xf32> to vector<8x8xf32>
    %cst_26 = arith.constant dense<0.000000e+00> : vector<8x8xf32>
    %64 = tpu.matmul %61, %62, %cst_26 {dimension_numbers = #tpu.dot_dimension_numbers<[1], [1], [0], [0], [0, 0, 1, 0], [], []>} : vector<8x8xf32>, vector<8x8xf32>, vector<8x8xf32> -> vector<8x8xf32>
    %cst_27 = arith.constant dense<0xFF800000> : vector<8xf32>
    %65 = vector.multi_reduction <maximumf>, %64, %cst_27 [1] : vector<8x8xf32> to vector<8xf32>
    %66 = vector.shape_cast %65 : vector<8xf32> to vector<8x1xf32>
    %67 = vector.broadcast %66 : vector<8x1xf32> to vector<8x8xf32>
    %68 = arith.subf %64, %67 : vector<8x8xf32>
    %69 = math.exp %68 : vector<8x8xf32>
    %cst_28 = arith.constant dense<0.000000e+00> : vector<8xf32>
    %70 = vector.multi_reduction <add>, %69, %cst_28 [1] : vector<8x8xf32> to vector<8xf32>
    %71 = vector.shape_cast %70 : vector<8xf32> to vector<8x1xf32>
    %72 = tpu.reciprocal %71 {approx = true} : vector<8x1xf32> -> vector<8x1xf32>
    %73 = vector.broadcast %72 : vector<8x1xf32> to vector<8x8xf32>
    %74 = arith.mulf %69, %73 : vector<8x8xf32>
    %cst_29 = arith.constant dense<0.000000e+00> : vector<8x8xf32>
    %75 = tpu.matmul %74, %63, %cst_29 {dimension_numbers = #tpu.dot_dimension_numbers<[1], [0], [0], [1], [0, 0, 1, 1], [], []>} : vector<8x8xf32>, vector<8x8xf32>, vector<8x8xf32> -> vector<8x8xf32>
    %76 = tpu.concatenate %30, %45, %60, %75 in 1 : vector<8x8xf32>, vector<8x8xf32>, vector<8x8xf32>, vector<8x8xf32> -> vector<8x32xf32>
    %cst_30 = arith.constant dense<0.000000e+00> : vector<8x32xf32>
    %77 = tpu.matmul %76, %14, %cst_30 {dimension_numbers = #tpu.dot_dimension_numbers<[1], [0], [0], [1], [0, 0, 1, 1], [], []>} : vector<8x32xf32>, vector<32x32xf32>, vector<8x32xf32> -> vector<8x32xf32>
    %78 = vector.broadcast %15 : vector<1x32xf32> to vector<8x32xf32>
    %79 = arith.addf %77, %78 : vector<8x32xf32>
    %80 = arith.addf %79, %1 : vector<8x32xf32>
    %c0_31 = arith.constant 0 : index
    %c0_32 = arith.constant 0 : index
    %81 = vector.load %arg7[%c0_31, %c0_32] : memref<1x32xf32, #tpu.memory_space<vmem>>, vector<1x32xf32>
    %c0_33 = arith.constant 0 : index
    %c0_34 = arith.constant 0 : index
    %82 = vector.load %arg8[%c0_33, %c0_34] : memref<1x32xf32, #tpu.memory_space<vmem>>, vector<1x32xf32>
    %cst_35 = arith.constant dense<0.000000e+00> : vector<8xf32>
    %83 = vector.multi_reduction <add>, %80, %cst_35 [1] : vector<8x32xf32> to vector<8xf32>
    %84 = vector.shape_cast %83 : vector<8xf32> to vector<8x1xf32>
    %cst_36 = arith.constant 3.200000e+01 : f32
    %85 = vector.broadcast %cst_36 : f32 to vector<8x1xf32>
    %86 = arith.divf %84, %85 : vector<8x1xf32>
    %87 = vector.broadcast %86 : vector<8x1xf32> to vector<8x32xf32>
    %88 = arith.subf %80, %87 : vector<8x32xf32>
    %89 = arith.mulf %88, %88 : vector<8x32xf32>
    %cst_37 = arith.constant dense<0.000000e+00> : vector<8xf32>
    %90 = vector.multi_reduction <add>, %89, %cst_37 [1] : vector<8x32xf32> to vector<8xf32>
    %91 = vector.shape_cast %90 : vector<8xf32> to vector<8x1xf32>
    %cst_38 = arith.constant 3.200000e+01 : f32
    %92 = vector.broadcast %cst_38 : f32 to vector<8x1xf32>
    %93 = arith.divf %91, %92 : vector<8x1xf32>
    %94 = vector.broadcast %86 : vector<8x1xf32> to vector<8x32xf32>
    %95 = arith.subf %80, %94 : vector<8x32xf32>
    %cst_39 = arith.constant 9.99999974E-6 : f32
    %96 = vector.broadcast %cst_39 : f32 to vector<8x1xf32>
    %97 = arith.addf %93, %96 : vector<8x1xf32>
    %98 = math.rsqrt %97 : vector<8x1xf32>
    %99 = vector.broadcast %98 : vector<8x1xf32> to vector<8x32xf32>
    %100 = arith.mulf %95, %99 : vector<8x32xf32>
    %101 = vector.broadcast %81 : vector<1x32xf32> to vector<8x32xf32>
    %102 = arith.mulf %100, %101 : vector<8x32xf32>
    %103 = vector.broadcast %82 : vector<1x32xf32> to vector<8x32xf32>
    %104 = arith.addf %102, %103 : vector<8x32xf32>
    %c0_40 = arith.constant 0 : index
    %c0_41 = arith.constant 0 : index
    %105 = vector.load %arg9[%c0_40, %c0_41] : memref<32x32xf32, #tpu.memory_space<vmem>>, vector<32x32xf32>
    %cst_42 = arith.constant dense<0.000000e+00> : vector<8x32xf32>
    %106 = tpu.matmul %104, %105, %cst_42 {dimension_numbers = #tpu.dot_dimension_numbers<[1], [0], [0], [1], [0, 0, 1, 1], [], []>} : vector<8x32xf32>, vector<32x32xf32>, vector<8x32xf32> -> vector<8x32xf32>
    %c0_43 = arith.constant 0 : index
    %c0_44 = arith.constant 0 : index
    %107 = vector.load %arg10[%c0_43, %c0_44] : memref<1x32xf32, #tpu.memory_space<vmem>>, vector<1x32xf32>
    %108 = vector.broadcast %107 : vector<1x32xf32> to vector<8x32xf32>
    %109 = arith.addf %106, %108 : vector<8x32xf32>
    %cst_45 = arith.constant 0.353553385 : f32
    %110 = vector.broadcast %cst_45 : f32 to vector<8x32xf32>
    %111 = arith.mulf %109, %110 : vector<8x32xf32>
    %c0_46 = arith.constant 0 : index
    %c0_47 = arith.constant 0 : index
    %112 = vector.load %arg11[%c0_46, %c0_47] : memref<32x64xf32, #tpu.memory_space<vmem>>, vector<32x64xf32>
    %cst_48 = arith.constant dense<0.000000e+00> : vector<10x64xf32>
    %113 = tpu.matmul %3, %112, %cst_48 {dimension_numbers = #tpu.dot_dimension_numbers<[1], [0], [0], [1], [0, 0, 1, 1], [], []>} : vector<10x32xf32>, vector<32x64xf32>, vector<10x64xf32> -> vector<10x64xf32>
    %c0_49 = arith.constant 0 : index
    %c0_50 = arith.constant 0 : index
    %114 = vector.load %arg12[%c0_49, %c0_50] : memref<1x64xf32, #tpu.memory_space<vmem>>, vector<1x64xf32>
    %115 = vector.broadcast %114 : vector<1x64xf32> to vector<10x64xf32>
    %116 = arith.addf %113, %115 : vector<10x64xf32>
    %117 = vector.extract_strided_slice %116 {offsets = [0, 0], sizes = [10, 32], strides = [1, 1]} : vector<10x64xf32> to vector<10x32xf32>
    %118 = vector.extract_strided_slice %116 {offsets = [0, 32], sizes = [10, 32], strides = [1, 1]} : vector<10x64xf32> to vector<10x32xf32>
    %c0_51 = arith.constant 0 : index
    %c0_52 = arith.constant 0 : index
    %119 = vector.load %arg13[%c0_51, %c0_52] : memref<32x32xf32, #tpu.memory_space<vmem>>, vector<32x32xf32>
    %c0_53 = arith.constant 0 : index
    %c0_54 = arith.constant 0 : index
    %120 = vector.load %arg14[%c0_53, %c0_54] : memref<1x32xf32, #tpu.memory_space<vmem>>, vector<1x32xf32>
    %121 = vector.extract_strided_slice %111 {offsets = [0, 0], sizes = [8, 8], strides = [1, 1]} : vector<8x32xf32> to vector<8x8xf32>
    %122 = vector.extract_strided_slice %117 {offsets = [0, 0], sizes = [10, 8], strides = [1, 1]} : vector<10x32xf32> to vector<10x8xf32>
    %123 = vector.extract_strided_slice %118 {offsets = [0, 0], sizes = [10, 8], strides = [1, 1]} : vector<10x32xf32> to vector<10x8xf32>
    %cst_55 = arith.constant dense<0.000000e+00> : vector<8x10xf32>
    %124 = tpu.matmul %121, %122, %cst_55 {dimension_numbers = #tpu.dot_dimension_numbers<[1], [1], [0], [0], [0, 0, 1, 0], [], []>} : vector<8x8xf32>, vector<10x8xf32>, vector<8x10xf32> -> vector<8x10xf32>
    %cst_56 = arith.constant dense<0xFF800000> : vector<8xf32>
    %125 = vector.multi_reduction <maximumf>, %124, %cst_56 [1] : vector<8x10xf32> to vector<8xf32>
    %126 = vector.shape_cast %125 : vector<8xf32> to vector<8x1xf32>
    %127 = vector.broadcast %126 : vector<8x1xf32> to vector<8x10xf32>
    %128 = arith.subf %124, %127 : vector<8x10xf32>
    %129 = math.exp %128 : vector<8x10xf32>
    %cst_57 = arith.constant dense<0.000000e+00> : vector<8xf32>
    %130 = vector.multi_reduction <add>, %129, %cst_57 [1] : vector<8x10xf32> to vector<8xf32>
    %131 = vector.shape_cast %130 : vector<8xf32> to vector<8x1xf32>
    %132 = tpu.reciprocal %131 {approx = true} : vector<8x1xf32> -> vector<8x1xf32>
    %133 = vector.broadcast %132 : vector<8x1xf32> to vector<8x10xf32>
    %134 = arith.mulf %129, %133 : vector<8x10xf32>
    %cst_58 = arith.constant dense<0.000000e+00> : vector<8x8xf32>
    %135 = tpu.matmul %134, %123, %cst_58 {dimension_numbers = #tpu.dot_dimension_numbers<[1], [0], [0], [1], [0, 0, 1, 1], [], []>} : vector<8x10xf32>, vector<10x8xf32>, vector<8x8xf32> -> vector<8x8xf32>
    %136 = vector.extract_strided_slice %111 {offsets = [0, 8], sizes = [8, 8], strides = [1, 1]} : vector<8x32xf32> to vector<8x8xf32>
    %137 = vector.extract_strided_slice %117 {offsets = [0, 8], sizes = [10, 8], strides = [1, 1]} : vector<10x32xf32> to vector<10x8xf32>
    %138 = vector.extract_strided_slice %118 {offsets = [0, 8], sizes = [10, 8], strides = [1, 1]} : vector<10x32xf32> to vector<10x8xf32>
    %cst_59 = arith.constant dense<0.000000e+00> : vector<8x10xf32>
    %139 = tpu.matmul %136, %137, %cst_59 {dimension_numbers = #tpu.dot_dimension_numbers<[1], [1], [0], [0], [0, 0, 1, 0], [], []>} : vector<8x8xf32>, vector<10x8xf32>, vector<8x10xf32> -> vector<8x10xf32>
    %cst_60 = arith.constant dense<0xFF800000> : vector<8xf32>
    %140 = vector.multi_reduction <maximumf>, %139, %cst_60 [1] : vector<8x10xf32> to vector<8xf32>
    %141 = vector.shape_cast %140 : vector<8xf32> to vector<8x1xf32>
    %142 = vector.broadcast %141 : vector<8x1xf32> to vector<8x10xf32>
    %143 = arith.subf %139, %142 : vector<8x10xf32>
    %144 = math.exp %143 : vector<8x10xf32>
    %cst_61 = arith.constant dense<0.000000e+00> : vector<8xf32>
    %145 = vector.multi_reduction <add>, %144, %cst_61 [1] : vector<8x10xf32> to vector<8xf32>
    %146 = vector.shape_cast %145 : vector<8xf32> to vector<8x1xf32>
    %147 = tpu.reciprocal %146 {approx = true} : vector<8x1xf32> -> vector<8x1xf32>
    %148 = vector.broadcast %147 : vector<8x1xf32> to vector<8x10xf32>
    %149 = arith.mulf %144, %148 : vector<8x10xf32>
    %cst_62 = arith.constant dense<0.000000e+00> : vector<8x8xf32>
    %150 = tpu.matmul %149, %138, %cst_62 {dimension_numbers = #tpu.dot_dimension_numbers<[1], [0], [0], [1], [0, 0, 1, 1], [], []>} : vector<8x10xf32>, vector<10x8xf32>, vector<8x8xf32> -> vector<8x8xf32>
    %151 = vector.extract_strided_slice %111 {offsets = [0, 16], sizes = [8, 8], strides = [1, 1]} : vector<8x32xf32> to vector<8x8xf32>
    %152 = vector.extract_strided_slice %117 {offsets = [0, 16], sizes = [10, 8], strides = [1, 1]} : vector<10x32xf32> to vector<10x8xf32>
    %153 = vector.extract_strided_slice %118 {offsets = [0, 16], sizes = [10, 8], strides = [1, 1]} : vector<10x32xf32> to vector<10x8xf32>
    %cst_63 = arith.constant dense<0.000000e+00> : vector<8x10xf32>
    %154 = tpu.matmul %151, %152, %cst_63 {dimension_numbers = #tpu.dot_dimension_numbers<[1], [1], [0], [0], [0, 0, 1, 0], [], []>} : vector<8x8xf32>, vector<10x8xf32>, vector<8x10xf32> -> vector<8x10xf32>
    %cst_64 = arith.constant dense<0xFF800000> : vector<8xf32>
    %155 = vector.multi_reduction <maximumf>, %154, %cst_64 [1] : vector<8x10xf32> to vector<8xf32>
    %156 = vector.shape_cast %155 : vector<8xf32> to vector<8x1xf32>
    %157 = vector.broadcast %156 : vector<8x1xf32> to vector<8x10xf32>
    %158 = arith.subf %154, %157 : vector<8x10xf32>
    %159 = math.exp %158 : vector<8x10xf32>
    %cst_65 = arith.constant dense<0.000000e+00> : vector<8xf32>
    %160 = vector.multi_reduction <add>, %159, %cst_65 [1] : vector<8x10xf32> to vector<8xf32>
    %161 = vector.shape_cast %160 : vector<8xf32> to vector<8x1xf32>
    %162 = tpu.reciprocal %161 {approx = true} : vector<8x1xf32> -> vector<8x1xf32>
    %163 = vector.broadcast %162 : vector<8x1xf32> to vector<8x10xf32>
    %164 = arith.mulf %159, %163 : vector<8x10xf32>
    %cst_66 = arith.constant dense<0.000000e+00> : vector<8x8xf32>
    %165 = tpu.matmul %164, %153, %cst_66 {dimension_numbers = #tpu.dot_dimension_numbers<[1], [0], [0], [1], [0, 0, 1, 1], [], []>} : vector<8x10xf32>, vector<10x8xf32>, vector<8x8xf32> -> vector<8x8xf32>
    %166 = vector.extract_strided_slice %111 {offsets = [0, 24], sizes = [8, 8], strides = [1, 1]} : vector<8x32xf32> to vector<8x8xf32>
    %167 = vector.extract_strided_slice %117 {offsets = [0, 24], sizes = [10, 8], strides = [1, 1]} : vector<10x32xf32> to vector<10x8xf32>
    %168 = vector.extract_strided_slice %118 {offsets = [0, 24], sizes = [10, 8], strides = [1, 1]} : vector<10x32xf32> to vector<10x8xf32>
    %cst_67 = arith.constant dense<0.000000e+00> : vector<8x10xf32>
    %169 = tpu.matmul %166, %167, %cst_67 {dimension_numbers = #tpu.dot_dimension_numbers<[1], [1], [0], [0], [0, 0, 1, 0], [], []>} : vector<8x8xf32>, vector<10x8xf32>, vector<8x10xf32> -> vector<8x10xf32>
    %cst_68 = arith.constant dense<0xFF800000> : vector<8xf32>
    %170 = vector.multi_reduction <maximumf>, %169, %cst_68 [1] : vector<8x10xf32> to vector<8xf32>
    %171 = vector.shape_cast %170 : vector<8xf32> to vector<8x1xf32>
    %172 = vector.broadcast %171 : vector<8x1xf32> to vector<8x10xf32>
    %173 = arith.subf %169, %172 : vector<8x10xf32>
    %174 = math.exp %173 : vector<8x10xf32>
    %cst_69 = arith.constant dense<0.000000e+00> : vector<8xf32>
    %175 = vector.multi_reduction <add>, %174, %cst_69 [1] : vector<8x10xf32> to vector<8xf32>
    %176 = vector.shape_cast %175 : vector<8xf32> to vector<8x1xf32>
    %177 = tpu.reciprocal %176 {approx = true} : vector<8x1xf32> -> vector<8x1xf32>
    %178 = vector.broadcast %177 : vector<8x1xf32> to vector<8x10xf32>
    %179 = arith.mulf %174, %178 : vector<8x10xf32>
    %cst_70 = arith.constant dense<0.000000e+00> : vector<8x8xf32>
    %180 = tpu.matmul %179, %168, %cst_70 {dimension_numbers = #tpu.dot_dimension_numbers<[1], [0], [0], [1], [0, 0, 1, 1], [], []>} : vector<8x10xf32>, vector<10x8xf32>, vector<8x8xf32> -> vector<8x8xf32>
    %181 = tpu.concatenate %135, %150, %165, %180 in 1 : vector<8x8xf32>, vector<8x8xf32>, vector<8x8xf32>, vector<8x8xf32> -> vector<8x32xf32>
    %cst_71 = arith.constant dense<0.000000e+00> : vector<8x32xf32>
    %182 = tpu.matmul %181, %119, %cst_71 {dimension_numbers = #tpu.dot_dimension_numbers<[1], [0], [0], [1], [0, 0, 1, 1], [], []>} : vector<8x32xf32>, vector<32x32xf32>, vector<8x32xf32> -> vector<8x32xf32>
    %183 = vector.broadcast %120 : vector<1x32xf32> to vector<8x32xf32>
    %184 = arith.addf %182, %183 : vector<8x32xf32>
    %185 = arith.addf %184, %104 : vector<8x32xf32>
    %c0_72 = arith.constant 0 : index
    %c0_73 = arith.constant 0 : index
    %186 = vector.load %arg15[%c0_72, %c0_73] : memref<1x32xf32, #tpu.memory_space<vmem>>, vector<1x32xf32>
    %c0_74 = arith.constant 0 : index
    %c0_75 = arith.constant 0 : index
    %187 = vector.load %arg16[%c0_74, %c0_75] : memref<1x32xf32, #tpu.memory_space<vmem>>, vector<1x32xf32>
    %cst_76 = arith.constant dense<0.000000e+00> : vector<8xf32>
    %188 = vector.multi_reduction <add>, %185, %cst_76 [1] : vector<8x32xf32> to vector<8xf32>
    %189 = vector.shape_cast %188 : vector<8xf32> to vector<8x1xf32>
    %cst_77 = arith.constant 3.200000e+01 : f32
    %190 = vector.broadcast %cst_77 : f32 to vector<8x1xf32>
    %191 = arith.divf %189, %190 : vector<8x1xf32>
    %192 = vector.broadcast %191 : vector<8x1xf32> to vector<8x32xf32>
    %193 = arith.subf %185, %192 : vector<8x32xf32>
    %194 = arith.mulf %193, %193 : vector<8x32xf32>
    %cst_78 = arith.constant dense<0.000000e+00> : vector<8xf32>
    %195 = vector.multi_reduction <add>, %194, %cst_78 [1] : vector<8x32xf32> to vector<8xf32>
    %196 = vector.shape_cast %195 : vector<8xf32> to vector<8x1xf32>
    %cst_79 = arith.constant 3.200000e+01 : f32
    %197 = vector.broadcast %cst_79 : f32 to vector<8x1xf32>
    %198 = arith.divf %196, %197 : vector<8x1xf32>
    %199 = vector.broadcast %191 : vector<8x1xf32> to vector<8x32xf32>
    %200 = arith.subf %185, %199 : vector<8x32xf32>
    %cst_80 = arith.constant 9.99999974E-6 : f32
    %201 = vector.broadcast %cst_80 : f32 to vector<8x1xf32>
    %202 = arith.addf %198, %201 : vector<8x1xf32>
    %203 = math.rsqrt %202 : vector<8x1xf32>
    %204 = vector.broadcast %203 : vector<8x1xf32> to vector<8x32xf32>
    %205 = arith.mulf %200, %204 : vector<8x32xf32>
    %206 = vector.broadcast %186 : vector<1x32xf32> to vector<8x32xf32>
    %207 = arith.mulf %205, %206 : vector<8x32xf32>
    %208 = vector.broadcast %187 : vector<1x32xf32> to vector<8x32xf32>
    %209 = arith.addf %207, %208 : vector<8x32xf32>
    %c0_81 = arith.constant 0 : index
    %c0_82 = arith.constant 0 : index
    %210 = vector.load %arg17[%c0_81, %c0_82] : memref<32x64xf32, #tpu.memory_space<vmem>>, vector<32x64xf32>
    %cst_83 = arith.constant dense<0.000000e+00> : vector<8x64xf32>
    %211 = tpu.matmul %209, %210, %cst_83 {dimension_numbers = #tpu.dot_dimension_numbers<[1], [0], [0], [1], [0, 0, 1, 1], [], []>} : vector<8x32xf32>, vector<32x64xf32>, vector<8x64xf32> -> vector<8x64xf32>
    %c0_84 = arith.constant 0 : index
    %c0_85 = arith.constant 0 : index
    %212 = vector.load %arg18[%c0_84, %c0_85] : memref<1x64xf32, #tpu.memory_space<vmem>>, vector<1x64xf32>
    %213 = vector.broadcast %212 : vector<1x64xf32> to vector<8x64xf32>
    %214 = arith.addf %211, %213 : vector<8x64xf32>
    %cst_86 = arith.constant 5.000000e-01 : f32
    %215 = vector.broadcast %cst_86 : f32 to vector<8x64xf32>
    %216 = arith.mulf %215, %214 : vector<8x64xf32>
    %cst_87 = arith.constant 0.707106769 : f32
    %217 = vector.broadcast %cst_87 : f32 to vector<8x64xf32>
    %218 = arith.mulf %214, %217 : vector<8x64xf32>
    %219 = math.absf %218 : vector<8x64xf32>
    %cst_88 = arith.constant 0.327591091 : f32
    %220 = vector.broadcast %cst_88 : f32 to vector<8x64xf32>
    %221 = arith.mulf %220, %219 : vector<8x64xf32>
    %cst_89 = arith.constant 1.000000e+00 : f32
    %222 = vector.broadcast %cst_89 : f32 to vector<8x64xf32>
    %223 = arith.addf %222, %221 : vector<8x64xf32>
    %224 = tpu.reciprocal %223 {approx = true} : vector<8x64xf32> -> vector<8x64xf32>
    %cst_90 = arith.constant 1.06140542 : f32
    %225 = vector.broadcast %cst_90 : f32 to vector<8x64xf32>
    %226 = arith.mulf %224, %225 : vector<8x64xf32>
    %cst_91 = arith.constant -1.45315206 : f32
    %227 = vector.broadcast %cst_91 : f32 to vector<8x64xf32>
    %228 = arith.addf %227, %226 : vector<8x64xf32>
    %229 = arith.mulf %224, %228 : vector<8x64xf32>
    %cst_92 = arith.constant 1.42141378 : f32
    %230 = vector.broadcast %cst_92 : f32 to vector<8x64xf32>
    %231 = arith.addf %230, %229 : vector<8x64xf32>
    %232 = arith.mulf %224, %231 : vector<8x64xf32>
    %cst_93 = arith.constant -0.284496725 : f32
    %233 = vector.broadcast %cst_93 : f32 to vector<8x64xf32>
    %234 = arith.addf %233, %232 : vector<8x64xf32>
    %235 = arith.mulf %224, %234 : vector<8x64xf32>
    %cst_94 = arith.constant 0.254829586 : f32
    %236 = vector.broadcast %cst_94 : f32 to vector<8x64xf32>
    %237 = arith.addf %236, %235 : vector<8x64xf32>
    %238 = arith.mulf %224, %237 : vector<8x64xf32>
    %cst_95 = arith.constant 0.000000e+00 : f32
    %239 = vector.broadcast %cst_95 : f32 to vector<8x64xf32>
    %240 = arith.subf %239, %219 : vector<8x64xf32>
    %241 = arith.mulf %240, %219 : vector<8x64xf32>
    %242 = math.exp %241 : vector<8x64xf32>
    %243 = arith.mulf %238, %242 : vector<8x64xf32>
    %cst_96 = arith.constant 1.000000e+00 : f32
    %244 = vector.broadcast %cst_96 : f32 to vector<8x64xf32>
    %245 = arith.subf %244, %243 : vector<8x64xf32>
    %cst_97 = arith.constant 0.000000e+00 : f32
    %246 = vector.broadcast %cst_97 : f32 to vector<8x64xf32>
    %247 = arith.cmpf oge, %218, %246 : vector<8x64xf32>
    %cst_98 = arith.constant 0.000000e+00 : f32
    %248 = vector.broadcast %cst_98 : f32 to vector<8x64xf32>
    %249 = arith.subf %248, %245 : vector<8x64xf32>
    %250 = arith.select %247, %245, %249 : vector<8x64xi1>, vector<8x64xf32>
    %cst_99 = arith.constant 1.000000e+00 : f32
    %251 = vector.broadcast %cst_99 : f32 to vector<8x64xf32>
    %252 = arith.addf %251, %250 : vector<8x64xf32>
    %253 = arith.mulf %216, %252 : vector<8x64xf32>
    %c0_100 = arith.constant 0 : index
    %c0_101 = arith.constant 0 : index
    %254 = vector.load %arg19[%c0_100, %c0_101] : memref<64x32xf32, #tpu.memory_space<vmem>>, vector<64x32xf32>
    %cst_102 = arith.constant dense<0.000000e+00> : vector<8x32xf32>
    %255 = tpu.matmul %253, %254, %cst_102 {dimension_numbers = #tpu.dot_dimension_numbers<[1], [0], [0], [1], [0, 0, 1, 1], [], []>} : vector<8x64xf32>, vector<64x32xf32>, vector<8x32xf32> -> vector<8x32xf32>
    %c0_103 = arith.constant 0 : index
    %c0_104 = arith.constant 0 : index
    %256 = vector.load %arg20[%c0_103, %c0_104] : memref<1x32xf32, #tpu.memory_space<vmem>>, vector<1x32xf32>
    %257 = vector.broadcast %256 : vector<1x32xf32> to vector<8x32xf32>
    %258 = arith.addf %255, %257 : vector<8x32xf32>
    %259 = arith.addf %258, %209 : vector<8x32xf32>
    %c0_105 = arith.constant 0 : index
    %c0_106 = arith.constant 0 : index
    %260 = vector.load %arg21[%c0_105, %c0_106] : memref<1x32xf32, #tpu.memory_space<vmem>>, vector<1x32xf32>
    %c0_107 = arith.constant 0 : index
    %c0_108 = arith.constant 0 : index
    %261 = vector.load %arg22[%c0_107, %c0_108] : memref<1x32xf32, #tpu.memory_space<vmem>>, vector<1x32xf32>
    %cst_109 = arith.constant dense<0.000000e+00> : vector<8xf32>
    %262 = vector.multi_reduction <add>, %259, %cst_109 [1] : vector<8x32xf32> to vector<8xf32>
    %263 = vector.shape_cast %262 : vector<8xf32> to vector<8x1xf32>
    %cst_110 = arith.constant 3.200000e+01 : f32
    %264 = vector.broadcast %cst_110 : f32 to vector<8x1xf32>
    %265 = arith.divf %263, %264 : vector<8x1xf32>
    %266 = vector.broadcast %265 : vector<8x1xf32> to vector<8x32xf32>
    %267 = arith.subf %259, %266 : vector<8x32xf32>
    %268 = arith.mulf %267, %267 : vector<8x32xf32>
    %cst_111 = arith.constant dense<0.000000e+00> : vector<8xf32>
    %269 = vector.multi_reduction <add>, %268, %cst_111 [1] : vector<8x32xf32> to vector<8xf32>
    %270 = vector.shape_cast %269 : vector<8xf32> to vector<8x1xf32>
    %cst_112 = arith.constant 3.200000e+01 : f32
    %271 = vector.broadcast %cst_112 : f32 to vector<8x1xf32>
    %272 = arith.divf %270, %271 : vector<8x1xf32>
    %273 = vector.broadcast %265 : vector<8x1xf32> to vector<8x32xf32>
    %274 = arith.subf %259, %273 : vector<8x32xf32>
    %cst_113 = arith.constant 9.99999974E-6 : f32
    %275 = vector.broadcast %cst_113 : f32 to vector<8x1xf32>
    %276 = arith.addf %272, %275 : vector<8x1xf32>
    %277 = math.rsqrt %276 : vector<8x1xf32>
    %278 = vector.broadcast %277 : vector<8x1xf32> to vector<8x32xf32>
    %279 = arith.mulf %274, %278 : vector<8x32xf32>
    %280 = vector.broadcast %260 : vector<1x32xf32> to vector<8x32xf32>
    %281 = arith.mulf %279, %280 : vector<8x32xf32>
    %282 = vector.broadcast %261 : vector<1x32xf32> to vector<8x32xf32>
    %283 = arith.addf %281, %282 : vector<8x32xf32>
    %c0_114 = arith.constant 0 : index
    %c0_115 = arith.constant 0 : index
    %c0_116 = arith.constant 0 : index
    %284 = vector.load %arg23[%c0_114, %c0_115, %c0_116] : memref<1x8x32xf32, #tpu.memory_space<vmem>>, vector<1x8x32xf32>
    %285 = vector.shape_cast %284 : vector<1x8x32xf32> to vector<8x32xf32>
    %286 = vector.shape_cast %283 : vector<8x32xf32> to vector<1x8x32xf32>
    tpu.vector_store %arg23[%c0_114, %c0_115, %c0_116], %286 {strides = array<i32>} : memref<1x8x32xf32, #tpu.memory_space<vmem>>, vector<1x8x32xf32>,
    return
  }
  func.func @transform_0(%arg0: i32) -> (i32, i32, i32) {
    %c0_i32 = arith.constant 0 : i32
    %c0_i32_0 = arith.constant 0 : i32
    %c0_i32_1 = arith.constant 0 : i32
    return %arg0, %c0_i32, %c0_i32_0 : i32, i32, i32
  }
  func.func @transform_1(%arg0: i32) -> (i32, i32, i32) {
    %c0_i32 = arith.constant 0 : i32
    %c0_i32_0 = arith.constant 0 : i32
    %c0_i32_1 = arith.constant 0 : i32
    return %arg0, %c0_i32, %c0_i32_0 : i32, i32, i32
  }
  func.func @transform_2(%arg0: i32) -> (i32, i32) {
    %c0_i32 = arith.constant 0 : i32
    %c0_i32_0 = arith.constant 0 : i32
    %c0_i32_1 = arith.constant 0 : i32
    return %c0_i32, %c0_i32_0 : i32, i32
  }
  func.func @transform_3(%arg0: i32) -> (i32, i32) {
    %c0_i32 = arith.constant 0 : i32
    %c0_i32_0 = arith.constant 0 : i32
    %c0_i32_1 = arith.constant 0 : i32
    return %c0_i32, %c0_i32_0 : i32, i32
  }
  func.func @transform_4(%arg0: i32) -> (i32, i32) {
    %c0_i32 = arith.constant 0 : i32
    %c0_i32_0 = arith.constant 0 : i32
    %c0_i32_1 = arith.constant 0 : i32
    return %c0_i32, %c0_i32_0 : i32, i32
  }
  func.func @transform_5(%arg0: i32) -> (i32, i32) {
    %c0_i32 = arith.constant 0 : i32
    %c0_i32_0 = arith.constant 0 : i32
    %c0_i32_1 = arith.constant 0 : i32
    return %c0_i32, %c0_i32_0 : i32, i32
  }
  func.func @transform_6(%arg0: i32) -> (i32, i32) {
    %c0_i32 = arith.constant 0 : i32
    %c0_i32_0 = arith.constant 0 : i32
    %c0_i32_1 = arith.constant 0 : i32
    return %c0_i32, %c0_i32_0 : i32, i32
  }
  func.func @transform_7(%arg0: i32) -> (i32, i32) {
    %c0_i32 = arith.constant 0 : i32
    %c0_i32_0 = arith.constant 0 : i32
    %c0_i32_1 = arith.constant 0 : i32
    return %c0_i32, %c0_i32_0 : i32, i32
  }
  func.func @transform_8(%arg0: i32) -> (i32, i32) {
    %c0_i32 = arith.constant 0 : i32
    %c0_i32_0 = arith.constant 0 : i32
    %c0_i32_1 = arith.constant 0 : i32
    return %c0_i32, %c0_i32_0 : i32, i32
  }
  func.func @transform_9(%arg0: i32) -> (i32, i32) {
    %c0_i32 = arith.constant 0 : i32
    %c0_i32_0 = arith.constant 0 : i32
    %c0_i32_1 = arith.constant 0 : i32
    return %c0_i32, %c0_i32_0 : i32, i32
  }
  func.func @transform_10(%arg0: i32) -> (i32, i32) {
    %c0_i32 = arith.constant 0 : i32
    %c0_i32_0 = arith.constant 0 : i32
    %c0_i32_1 = arith.constant 0 : i32
    return %c0_i32, %c0_i32_0 : i32, i32
  }
  func.func @transform_11(%arg0: i32) -> (i32, i32) {
    %c0_i32 = arith.constant 0 : i32
    %c0_i32_0 = arith.constant 0 : i32
    %c0_i32_1 = arith.constant 0 : i32
    return %c0_i32, %c0_i32_0 : i32, i32
  }
  func.func @transform_12(%arg0: i32) -> (i32, i32) {
    %c0_i32 = arith.constant 0 : i32
    %c0_i32_0 = arith.constant 0 : i32
    %c0_i32_1 = arith.constant 0 : i32
    return %c0_i32, %c0_i32_0 : i32, i32
  }
  func.func @transform_13(%arg0: i32) -> (i32, i32) {
    %c0_i32 = arith.constant 0 : i32
    %c0_i32_0 = arith.constant 0 : i32
    %c0_i32_1 = arith.constant 0 : i32
    return %c0_i32, %c0_i32_0 : i32, i32
  }
  func.func @transform_14(%arg0: i32) -> (i32, i32) {
    %c0_i32 = arith.constant 0 : i32
    %c0_i32_0 = arith.constant 0 : i32
    %c0_i32_1 = arith.constant 0 : i32
    return %c0_i32, %c0_i32_0 : i32, i32
  }
  func.func @transform_15(%arg0: i32) -> (i32, i32) {
    %c0_i32 = arith.constant 0 : i32
    %c0_i32_0 = arith.constant 0 : i32
    %c0_i32_1 = arith.constant 0 : i32
    return %c0_i32, %c0_i32_0 : i32, i32
  }
  func.func @transform_16(%arg0: i32) -> (i32, i32) {
    %c0_i32 = arith.constant 0 : i32
    %c0_i32_0 = arith.constant 0 : i32
    %c0_i32_1 = arith.constant 0 : i32
    return %c0_i32, %c0_i32_0 : i32, i32
  }
  func.func @transform_17(%arg0: i32) -> (i32, i32) {
    %c0_i32 = arith.constant 0 : i32
    %c0_i32_0 = arith.constant 0 : i32
    %c0_i32_1 = arith.constant 0 : i32
    return %c0_i32, %c0_i32_0 : i32, i32
  }
  func.func @transform_18(%arg0: i32) -> (i32, i32) {
    %c0_i32 = arith.constant 0 : i32
    %c0_i32_0 = arith.constant 0 : i32
    %c0_i32_1 = arith.constant 0 : i32
    return %c0_i32, %c0_i32_0 : i32, i32
  }
  func.func @transform_19(%arg0: i32) -> (i32, i32) {
    %c0_i32 = arith.constant 0 : i32
    %c0_i32_0 = arith.constant 0 : i32
    %c0_i32_1 = arith.constant 0 : i32
    return %c0_i32, %c0_i32_0 : i32, i32
  }
  func.func @transform_20(%arg0: i32) -> (i32, i32) {
    %c0_i32 = arith.constant 0 : i32
    %c0_i32_0 = arith.constant 0 : i32
    %c0_i32_1 = arith.constant 0 : i32
    return %c0_i32, %c0_i32_0 : i32, i32
  }
  func.func @transform_21(%arg0: i32) -> (i32, i32) {
    %c0_i32 = arith.constant 0 : i32
    %c0_i32_0 = arith.constant 0 : i32
    %c0_i32_1 = arith.constant 0 : i32
    return %c0_i32, %c0_i32_0 : i32, i32
  }
  func.func @transform_22(%arg0: i32) -> (i32, i32, i32) {
    %c0_i32 = arith.constant 0 : i32
    %c0_i32_0 = arith.constant 0 : i32
    %c0_i32_1 = arith.constant 0 : i32
    return %arg0, %c0_i32, %c0_i32_0 : i32, i32, i32
  }
}

module attributes {stable_mosaic.version = 11 : i64} {
  func.func @_decoder_block_kernel(%arg0: i32, %arg1: memref<1x8x32xf32, #tpu.memory_space<vmem>>, %arg2: memref<1x10x32xf32, #tpu.memory_space<vmem>>, %arg3: memref<32x96xf32, #tpu.memory_space<vmem>>, %arg4: memref<1x96xf32, #tpu.memory_space<vmem>>, %arg5: memref<32x32xf32, #tpu.memory_space<vmem>>, %arg6: memref<1x32xf32, #tpu.memory_space<vmem>>, %arg7: memref<1x32xf32, #tpu.memory_space<vmem>>, %arg8: memref<1x32xf32, #tpu.memory_space<vmem>>, %arg9: memref<32x32xf32, #tpu.memory_space<vmem>>, %arg10: memref<1x32xf32, #tpu.memory_space<vmem>>, %arg11: memref<32x64xf32, #tpu.memory_space<vmem>>, %arg12: memref<1x64xf32, #tpu.memory_space<vmem>>, %arg13: memref<32x32xf32, #tpu.memory_space<vmem>>, %arg14: memref<1x32xf32, #tpu.memory_space<vmem>>, %arg15: memref<1x32xf32, #tpu.memory_space<vmem>>, %arg16: memref<1x32xf32, #tpu.memory_space<vmem>>, %arg17: memref<32x64xf32, #tpu.memory_space<vmem>>, %arg18: memref<1x64xf32, #tpu.memory_space<vmem>>, %arg19: memref<64x32xf32, #tpu.memory_space<vmem>>, %arg20: memref<1x32xf32, #tpu.memory_space<vmem>>, %arg21: memref<1x32xf32, #tpu.memory_space<vmem>>, %arg22: memref<1x32xf32, #tpu.memory_space<vmem>>, %arg23: memref<32x16xf32, #tpu.memory_space<vmem>>, %arg24: memref<1x16xf32, #tpu.memory_space<vmem>>, %arg25: memref<1x8x16xf32, #tpu.memory_space<vmem>>) attributes {dimension_semantics = [#tpu.dimension_semantics<parallel>], iteration_bounds = array<i64: 2>, scalar_prefetch = 0 : i64, scratch_operands = 0 : i64, tpu.core_type = #tpu.core_type<tc>, window_params = [{transform_indices = @transform_0, window_bounds = array<i64: 1, 8, 32>}, {transform_indices = @transform_1, window_bounds = array<i64: 1, 10, 32>}, {pipeline_mode = #tpu.pipeline_mode<synchronous>, transform_indices = @transform_2, window_bounds = array<i64: 32, 96>}, {pipeline_mode = #tpu.pipeline_mode<synchronous>, transform_indices = @transform_3, window_bounds = array<i64: 1, 96>}, {pipeline_mode = #tpu.pipeline_mode<synchronous>, transform_indices = @transform_4, window_bounds = array<i64: 32, 32>}, {pipeline_mode = #tpu.pipeline_mode<synchronous>, transform_indices = @transform_5, window_bounds = array<i64: 1, 32>}, {pipeline_mode = #tpu.pipeline_mode<synchronous>, transform_indices = @transform_6, window_bounds = array<i64: 1, 32>}, {pipeline_mode = #tpu.pipeline_mode<synchronous>, transform_indices = @transform_7, window_bounds = array<i64: 1, 32>}, {pipeline_mode = #tpu.pipeline_mode<synchronous>, transform_indices = @transform_8, window_bounds = array<i64: 32, 32>}, {pipeline_mode = #tpu.pipeline_mode<synchronous>, transform_indices = @transform_9, window_bounds = array<i64: 1, 32>}, {pipeline_mode = #tpu.pipeline_mode<synchronous>, transform_indices = @transform_10, window_bounds = array<i64: 32, 64>}, {pipeline_mode = #tpu.pipeline_mode<synchronous>, transform_indices = @transform_11, window_bounds = array<i64: 1, 64>}, {pipeline_mode = #tpu.pipeline_mode<synchronous>, transform_indices = @transform_12, window_bounds = array<i64: 32, 32>}, {pipeline_mode = #tpu.pipeline_mode<synchronous>, transform_indices = @transform_13, window_bounds = array<i64: 1, 32>}, {pipeline_mode = #tpu.pipeline_mode<synchronous>, transform_indices = @transform_14, window_bounds = array<i64: 1, 32>}, {pipeline_mode = #tpu.pipeline_mode<synchronous>, transform_indices = @transform_15, window_bounds = array<i64: 1, 32>}, {pipeline_mode = #tpu.pipeline_mode<synchronous>, transform_indices = @transform_16, window_bounds = array<i64: 32, 64>}, {pipeline_mode = #tpu.pipeline_mode<synchronous>, transform_indices = @transform_17, window_bounds = array<i64: 1, 64>}, {pipeline_mode = #tpu.pipeline_mode<synchronous>, transform_indices = @transform_18, window_bounds = array<i64: 64, 32>}, {pipeline_mode = #tpu.pipeline_mode<synchronous>, transform_indices = @transform_19, window_bounds = array<i64: 1, 32>}, {pipeline_mode = #tpu.pipeline_mode<synchronous>, transform_indices = @transform_20, window_bounds = array<i64: 1, 32>}, {pipeline_mode = #tpu.pipeline_mode<synchronous>, transform_indices = @transform_21, window_bounds = array<i64: 1, 32>}, {pipeline_mode = #tpu.pipeline_mode<synchronous>, transform_indices = @transform_22, window_bounds = array<i64: 32, 16>}, {pipeline_mode = #tpu.pipeline_mode<synchronous>, transform_indices = @transform_23, window_bounds = array<i64: 1, 16>}, {transform_indices = @transform_24, window_bounds = array<i64: 1, 8, 16>}]} {
    %c0 = arith.constant 0 : index
    %c0_0 = arith.constant 0 : index
    %c0_1 = arith.constant 0 : index
    %0 = vector.load %arg1[%c0, %c0_0, %c0_1] : memref<1x8x32xf32, #tpu.memory_space<vmem>>, vector<1x8x32xf32>
    %1 = vector.shape_cast %0 : vector<1x8x32xf32> to vector<8x32xf32>
    %c0_2 = arith.constant 0 : index
    %c0_3 = arith.constant 0 : index
    %c0_4 = arith.constant 0 : index
    %2 = vector.load %arg2[%c0_2, %c0_3, %c0_4] : memref<1x10x32xf32, #tpu.memory_space<vmem>>, vector<1x10x32xf32>
    %3 = vector.shape_cast %2 : vector<1x10x32xf32> to vector<10x32xf32>
    %c0_5 = arith.constant 0 : index
    %c0_6 = arith.constant 0 : index
    %4 = vector.load %arg3[%c0_5, %c0_6] : memref<32x96xf32, #tpu.memory_space<vmem>>, vector<32x96xf32>
    %cst = arith.constant dense<0.000000e+00> : vector<8x96xf32>
    %5 = tpu.matmul %1, %4, %cst {dimension_numbers = #tpu.dot_dimension_numbers<[1], [0], [0], [1], [0, 0, 1, 1], [], []>} : vector<8x32xf32>, vector<32x96xf32>, vector<8x96xf32> -> vector<8x96xf32>
    %c0_7 = arith.constant 0 : index
    %c0_8 = arith.constant 0 : index
    %6 = vector.load %arg4[%c0_7, %c0_8] : memref<1x96xf32, #tpu.memory_space<vmem>>, vector<1x96xf32>
    %7 = vector.broadcast %6 : vector<1x96xf32> to vector<8x96xf32>
    %8 = arith.addf %5, %7 : vector<8x96xf32>
    %9 = vector.extract_strided_slice %8 {offsets = [0, 0], sizes = [8, 32], strides = [1, 1]} : vector<8x96xf32> to vector<8x32xf32>
    %cst_9 = arith.constant 0.353553385 : f32
    %10 = vector.broadcast %cst_9 : f32 to vector<8x32xf32>
    %11 = arith.mulf %9, %10 : vector<8x32xf32>
    %12 = vector.extract_strided_slice %8 {offsets = [0, 32], sizes = [8, 32], strides = [1, 1]} : vector<8x96xf32> to vector<8x32xf32>
    %13 = vector.extract_strided_slice %8 {offsets = [0, 64], sizes = [8, 32], strides = [1, 1]} : vector<8x96xf32> to vector<8x32xf32>
    %c0_10 = arith.constant 0 : index
    %c0_11 = arith.constant 0 : index
    %14 = vector.load %arg5[%c0_10, %c0_11] : memref<32x32xf32, #tpu.memory_space<vmem>>, vector<32x32xf32>
    %c0_12 = arith.constant 0 : index
    %c0_13 = arith.constant 0 : index
    %15 = vector.load %arg6[%c0_12, %c0_13] : memref<1x32xf32, #tpu.memory_space<vmem>>, vector<1x32xf32>
    %16 = vector.extract_strided_slice %11 {offsets = [0, 0], sizes = [8, 8], strides = [1, 1]} : vector<8x32xf32> to vector<8x8xf32>
    %17 = vector.extract_strided_slice %12 {offsets = [0, 0], sizes = [8, 8], strides = [1, 1]} : vector<8x32xf32> to vector<8x8xf32>
    %18 = vector.extract_strided_slice %13 {offsets = [0, 0], sizes = [8, 8], strides = [1, 1]} : vector<8x32xf32> to vector<8x8xf32>
    %cst_14 = arith.constant dense<0.000000e+00> : vector<8x8xf32>
    %19 = tpu.matmul %16, %17, %cst_14 {dimension_numbers = #tpu.dot_dimension_numbers<[1], [1], [0], [0], [0, 0, 1, 0], [], []>} : vector<8x8xf32>, vector<8x8xf32>, vector<8x8xf32> -> vector<8x8xf32>
    %cst_15 = arith.constant dense<0xFF800000> : vector<8xf32>
    %20 = vector.multi_reduction <maximumf>, %19, %cst_15 [1] : vector<8x8xf32> to vector<8xf32>
    %21 = vector.shape_cast %20 : vector<8xf32> to vector<8x1xf32>
    %22 = vector.broadcast %21 : vector<8x1xf32> to vector<8x8xf32>
    %23 = arith.subf %19, %22 : vector<8x8xf32>
    %24 = math.exp %23 : vector<8x8xf32>
    %cst_16 = arith.constant dense<0.000000e+00> : vector<8xf32>
    %25 = vector.multi_reduction <add>, %24, %cst_16 [1] : vector<8x8xf32> to vector<8xf32>
    %26 = vector.shape_cast %25 : vector<8xf32> to vector<8x1xf32>
    %27 = tpu.reciprocal %26 {approx = true} : vector<8x1xf32> -> vector<8x1xf32>
    %28 = vector.broadcast %27 : vector<8x1xf32> to vector<8x8xf32>
    %29 = arith.mulf %24, %28 : vector<8x8xf32>
    %cst_17 = arith.constant dense<0.000000e+00> : vector<8x8xf32>
    %30 = tpu.matmul %29, %18, %cst_17 {dimension_numbers = #tpu.dot_dimension_numbers<[1], [0], [0], [1], [0, 0, 1, 1], [], []>} : vector<8x8xf32>, vector<8x8xf32>, vector<8x8xf32> -> vector<8x8xf32>
    %31 = vector.extract_strided_slice %11 {offsets = [0, 8], sizes = [8, 8], strides = [1, 1]} : vector<8x32xf32> to vector<8x8xf32>
    %32 = vector.extract_strided_slice %12 {offsets = [0, 8], sizes = [8, 8], strides = [1, 1]} : vector<8x32xf32> to vector<8x8xf32>
    %33 = vector.extract_strided_slice %13 {offsets = [0, 8], sizes = [8, 8], strides = [1, 1]} : vector<8x32xf32> to vector<8x8xf32>
    %cst_18 = arith.constant dense<0.000000e+00> : vector<8x8xf32>
    %34 = tpu.matmul %31, %32, %cst_18 {dimension_numbers = #tpu.dot_dimension_numbers<[1], [1], [0], [0], [0, 0, 1, 0], [], []>} : vector<8x8xf32>, vector<8x8xf32>, vector<8x8xf32> -> vector<8x8xf32>
    %cst_19 = arith.constant dense<0xFF800000> : vector<8xf32>
    %35 = vector.multi_reduction <maximumf>, %34, %cst_19 [1] : vector<8x8xf32> to vector<8xf32>
    %36 = vector.shape_cast %35 : vector<8xf32> to vector<8x1xf32>
    %37 = vector.broadcast %36 : vector<8x1xf32> to vector<8x8xf32>
    %38 = arith.subf %34, %37 : vector<8x8xf32>
    %39 = math.exp %38 : vector<8x8xf32>
    %cst_20 = arith.constant dense<0.000000e+00> : vector<8xf32>
    %40 = vector.multi_reduction <add>, %39, %cst_20 [1] : vector<8x8xf32> to vector<8xf32>
    %41 = vector.shape_cast %40 : vector<8xf32> to vector<8x1xf32>
    %42 = tpu.reciprocal %41 {approx = true} : vector<8x1xf32> -> vector<8x1xf32>
    %43 = vector.broadcast %42 : vector<8x1xf32> to vector<8x8xf32>
    %44 = arith.mulf %39, %43 : vector<8x8xf32>
    %cst_21 = arith.constant dense<0.000000e+00> : vector<8x8xf32>
    %45 = tpu.matmul %44, %33, %cst_21 {dimension_numbers = #tpu.dot_dimension_numbers<[1], [0], [0], [1], [0, 0, 1, 1], [], []>} : vector<8x8xf32>, vector<8x8xf32>, vector<8x8xf32> -> vector<8x8xf32>
    %46 = vector.extract_strided_slice %11 {offsets = [0, 16], sizes = [8, 8], strides = [1, 1]} : vector<8x32xf32> to vector<8x8xf32>
    %47 = vector.extract_strided_slice %12 {offsets = [0, 16], sizes = [8, 8], strides = [1, 1]} : vector<8x32xf32> to vector<8x8xf32>
    %48 = vector.extract_strided_slice %13 {offsets = [0, 16], sizes = [8, 8], strides = [1, 1]} : vector<8x32xf32> to vector<8x8xf32>
    %cst_22 = arith.constant dense<0.000000e+00> : vector<8x8xf32>
    %49 = tpu.matmul %46, %47, %cst_22 {dimension_numbers = #tpu.dot_dimension_numbers<[1], [1], [0], [0], [0, 0, 1, 0], [], []>} : vector<8x8xf32>, vector<8x8xf32>, vector<8x8xf32> -> vector<8x8xf32>
    %cst_23 = arith.constant dense<0xFF800000> : vector<8xf32>
    %50 = vector.multi_reduction <maximumf>, %49, %cst_23 [1] : vector<8x8xf32> to vector<8xf32>
    %51 = vector.shape_cast %50 : vector<8xf32> to vector<8x1xf32>
    %52 = vector.broadcast %51 : vector<8x1xf32> to vector<8x8xf32>
    %53 = arith.subf %49, %52 : vector<8x8xf32>
    %54 = math.exp %53 : vector<8x8xf32>
    %cst_24 = arith.constant dense<0.000000e+00> : vector<8xf32>
    %55 = vector.multi_reduction <add>, %54, %cst_24 [1] : vector<8x8xf32> to vector<8xf32>
    %56 = vector.shape_cast %55 : vector<8xf32> to vector<8x1xf32>
    %57 = tpu.reciprocal %56 {approx = true} : vector<8x1xf32> -> vector<8x1xf32>
    %58 = vector.broadcast %57 : vector<8x1xf32> to vector<8x8xf32>
    %59 = arith.mulf %54, %58 : vector<8x8xf32>
    %cst_25 = arith.constant dense<0.000000e+00> : vector<8x8xf32>
    %60 = tpu.matmul %59, %48, %cst_25 {dimension_numbers = #tpu.dot_dimension_numbers<[1], [0], [0], [1], [0, 0, 1, 1], [], []>} : vector<8x8xf32>, vector<8x8xf32>, vector<8x8xf32> -> vector<8x8xf32>
    %61 = vector.extract_strided_slice %11 {offsets = [0, 24], sizes = [8, 8], strides = [1, 1]} : vector<8x32xf32> to vector<8x8xf32>
    %62 = vector.extract_strided_slice %12 {offsets = [0, 24], sizes = [8, 8], strides = [1, 1]} : vector<8x32xf32> to vector<8x8xf32>
    %63 = vector.extract_strided_slice %13 {offsets = [0, 24], sizes = [8, 8], strides = [1, 1]} : vector<8x32xf32> to vector<8x8xf32>
    %cst_26 = arith.constant dense<0.000000e+00> : vector<8x8xf32>
    %64 = tpu.matmul %61, %62, %cst_26 {dimension_numbers = #tpu.dot_dimension_numbers<[1], [1], [0], [0], [0, 0, 1, 0], [], []>} : vector<8x8xf32>, vector<8x8xf32>, vector<8x8xf32> -> vector<8x8xf32>
    %cst_27 = arith.constant dense<0xFF800000> : vector<8xf32>
    %65 = vector.multi_reduction <maximumf>, %64, %cst_27 [1] : vector<8x8xf32> to vector<8xf32>
    %66 = vector.shape_cast %65 : vector<8xf32> to vector<8x1xf32>
    %67 = vector.broadcast %66 : vector<8x1xf32> to vector<8x8xf32>
    %68 = arith.subf %64, %67 : vector<8x8xf32>
    %69 = math.exp %68 : vector<8x8xf32>
    %cst_28 = arith.constant dense<0.000000e+00> : vector<8xf32>
    %70 = vector.multi_reduction <add>, %69, %cst_28 [1] : vector<8x8xf32> to vector<8xf32>
    %71 = vector.shape_cast %70 : vector<8xf32> to vector<8x1xf32>
    %72 = tpu.reciprocal %71 {approx = true} : vector<8x1xf32> -> vector<8x1xf32>
    %73 = vector.broadcast %72 : vector<8x1xf32> to vector<8x8xf32>
    %74 = arith.mulf %69, %73 : vector<8x8xf32>
    %cst_29 = arith.constant dense<0.000000e+00> : vector<8x8xf32>
    %75 = tpu.matmul %74, %63, %cst_29 {dimension_numbers = #tpu.dot_dimension_numbers<[1], [0], [0], [1], [0, 0, 1, 1], [], []>} : vector<8x8xf32>, vector<8x8xf32>, vector<8x8xf32> -> vector<8x8xf32>
    %76 = tpu.concatenate %30, %45, %60, %75 in 1 : vector<8x8xf32>, vector<8x8xf32>, vector<8x8xf32>, vector<8x8xf32> -> vector<8x32xf32>
    %cst_30 = arith.constant dense<0.000000e+00> : vector<8x32xf32>
    %77 = tpu.matmul %76, %14, %cst_30 {dimension_numbers = #tpu.dot_dimension_numbers<[1], [0], [0], [1], [0, 0, 1, 1], [], []>} : vector<8x32xf32>, vector<32x32xf32>, vector<8x32xf32> -> vector<8x32xf32>
    %78 = vector.broadcast %15 : vector<1x32xf32> to vector<8x32xf32>
    %79 = arith.addf %77, %78 : vector<8x32xf32>
    %80 = arith.addf %79, %1 : vector<8x32xf32>
    %c0_31 = arith.constant 0 : index
    %c0_32 = arith.constant 0 : index
    %81 = vector.load %arg7[%c0_31, %c0_32] : memref<1x32xf32, #tpu.memory_space<vmem>>, vector<1x32xf32>
    %c0_33 = arith.constant 0 : index
    %c0_34 = arith.constant 0 : index
    %82 = vector.load %arg8[%c0_33, %c0_34] : memref<1x32xf32, #tpu.memory_space<vmem>>, vector<1x32xf32>
    %cst_35 = arith.constant dense<0.000000e+00> : vector<8xf32>
    %83 = vector.multi_reduction <add>, %80, %cst_35 [1] : vector<8x32xf32> to vector<8xf32>
    %84 = vector.shape_cast %83 : vector<8xf32> to vector<8x1xf32>
    %cst_36 = arith.constant 3.200000e+01 : f32
    %85 = vector.broadcast %cst_36 : f32 to vector<8x1xf32>
    %86 = arith.divf %84, %85 : vector<8x1xf32>
    %87 = vector.broadcast %86 : vector<8x1xf32> to vector<8x32xf32>
    %88 = arith.subf %80, %87 : vector<8x32xf32>
    %89 = arith.mulf %88, %88 : vector<8x32xf32>
    %cst_37 = arith.constant dense<0.000000e+00> : vector<8xf32>
    %90 = vector.multi_reduction <add>, %89, %cst_37 [1] : vector<8x32xf32> to vector<8xf32>
    %91 = vector.shape_cast %90 : vector<8xf32> to vector<8x1xf32>
    %cst_38 = arith.constant 3.200000e+01 : f32
    %92 = vector.broadcast %cst_38 : f32 to vector<8x1xf32>
    %93 = arith.divf %91, %92 : vector<8x1xf32>
    %94 = vector.broadcast %86 : vector<8x1xf32> to vector<8x32xf32>
    %95 = arith.subf %80, %94 : vector<8x32xf32>
    %cst_39 = arith.constant 9.99999974E-6 : f32
    %96 = vector.broadcast %cst_39 : f32 to vector<8x1xf32>
    %97 = arith.addf %93, %96 : vector<8x1xf32>
    %98 = math.rsqrt %97 : vector<8x1xf32>
    %99 = vector.broadcast %98 : vector<8x1xf32> to vector<8x32xf32>
    %100 = arith.mulf %95, %99 : vector<8x32xf32>
    %101 = vector.broadcast %81 : vector<1x32xf32> to vector<8x32xf32>
    %102 = arith.mulf %100, %101 : vector<8x32xf32>
    %103 = vector.broadcast %82 : vector<1x32xf32> to vector<8x32xf32>
    %104 = arith.addf %102, %103 : vector<8x32xf32>
    %c0_40 = arith.constant 0 : index
    %c0_41 = arith.constant 0 : index
    %105 = vector.load %arg9[%c0_40, %c0_41] : memref<32x32xf32, #tpu.memory_space<vmem>>, vector<32x32xf32>
    %cst_42 = arith.constant dense<0.000000e+00> : vector<8x32xf32>
    %106 = tpu.matmul %104, %105, %cst_42 {dimension_numbers = #tpu.dot_dimension_numbers<[1], [0], [0], [1], [0, 0, 1, 1], [], []>} : vector<8x32xf32>, vector<32x32xf32>, vector<8x32xf32> -> vector<8x32xf32>
    %c0_43 = arith.constant 0 : index
    %c0_44 = arith.constant 0 : index
    %107 = vector.load %arg10[%c0_43, %c0_44] : memref<1x32xf32, #tpu.memory_space<vmem>>, vector<1x32xf32>
    %108 = vector.broadcast %107 : vector<1x32xf32> to vector<8x32xf32>
    %109 = arith.addf %106, %108 : vector<8x32xf32>
    %cst_45 = arith.constant 0.353553385 : f32
    %110 = vector.broadcast %cst_45 : f32 to vector<8x32xf32>
    %111 = arith.mulf %109, %110 : vector<8x32xf32>
    %c0_46 = arith.constant 0 : index
    %c0_47 = arith.constant 0 : index
    %112 = vector.load %arg11[%c0_46, %c0_47] : memref<32x64xf32, #tpu.memory_space<vmem>>, vector<32x64xf32>
    %cst_48 = arith.constant dense<0.000000e+00> : vector<10x64xf32>
    %113 = tpu.matmul %3, %112, %cst_48 {dimension_numbers = #tpu.dot_dimension_numbers<[1], [0], [0], [1], [0, 0, 1, 1], [], []>} : vector<10x32xf32>, vector<32x64xf32>, vector<10x64xf32> -> vector<10x64xf32>
    %c0_49 = arith.constant 0 : index
    %c0_50 = arith.constant 0 : index
    %114 = vector.load %arg12[%c0_49, %c0_50] : memref<1x64xf32, #tpu.memory_space<vmem>>, vector<1x64xf32>
    %115 = vector.broadcast %114 : vector<1x64xf32> to vector<10x64xf32>
    %116 = arith.addf %113, %115 : vector<10x64xf32>
    %117 = vector.extract_strided_slice %116 {offsets = [0, 0], sizes = [10, 32], strides = [1, 1]} : vector<10x64xf32> to vector<10x32xf32>
    %118 = vector.extract_strided_slice %116 {offsets = [0, 32], sizes = [10, 32], strides = [1, 1]} : vector<10x64xf32> to vector<10x32xf32>
    %c0_51 = arith.constant 0 : index
    %c0_52 = arith.constant 0 : index
    %119 = vector.load %arg13[%c0_51, %c0_52] : memref<32x32xf32, #tpu.memory_space<vmem>>, vector<32x32xf32>
    %c0_53 = arith.constant 0 : index
    %c0_54 = arith.constant 0 : index
    %120 = vector.load %arg14[%c0_53, %c0_54] : memref<1x32xf32, #tpu.memory_space<vmem>>, vector<1x32xf32>
    %121 = vector.extract_strided_slice %111 {offsets = [0, 0], sizes = [8, 8], strides = [1, 1]} : vector<8x32xf32> to vector<8x8xf32>
    %122 = vector.extract_strided_slice %117 {offsets = [0, 0], sizes = [10, 8], strides = [1, 1]} : vector<10x32xf32> to vector<10x8xf32>
    %123 = vector.extract_strided_slice %118 {offsets = [0, 0], sizes = [10, 8], strides = [1, 1]} : vector<10x32xf32> to vector<10x8xf32>
    %cst_55 = arith.constant dense<0.000000e+00> : vector<8x10xf32>
    %124 = tpu.matmul %121, %122, %cst_55 {dimension_numbers = #tpu.dot_dimension_numbers<[1], [1], [0], [0], [0, 0, 1, 0], [], []>} : vector<8x8xf32>, vector<10x8xf32>, vector<8x10xf32> -> vector<8x10xf32>
    %cst_56 = arith.constant dense<0xFF800000> : vector<8xf32>
    %125 = vector.multi_reduction <maximumf>, %124, %cst_56 [1] : vector<8x10xf32> to vector<8xf32>
    %126 = vector.shape_cast %125 : vector<8xf32> to vector<8x1xf32>
    %127 = vector.broadcast %126 : vector<8x1xf32> to vector<8x10xf32>
    %128 = arith.subf %124, %127 : vector<8x10xf32>
    %129 = math.exp %128 : vector<8x10xf32>
    %cst_57 = arith.constant dense<0.000000e+00> : vector<8xf32>
    %130 = vector.multi_reduction <add>, %129, %cst_57 [1] : vector<8x10xf32> to vector<8xf32>
    %131 = vector.shape_cast %130 : vector<8xf32> to vector<8x1xf32>
    %132 = tpu.reciprocal %131 {approx = true} : vector<8x1xf32> -> vector<8x1xf32>
    %133 = vector.broadcast %132 : vector<8x1xf32> to vector<8x10xf32>
    %134 = arith.mulf %129, %133 : vector<8x10xf32>
    %cst_58 = arith.constant dense<0.000000e+00> : vector<8x8xf32>
    %135 = tpu.matmul %134, %123, %cst_58 {dimension_numbers = #tpu.dot_dimension_numbers<[1], [0], [0], [1], [0, 0, 1, 1], [], []>} : vector<8x10xf32>, vector<10x8xf32>, vector<8x8xf32> -> vector<8x8xf32>
    %136 = vector.extract_strided_slice %111 {offsets = [0, 8], sizes = [8, 8], strides = [1, 1]} : vector<8x32xf32> to vector<8x8xf32>
    %137 = vector.extract_strided_slice %117 {offsets = [0, 8], sizes = [10, 8], strides = [1, 1]} : vector<10x32xf32> to vector<10x8xf32>
    %138 = vector.extract_strided_slice %118 {offsets = [0, 8], sizes = [10, 8], strides = [1, 1]} : vector<10x32xf32> to vector<10x8xf32>
    %cst_59 = arith.constant dense<0.000000e+00> : vector<8x10xf32>
    %139 = tpu.matmul %136, %137, %cst_59 {dimension_numbers = #tpu.dot_dimension_numbers<[1], [1], [0], [0], [0, 0, 1, 0], [], []>} : vector<8x8xf32>, vector<10x8xf32>, vector<8x10xf32> -> vector<8x10xf32>
    %cst_60 = arith.constant dense<0xFF800000> : vector<8xf32>
    %140 = vector.multi_reduction <maximumf>, %139, %cst_60 [1] : vector<8x10xf32> to vector<8xf32>
    %141 = vector.shape_cast %140 : vector<8xf32> to vector<8x1xf32>
    %142 = vector.broadcast %141 : vector<8x1xf32> to vector<8x10xf32>
    %143 = arith.subf %139, %142 : vector<8x10xf32>
    %144 = math.exp %143 : vector<8x10xf32>
    %cst_61 = arith.constant dense<0.000000e+00> : vector<8xf32>
    %145 = vector.multi_reduction <add>, %144, %cst_61 [1] : vector<8x10xf32> to vector<8xf32>
    %146 = vector.shape_cast %145 : vector<8xf32> to vector<8x1xf32>
    %147 = tpu.reciprocal %146 {approx = true} : vector<8x1xf32> -> vector<8x1xf32>
    %148 = vector.broadcast %147 : vector<8x1xf32> to vector<8x10xf32>
    %149 = arith.mulf %144, %148 : vector<8x10xf32>
    %cst_62 = arith.constant dense<0.000000e+00> : vector<8x8xf32>
    %150 = tpu.matmul %149, %138, %cst_62 {dimension_numbers = #tpu.dot_dimension_numbers<[1], [0], [0], [1], [0, 0, 1, 1], [], []>} : vector<8x10xf32>, vector<10x8xf32>, vector<8x8xf32> -> vector<8x8xf32>
    %151 = vector.extract_strided_slice %111 {offsets = [0, 16], sizes = [8, 8], strides = [1, 1]} : vector<8x32xf32> to vector<8x8xf32>
    %152 = vector.extract_strided_slice %117 {offsets = [0, 16], sizes = [10, 8], strides = [1, 1]} : vector<10x32xf32> to vector<10x8xf32>
    %153 = vector.extract_strided_slice %118 {offsets = [0, 16], sizes = [10, 8], strides = [1, 1]} : vector<10x32xf32> to vector<10x8xf32>
    %cst_63 = arith.constant dense<0.000000e+00> : vector<8x10xf32>
    %154 = tpu.matmul %151, %152, %cst_63 {dimension_numbers = #tpu.dot_dimension_numbers<[1], [1], [0], [0], [0, 0, 1, 0], [], []>} : vector<8x8xf32>, vector<10x8xf32>, vector<8x10xf32> -> vector<8x10xf32>
    %cst_64 = arith.constant dense<0xFF800000> : vector<8xf32>
    %155 = vector.multi_reduction <maximumf>, %154, %cst_64 [1] : vector<8x10xf32> to vector<8xf32>
    %156 = vector.shape_cast %155 : vector<8xf32> to vector<8x1xf32>
    %157 = vector.broadcast %156 : vector<8x1xf32> to vector<8x10xf32>
    %158 = arith.subf %154, %157 : vector<8x10xf32>
    %159 = math.exp %158 : vector<8x10xf32>
    %cst_65 = arith.constant dense<0.000000e+00> : vector<8xf32>
    %160 = vector.multi_reduction <add>, %159, %cst_65 [1] : vector<8x10xf32> to vector<8xf32>
    %161 = vector.shape_cast %160 : vector<8xf32> to vector<8x1xf32>
    %162 = tpu.reciprocal %161 {approx = true} : vector<8x1xf32> -> vector<8x1xf32>
    %163 = vector.broadcast %162 : vector<8x1xf32> to vector<8x10xf32>
    %164 = arith.mulf %159, %163 : vector<8x10xf32>
    %cst_66 = arith.constant dense<0.000000e+00> : vector<8x8xf32>
    %165 = tpu.matmul %164, %153, %cst_66 {dimension_numbers = #tpu.dot_dimension_numbers<[1], [0], [0], [1], [0, 0, 1, 1], [], []>} : vector<8x10xf32>, vector<10x8xf32>, vector<8x8xf32> -> vector<8x8xf32>
    %166 = vector.extract_strided_slice %111 {offsets = [0, 24], sizes = [8, 8], strides = [1, 1]} : vector<8x32xf32> to vector<8x8xf32>
    %167 = vector.extract_strided_slice %117 {offsets = [0, 24], sizes = [10, 8], strides = [1, 1]} : vector<10x32xf32> to vector<10x8xf32>
    %168 = vector.extract_strided_slice %118 {offsets = [0, 24], sizes = [10, 8], strides = [1, 1]} : vector<10x32xf32> to vector<10x8xf32>
    %cst_67 = arith.constant dense<0.000000e+00> : vector<8x10xf32>
    %169 = tpu.matmul %166, %167, %cst_67 {dimension_numbers = #tpu.dot_dimension_numbers<[1], [1], [0], [0], [0, 0, 1, 0], [], []>} : vector<8x8xf32>, vector<10x8xf32>, vector<8x10xf32> -> vector<8x10xf32>
    %cst_68 = arith.constant dense<0xFF800000> : vector<8xf32>
    %170 = vector.multi_reduction <maximumf>, %169, %cst_68 [1] : vector<8x10xf32> to vector<8xf32>
    %171 = vector.shape_cast %170 : vector<8xf32> to vector<8x1xf32>
    %172 = vector.broadcast %171 : vector<8x1xf32> to vector<8x10xf32>
    %173 = arith.subf %169, %172 : vector<8x10xf32>
    %174 = math.exp %173 : vector<8x10xf32>
    %cst_69 = arith.constant dense<0.000000e+00> : vector<8xf32>
    %175 = vector.multi_reduction <add>, %174, %cst_69 [1] : vector<8x10xf32> to vector<8xf32>
    %176 = vector.shape_cast %175 : vector<8xf32> to vector<8x1xf32>
    %177 = tpu.reciprocal %176 {approx = true} : vector<8x1xf32> -> vector<8x1xf32>
    %178 = vector.broadcast %177 : vector<8x1xf32> to vector<8x10xf32>
    %179 = arith.mulf %174, %178 : vector<8x10xf32>
    %cst_70 = arith.constant dense<0.000000e+00> : vector<8x8xf32>
    %180 = tpu.matmul %179, %168, %cst_70 {dimension_numbers = #tpu.dot_dimension_numbers<[1], [0], [0], [1], [0, 0, 1, 1], [], []>} : vector<8x10xf32>, vector<10x8xf32>, vector<8x8xf32> -> vector<8x8xf32>
    %181 = tpu.concatenate %135, %150, %165, %180 in 1 : vector<8x8xf32>, vector<8x8xf32>, vector<8x8xf32>, vector<8x8xf32> -> vector<8x32xf32>
    %cst_71 = arith.constant dense<0.000000e+00> : vector<8x32xf32>
    %182 = tpu.matmul %181, %119, %cst_71 {dimension_numbers = #tpu.dot_dimension_numbers<[1], [0], [0], [1], [0, 0, 1, 1], [], []>} : vector<8x32xf32>, vector<32x32xf32>, vector<8x32xf32> -> vector<8x32xf32>
    %183 = vector.broadcast %120 : vector<1x32xf32> to vector<8x32xf32>
    %184 = arith.addf %182, %183 : vector<8x32xf32>
    %185 = arith.addf %184, %104 : vector<8x32xf32>
    %c0_72 = arith.constant 0 : index
    %c0_73 = arith.constant 0 : index
    %186 = vector.load %arg15[%c0_72, %c0_73] : memref<1x32xf32, #tpu.memory_space<vmem>>, vector<1x32xf32>
    %c0_74 = arith.constant 0 : index
    %c0_75 = arith.constant 0 : index
    %187 = vector.load %arg16[%c0_74, %c0_75] : memref<1x32xf32, #tpu.memory_space<vmem>>, vector<1x32xf32>
    %cst_76 = arith.constant dense<0.000000e+00> : vector<8xf32>
    %188 = vector.multi_reduction <add>, %185, %cst_76 [1] : vector<8x32xf32> to vector<8xf32>
    %189 = vector.shape_cast %188 : vector<8xf32> to vector<8x1xf32>
    %cst_77 = arith.constant 3.200000e+01 : f32
    %190 = vector.broadcast %cst_77 : f32 to vector<8x1xf32>
    %191 = arith.divf %189, %190 : vector<8x1xf32>
    %192 = vector.broadcast %191 : vector<8x1xf32> to vector<8x32xf32>
    %193 = arith.subf %185, %192 : vector<8x32xf32>
    %194 = arith.mulf %193, %193 : vector<8x32xf32>
    %cst_78 = arith.constant dense<0.000000e+00> : vector<8xf32>
    %195 = vector.multi_reduction <add>, %194, %cst_78 [1] : vector<8x32xf32> to vector<8xf32>
    %196 = vector.shape_cast %195 : vector<8xf32> to vector<8x1xf32>
    %cst_79 = arith.constant 3.200000e+01 : f32
    %197 = vector.broadcast %cst_79 : f32 to vector<8x1xf32>
    %198 = arith.divf %196, %197 : vector<8x1xf32>
    %199 = vector.broadcast %191 : vector<8x1xf32> to vector<8x32xf32>
    %200 = arith.subf %185, %199 : vector<8x32xf32>
    %cst_80 = arith.constant 9.99999974E-6 : f32
    %201 = vector.broadcast %cst_80 : f32 to vector<8x1xf32>
    %202 = arith.addf %198, %201 : vector<8x1xf32>
    %203 = math.rsqrt %202 : vector<8x1xf32>
    %204 = vector.broadcast %203 : vector<8x1xf32> to vector<8x32xf32>
    %205 = arith.mulf %200, %204 : vector<8x32xf32>
    %206 = vector.broadcast %186 : vector<1x32xf32> to vector<8x32xf32>
    %207 = arith.mulf %205, %206 : vector<8x32xf32>
    %208 = vector.broadcast %187 : vector<1x32xf32> to vector<8x32xf32>
    %209 = arith.addf %207, %208 : vector<8x32xf32>
    %c0_81 = arith.constant 0 : index
    %c0_82 = arith.constant 0 : index
    %210 = vector.load %arg17[%c0_81, %c0_82] : memref<32x64xf32, #tpu.memory_space<vmem>>, vector<32x64xf32>
    %cst_83 = arith.constant dense<0.000000e+00> : vector<8x64xf32>
    %211 = tpu.matmul %209, %210, %cst_83 {dimension_numbers = #tpu.dot_dimension_numbers<[1], [0], [0], [1], [0, 0, 1, 1], [], []>} : vector<8x32xf32>, vector<32x64xf32>, vector<8x64xf32> -> vector<8x64xf32>
    %c0_84 = arith.constant 0 : index
    %c0_85 = arith.constant 0 : index
    %212 = vector.load %arg18[%c0_84, %c0_85] : memref<1x64xf32, #tpu.memory_space<vmem>>, vector<1x64xf32>
    %213 = vector.broadcast %212 : vector<1x64xf32> to vector<8x64xf32>
    %214 = arith.addf %211, %213 : vector<8x64xf32>
    %cst_86 = arith.constant 5.000000e-01 : f32
    %215 = vector.broadcast %cst_86 : f32 to vector<8x64xf32>
    %216 = arith.mulf %215, %214 : vector<8x64xf32>
    %cst_87 = arith.constant 0.707106769 : f32
    %217 = vector.broadcast %cst_87 : f32 to vector<8x64xf32>
    %218 = arith.mulf %214, %217 : vector<8x64xf32>
    %219 = math.absf %218 : vector<8x64xf32>
    %cst_88 = arith.constant 0.327591091 : f32
    %220 = vector.broadcast %cst_88 : f32 to vector<8x64xf32>
    %221 = arith.mulf %220, %219 : vector<8x64xf32>
    %cst_89 = arith.constant 1.000000e+00 : f32
    %222 = vector.broadcast %cst_89 : f32 to vector<8x64xf32>
    %223 = arith.addf %222, %221 : vector<8x64xf32>
    %224 = tpu.reciprocal %223 {approx = true} : vector<8x64xf32> -> vector<8x64xf32>
    %cst_90 = arith.constant 1.06140542 : f32
    %225 = vector.broadcast %cst_90 : f32 to vector<8x64xf32>
    %226 = arith.mulf %224, %225 : vector<8x64xf32>
    %cst_91 = arith.constant -1.45315206 : f32
    %227 = vector.broadcast %cst_91 : f32 to vector<8x64xf32>
    %228 = arith.addf %227, %226 : vector<8x64xf32>
    %229 = arith.mulf %224, %228 : vector<8x64xf32>
    %cst_92 = arith.constant 1.42141378 : f32
    %230 = vector.broadcast %cst_92 : f32 to vector<8x64xf32>
    %231 = arith.addf %230, %229 : vector<8x64xf32>
    %232 = arith.mulf %224, %231 : vector<8x64xf32>
    %cst_93 = arith.constant -0.284496725 : f32
    %233 = vector.broadcast %cst_93 : f32 to vector<8x64xf32>
    %234 = arith.addf %233, %232 : vector<8x64xf32>
    %235 = arith.mulf %224, %234 : vector<8x64xf32>
    %cst_94 = arith.constant 0.254829586 : f32
    %236 = vector.broadcast %cst_94 : f32 to vector<8x64xf32>
    %237 = arith.addf %236, %235 : vector<8x64xf32>
    %238 = arith.mulf %224, %237 : vector<8x64xf32>
    %cst_95 = arith.constant 0.000000e+00 : f32
    %239 = vector.broadcast %cst_95 : f32 to vector<8x64xf32>
    %240 = arith.subf %239, %219 : vector<8x64xf32>
    %241 = arith.mulf %240, %219 : vector<8x64xf32>
    %242 = math.exp %241 : vector<8x64xf32>
    %243 = arith.mulf %238, %242 : vector<8x64xf32>
    %cst_96 = arith.constant 1.000000e+00 : f32
    %244 = vector.broadcast %cst_96 : f32 to vector<8x64xf32>
    %245 = arith.subf %244, %243 : vector<8x64xf32>
    %cst_97 = arith.constant 0.000000e+00 : f32
    %246 = vector.broadcast %cst_97 : f32 to vector<8x64xf32>
    %247 = arith.cmpf oge, %218, %246 : vector<8x64xf32>
    %cst_98 = arith.constant 0.000000e+00 : f32
    %248 = vector.broadcast %cst_98 : f32 to vector<8x64xf32>
    %249 = arith.subf %248, %245 : vector<8x64xf32>
    %250 = arith.select %247, %245, %249 : vector<8x64xi1>, vector<8x64xf32>
    %cst_99 = arith.constant 1.000000e+00 : f32
    %251 = vector.broadcast %cst_99 : f32 to vector<8x64xf32>
    %252 = arith.addf %251, %250 : vector<8x64xf32>
    %253 = arith.mulf %216, %252 : vector<8x64xf32>
    %c0_100 = arith.constant 0 : index
    %c0_101 = arith.constant 0 : index
    %254 = vector.load %arg19[%c0_100, %c0_101] : memref<64x32xf32, #tpu.memory_space<vmem>>, vector<64x32xf32>
    %cst_102 = arith.constant dense<0.000000e+00> : vector<8x32xf32>
    %255 = tpu.matmul %253, %254, %cst_102 {dimension_numbers = #tpu.dot_dimension_numbers<[1], [0], [0], [1], [0, 0, 1, 1], [], []>} : vector<8x64xf32>, vector<64x32xf32>, vector<8x32xf32> -> vector<8x32xf32>
    %c0_103 = arith.constant 0 : index
    %c0_104 = arith.constant 0 : index
    %256 = vector.load %arg20[%c0_103, %c0_104] : memref<1x32xf32, #tpu.memory_space<vmem>>, vector<1x32xf32>
    %257 = vector.broadcast %256 : vector<1x32xf32> to vector<8x32xf32>
    %258 = arith.addf %255, %257 : vector<8x32xf32>
    %259 = arith.addf %258, %209 : vector<8x32xf32>
    %c0_105 = arith.constant 0 : index
    %c0_106 = arith.constant 0 : index
    %260 = vector.load %arg21[%c0_105, %c0_106] : memref<1x32xf32, #tpu.memory_space<vmem>>, vector<1x32xf32>
    %c0_107 = arith.constant 0 : index
    %c0_108 = arith.constant 0 : index
    %261 = vector.load %arg22[%c0_107, %c0_108] : memref<1x32xf32, #tpu.memory_space<vmem>>, vector<1x32xf32>
    %cst_109 = arith.constant dense<0.000000e+00> : vector<8xf32>
    %262 = vector.multi_reduction <add>, %259, %cst_109 [1] : vector<8x32xf32> to vector<8xf32>
    %263 = vector.shape_cast %262 : vector<8xf32> to vector<8x1xf32>
    %cst_110 = arith.constant 3.200000e+01 : f32
    %264 = vector.broadcast %cst_110 : f32 to vector<8x1xf32>
    %265 = arith.divf %263, %264 : vector<8x1xf32>
    %266 = vector.broadcast %265 : vector<8x1xf32> to vector<8x32xf32>
    %267 = arith.subf %259, %266 : vector<8x32xf32>
    %268 = arith.mulf %267, %267 : vector<8x32xf32>
    %cst_111 = arith.constant dense<0.000000e+00> : vector<8xf32>
    %269 = vector.multi_reduction <add>, %268, %cst_111 [1] : vector<8x32xf32> to vector<8xf32>
    %270 = vector.shape_cast %269 : vector<8xf32> to vector<8x1xf32>
    %cst_112 = arith.constant 3.200000e+01 : f32
    %271 = vector.broadcast %cst_112 : f32 to vector<8x1xf32>
    %272 = arith.divf %270, %271 : vector<8x1xf32>
    %273 = vector.broadcast %265 : vector<8x1xf32> to vector<8x32xf32>
    %274 = arith.subf %259, %273 : vector<8x32xf32>
    %cst_113 = arith.constant 9.99999974E-6 : f32
    %275 = vector.broadcast %cst_113 : f32 to vector<8x1xf32>
    %276 = arith.addf %272, %275 : vector<8x1xf32>
    %277 = math.rsqrt %276 : vector<8x1xf32>
    %278 = vector.broadcast %277 : vector<8x1xf32> to vector<8x32xf32>
    %279 = arith.mulf %274, %278 : vector<8x32xf32>
    %280 = vector.broadcast %260 : vector<1x32xf32> to vector<8x32xf32>
    %281 = arith.mulf %279, %280 : vector<8x32xf32>
    %282 = vector.broadcast %261 : vector<1x32xf32> to vector<8x32xf32>
    %283 = arith.addf %281, %282 : vector<8x32xf32>
    %c0_114 = arith.constant 0 : index
    %c0_115 = arith.constant 0 : index
    %284 = vector.load %arg23[%c0_114, %c0_115] : memref<32x16xf32, #tpu.memory_space<vmem>>, vector<32x16xf32>
    %cst_116 = arith.constant dense<0.000000e+00> : vector<8x16xf32>
    %285 = tpu.matmul %283, %284, %cst_116 {dimension_numbers = #tpu.dot_dimension_numbers<[1], [0], [0], [1], [0, 0, 1, 1], [], []>} : vector<8x32xf32>, vector<32x16xf32>, vector<8x16xf32> -> vector<8x16xf32>
    %c0_117 = arith.constant 0 : index
    %c0_118 = arith.constant 0 : index
    %286 = vector.load %arg24[%c0_117, %c0_118] : memref<1x16xf32, #tpu.memory_space<vmem>>, vector<1x16xf32>
    %287 = vector.broadcast %286 : vector<1x16xf32> to vector<8x16xf32>
    %288 = arith.addf %285, %287 : vector<8x16xf32>
    %c0_119 = arith.constant 0 : index
    %c0_120 = arith.constant 0 : index
    %c0_121 = arith.constant 0 : index
    %289 = vector.load %arg25[%c0_119, %c0_120, %c0_121] : memref<1x8x16xf32, #tpu.memory_space<vmem>>, vector<1x8x16xf32>
    %290 = vector.shape_cast %289 : vector<1x8x16xf32> to vector<8x16xf32>
    %291 = vector.shape_cast %288 : vector<8x16xf32> to vector<1x8x16xf32>
    tpu.vector_store %arg25[%c0_119, %c0_120, %c0_121], %291 {strides = array<i32>} : memref<1x8x16xf32, #tpu.memory_space<vmem>>, vector<1x8x16xf32>,
    return
  }
  func.func @transform_0(%arg0: i32) -> (i32, i32, i32) {
    %c0_i32 = arith.constant 0 : i32
    %c0_i32_0 = arith.constant 0 : i32
    %c0_i32_1 = arith.constant 0 : i32
    return %arg0, %c0_i32, %c0_i32_0 : i32, i32, i32
  }
  func.func @transform_1(%arg0: i32) -> (i32, i32, i32) {
    %c0_i32 = arith.constant 0 : i32
    %c0_i32_0 = arith.constant 0 : i32
    %c0_i32_1 = arith.constant 0 : i32
    return %arg0, %c0_i32, %c0_i32_0 : i32, i32, i32
  }
  func.func @transform_2(%arg0: i32) -> (i32, i32) {
    %c0_i32 = arith.constant 0 : i32
    %c0_i32_0 = arith.constant 0 : i32
    %c0_i32_1 = arith.constant 0 : i32
    return %c0_i32, %c0_i32_0 : i32, i32
  }
  func.func @transform_3(%arg0: i32) -> (i32, i32) {
    %c0_i32 = arith.constant 0 : i32
    %c0_i32_0 = arith.constant 0 : i32
    %c0_i32_1 = arith.constant 0 : i32
    return %c0_i32, %c0_i32_0 : i32, i32
  }
  func.func @transform_4(%arg0: i32) -> (i32, i32) {
    %c0_i32 = arith.constant 0 : i32
    %c0_i32_0 = arith.constant 0 : i32
    %c0_i32_1 = arith.constant 0 : i32
    return %c0_i32, %c0_i32_0 : i32, i32
  }
  func.func @transform_5(%arg0: i32) -> (i32, i32) {
    %c0_i32 = arith.constant 0 : i32
    %c0_i32_0 = arith.constant 0 : i32
    %c0_i32_1 = arith.constant 0 : i32
    return %c0_i32, %c0_i32_0 : i32, i32
  }
  func.func @transform_6(%arg0: i32) -> (i32, i32) {
    %c0_i32 = arith.constant 0 : i32
    %c0_i32_0 = arith.constant 0 : i32
    %c0_i32_1 = arith.constant 0 : i32
    return %c0_i32, %c0_i32_0 : i32, i32
  }
  func.func @transform_7(%arg0: i32) -> (i32, i32) {
    %c0_i32 = arith.constant 0 : i32
    %c0_i32_0 = arith.constant 0 : i32
    %c0_i32_1 = arith.constant 0 : i32
    return %c0_i32, %c0_i32_0 : i32, i32
  }
  func.func @transform_8(%arg0: i32) -> (i32, i32) {
    %c0_i32 = arith.constant 0 : i32
    %c0_i32_0 = arith.constant 0 : i32
    %c0_i32_1 = arith.constant 0 : i32
    return %c0_i32, %c0_i32_0 : i32, i32
  }
  func.func @transform_9(%arg0: i32) -> (i32, i32) {
    %c0_i32 = arith.constant 0 : i32
    %c0_i32_0 = arith.constant 0 : i32
    %c0_i32_1 = arith.constant 0 : i32
    return %c0_i32, %c0_i32_0 : i32, i32
  }
  func.func @transform_10(%arg0: i32) -> (i32, i32) {
    %c0_i32 = arith.constant 0 : i32
    %c0_i32_0 = arith.constant 0 : i32
    %c0_i32_1 = arith.constant 0 : i32
    return %c0_i32, %c0_i32_0 : i32, i32
  }
  func.func @transform_11(%arg0: i32) -> (i32, i32) {
    %c0_i32 = arith.constant 0 : i32
    %c0_i32_0 = arith.constant 0 : i32
    %c0_i32_1 = arith.constant 0 : i32
    return %c0_i32, %c0_i32_0 : i32, i32
  }
  func.func @transform_12(%arg0: i32) -> (i32, i32) {
    %c0_i32 = arith.constant 0 : i32
    %c0_i32_0 = arith.constant 0 : i32
    %c0_i32_1 = arith.constant 0 : i32
    return %c0_i32, %c0_i32_0 : i32, i32
  }
  func.func @transform_13(%arg0: i32) -> (i32, i32) {
    %c0_i32 = arith.constant 0 : i32
    %c0_i32_0 = arith.constant 0 : i32
    %c0_i32_1 = arith.constant 0 : i32
    return %c0_i32, %c0_i32_0 : i32, i32
  }
  func.func @transform_14(%arg0: i32) -> (i32, i32) {
    %c0_i32 = arith.constant 0 : i32
    %c0_i32_0 = arith.constant 0 : i32
    %c0_i32_1 = arith.constant 0 : i32
    return %c0_i32, %c0_i32_0 : i32, i32
  }
  func.func @transform_15(%arg0: i32) -> (i32, i32) {
    %c0_i32 = arith.constant 0 : i32
    %c0_i32_0 = arith.constant 0 : i32
    %c0_i32_1 = arith.constant 0 : i32
    return %c0_i32, %c0_i32_0 : i32, i32
  }
  func.func @transform_16(%arg0: i32) -> (i32, i32) {
    %c0_i32 = arith.constant 0 : i32
    %c0_i32_0 = arith.constant 0 : i32
    %c0_i32_1 = arith.constant 0 : i32
    return %c0_i32, %c0_i32_0 : i32, i32
  }
  func.func @transform_17(%arg0: i32) -> (i32, i32) {
    %c0_i32 = arith.constant 0 : i32
    %c0_i32_0 = arith.constant 0 : i32
    %c0_i32_1 = arith.constant 0 : i32
    return %c0_i32, %c0_i32_0 : i32, i32
  }
  func.func @transform_18(%arg0: i32) -> (i32, i32) {
    %c0_i32 = arith.constant 0 : i32
    %c0_i32_0 = arith.constant 0 : i32
    %c0_i32_1 = arith.constant 0 : i32
    return %c0_i32, %c0_i32_0 : i32, i32
  }
  func.func @transform_19(%arg0: i32) -> (i32, i32) {
    %c0_i32 = arith.constant 0 : i32
    %c0_i32_0 = arith.constant 0 : i32
    %c0_i32_1 = arith.constant 0 : i32
    return %c0_i32, %c0_i32_0 : i32, i32
  }
  func.func @transform_20(%arg0: i32) -> (i32, i32) {
    %c0_i32 = arith.constant 0 : i32
    %c0_i32_0 = arith.constant 0 : i32
    %c0_i32_1 = arith.constant 0 : i32
    return %c0_i32, %c0_i32_0 : i32, i32
  }
  func.func @transform_21(%arg0: i32) -> (i32, i32) {
    %c0_i32 = arith.constant 0 : i32
    %c0_i32_0 = arith.constant 0 : i32
    %c0_i32_1 = arith.constant 0 : i32
    return %c0_i32, %c0_i32_0 : i32, i32
  }
  func.func @transform_22(%arg0: i32) -> (i32, i32) {
    %c0_i32 = arith.constant 0 : i32
    %c0_i32_0 = arith.constant 0 : i32
    %c0_i32_1 = arith.constant 0 : i32
    return %c0_i32, %c0_i32_0 : i32, i32
  }
  func.func @transform_23(%arg0: i32) -> (i32, i32) {
    %c0_i32 = arith.constant 0 : i32
    %c0_i32_0 = arith.constant 0 : i32
    %c0_i32_1 = arith.constant 0 : i32
    return %c0_i32, %c0_i32_0 : i32, i32
  }
  func.func @transform_24(%arg0: i32) -> (i32, i32, i32) {
    %c0_i32 = arith.constant 0 : i32
    %c0_i32_0 = arith.constant 0 : i32
    %c0_i32_1 = arith.constant 0 : i32
    return %arg0, %c0_i32, %c0_i32_0 : i32, i32, i32
  }
}

</mosaic_0001>

<bundles_post_ra>
// kernel: transformer_decoder.3
= control target key start
LH: loop header
LB: loop body
LE: loop exit
PB: predicated region body
PF: predicated region fallthrough
CT: control target
= control target key end

     0   :  { %s3399_s0 = inlined_call_operand.vmem [shape: f32[2,8,32], index: 0, kind: input, shape index: {}]   ;;  %s3400_s1 = inlined_call_operand.vmem [shape: f32[2,10,32], index: 1, kind: input, shape index: {}]   ;;  %s3401_s2 = inlined_call_operand.vmem [shape: f32[32,96], index: 2, kind: input, shape index: {}]   ;;  %s3402_s3 = inlined_call_operand.vmem [shape: f32[1,96], index: 3, kind: input, shape index: {}]   ;;  %s3403_s4 = inlined_call_operand.vmem [shape: f32[32,32], index: 4, kind: input, shape index: {}]   ;;  %s3404_s5 = inlined_call_operand.vmem [shape: f32[1,32], index: 5, kind: input, shape index: {}]   ;;  %s3405_s6 = inlined_call_operand.hbm [shape: f32[1,32], index: 6, kind: input, shape index: {}]   ;;  %s3406_s7 = inlined_call_operand.hbm [shape: f32[1,32], index: 7, kind: input, shape index: {}]   ;;  %s3407_s8 = inlined_call_operand.vmem [shape: f32[32,32], index: 8, kind: input, shape index: {}]   ;;  %s3408_s9 = inlined_call_operand.hbm [shape: f32[1,32], index: 9, kind: input, shape index: {}]   ;;  %s3409_s10 = inlined_call_operand.hbm [shape: f32[32,64], index: 10, kind: input, shape index: {}]   ;;  %s3410_s11 = inlined_call_operand.hbm [shape: f32[1,64], index: 11, kind: input, shape index: {}]   ;;  %s3411_s12 = inlined_call_operand.hbm [shape: f32[32,32], index: 12, kind: input, shape index: {}]   ;;  %s3412_s13 = inlined_call_operand.hbm [shape: f32[1,32], index: 13, kind: input, shape index: {}]   ;;  %s3413_s14 = inlined_call_operand.vmem [shape: f32[1,32], index: 14, kind: input, shape index: {}]   ;;  %s3414_s15 = inlined_call_operand.hbm [shape: f32[1,32], index: 15, kind: input, shape index: {}]   ;;  %s3415_s16 = inlined_call_operand.vmem [shape: f32[32,64], index: 16, kind: input, shape index: {}]   ;;  %s3416_s17 = inlined_call_operand.hbm [shape: f32[1,64], index: 17, kind: input, shape index: {}]   ;;  %s3417_s18 = inlined_call_operand.vmem [shape: f32[64,32], index: 18, kind: input, shape index: {}]   ;;  %s3418_s19 = inlined_call_operand.hbm [shape: f32[1,32], index: 19, kind: input, shape index: {}]   ;;  %s3419_s20 = inlined_call_operand.vmem [shape: f32[1,32], index: 20, kind: input, shape index: {}]   ;;  %s3420_s21 = inlined_call_operand.hbm [shape: f32[1,32], index: 21, kind: input, shape index: {}]   ;;  %s3421_s22 = inlined_call_operand.vmem [shape: f32[32,16], index: 22, kind: input, shape index: {}]   ;;  %s3422_s23 = inlined_call_operand.vmem [shape: f32[1,16], index: 23, kind: input, shape index: {}]   ;;  %s3423_s24 = inlined_call_operand.hbm [shape: f32[2,8,16], index: 24, kind: output, shape index: {}]  }
   0x1   :  { %3442 = sst [smem:[#allocation35_spill]] %s3399_s0 }
   0x2   :  { %3443 = sst [smem:[#allocation36_spill]] %s3400_s1 }
   0x3   :  { %3444 = sst [smem:[#allocation37_spill]] %s3401_s2 }
   0x4   :  { %3445 = sst [smem:[#allocation38_spill]] %s3402_s3 }
   0x5   :  { %3446 = sst [smem:[#allocation39_spill]] %s3403_s4 }
   0x6   :  { %3447 = sst [smem:[#allocation40_spill]] %s3404_s5 }
   0x7   :  { %3448 = sst [smem:[#allocation41_spill]] %s3405_s6 }
   0x8   :  { %3449 = sst [smem:[#allocation42_spill]] %s3406_s7 }
   0x9   :  { %3450 = sst [smem:[#allocation43_spill]] %s3407_s8 }
   0xa   :  { %3451 = sst [smem:[#allocation44_spill]] %s3408_s9 }
   0xb   :  { %3452 = sst [smem:[#allocation45_spill]] %s3409_s10 }
   0xc   :  { %3453 = sst [smem:[#allocation46_spill]] %s3411_s12 }
   0xd   :  { %3454 = sst [smem:[#allocation47_spill]] %s3419_s20 }
   0xe   :  { %3455 = sst [smem:[#allocation48_spill]] %s3422_s23 }
   0xf   :  { %3456 = sst [smem:[#allocation49_spill]] %s3423_s24 }
  0x10   :  { %29 = vsyncpa [#allocation3], 0 }
  0x11   :  { %30 = vsyncpa [#allocation6], 0 }
  0x12   :  { %31 = vsyncpa [#allocation9], 0 }
  0x13   :  { %32 = vsyncpa [#allocation12], 0 }
  0x14   :  { %33 = vsyncpa [#allocation15], 0 }
  0x15   :  { %34 = vsyncpa [#allocation18], 0 }
  0x16   :  { %35 = vsyncpa [#allocation4], 0 }
  0x17   :  { %37 = vsyncpa [#allocation4 + $0x1], 0  ;;  %s2965_s5 = smov 0   ;;  %s2967_s26 = smov 0  }
  0x18   :  { %s2969_s27 = smov 0   ;;  %s2971_s28 = smov 0  }
  0x19 LB: > { %3457 = sst [smem:[#allocation28_spill]] %s2798_s5  ;;  %s2986_s6 = sadd.s32 4294967295, %s2810_s28   ;;  %s2810_s28 = sphi %s2971_s28, %s3492_s28   ;;  %s2806_s27 = sphi %s2969_s27, %s3494_s27   ;;  %s2802_s26 = sphi %s2967_s26, %s3496_s26   ;;  %s2798_s5 = sphi %s2965_s5, %s3495_s5  }
  0x1a   : > { %3458 = sst [smem:[#allocation29_spill]] %s2806_s27  ;;  %s2093_s2 = sadd.s32 4294967294, %s2810_s28  }
  0x1b   : > { %3459 = sst [smem:[#allocation30_spill]] %s2810_s28  ;;  %s2990_s29 = sadd.s32 1, %s2810_s28  }
  0x1c   : > { %3460 = sst [smem:[#allocation31_spill]] %s2990_s29  ;;  %s564_s0 = sadd.s32 1, %s2806_s27 }
  0x1d   : > { %s561_s7 = ssub.s32 %s2810_s28, %s2990_s29  ;;  %p574_p0 = scmp.ne.s32.totalorder %s2806_s27, %s2802_s26 }
  0x1e   : > { %p562_p1 = scmp.eq.s32.totalorder %s561_s7, 0  ;;  %p575_p2 = scmp.eq.s32.totalorder %s2986_s6, 1 }
  0x1f   : > { %p580_p3 = scmp.ne.s32.totalorder %s2802_s26, %s2798_s5  ;;  %p581_p4 = scmp.eq.s32.totalorder %s2093_s2, 1 }
  0x20   : > { %s3001_s30 = scalar_select %p562_p1, %s2806_s27, %s564_s0  }
  0x21   : > { %p3003_p5 = por %p575_p2, %p574_p0  ;;  %p3007_p6 = por %p581_p4, %p580_p3 }
  0x22   : > { %3461 = sst [smem:[#allocation32_spill]] %s3001_s30  ;;  %p2094_p7 = scmp.ge.s32.totalorder %s2810_s28, 1 }
  0x23   : > { %s3462_s3 = scalar_select %p3003_p5, 1, 0 }
  0x24   : > { %s3464_s25 = scalar_select %p3007_p6, 1, 0 }
  0x25   : > { %3463 = sst [smem:[#allocation33_spill]] %s3462_s3  ;;  %p588_p8 = scmp.lt.s32.totalorder %s2810_s28, 3 }
  0x26   : > { %3465 = sst [smem:[#allocation34_spill]] %s3464_s25  ;;  %p2253_p9 = scmp.eq.s32.totalorder %s2986_s6, 0 }
  0x27   : > { %p3014_p10 = pnand %p2094_p7, %p588_p8  ;;  %s3467_s2 = sld [smem:[#allocation42_spill]] }
  0x28   : > { %s2812_s7 = smov [#allocation5]   ;;  %s3468_s10 = sld [smem:[#allocation45_spill]] }
  0x29   : > { %p2215_p11 = pneg %p3014_p10  ;;  %s626_s30 = sshll.u32 %s2812_s7, 4  ;;  %s627_s30 = int_to_ptr.vmem [resolvable:$true] %s626_s30 }
  0x2a   : > { %s2813_s4 = smov [#allocation8]   ;;  %s2815_s7 = smov 8  }
  0x2b   : > { %p3028_p12 = pnand %p2253_p9, %p2215_p11  ;;  %s652_s1 = sshll.u32 %s2813_s4, 4  ;;  %s653_s1 = int_to_ptr.vmem [resolvable:$true] %s652_s1 }
  0x2c   : > { %s3470_s12 = sld [smem:[#allocation46_spill]]  ;;  %s2816_s28 = smov [#allocation11]  }
  0x2d   : > { %s624_s0 = sshll.u32 %s3467_s2, 4  ;;  %s2814_s2 = smov 128   ;;  %s625_s0 = int_to_ptr.hbm [resolvable:$true] %s624_s0 }
  0x2e   : > { %s650_s25 = sshll.u32 %s3468_s10, 4  ;;  %s678_s23 = sshll.u32 %s2816_s28, 4  ;;  %s651_s25 = int_to_ptr.hbm [resolvable:$true] %s650_s25  ;;  %s679_s23 = int_to_ptr.vmem [resolvable:$true] %s678_s23 }
  0x2f   : > { %2221 = dma.hbm_to_vmem [thread:$0]  (!%p3028_p12), %s625_s0, 16, %s627_s30, [#allocation6]  }
  0x30   : > { %2227 = dma.hbm_to_vmem [thread:$0]  (!%p3028_p12), %s651_s25, 512, %s653_s1, [#allocation9], %s2814_s2, %s2814_s2, %s2815_s7  }
  0x31   : > { %s706_s4 = sshll.u32 %s3414_s15, 4  ;;  %s2817_s30 = smov [#allocation14]   ;;  %s707_s4 = int_to_ptr.hbm [resolvable:$true] %s706_s4 }
  0x32   : > { %s676_s10 = sshll.u32 %s3470_s12, 4  ;;  %s708_s0 = sshll.u32 %s2817_s30, 4  ;;  %s677_s10 = int_to_ptr.hbm [resolvable:$true] %s676_s10  ;;  %s709_s0 = int_to_ptr.vmem [resolvable:$true] %s708_s0 }
  0x33   : > { %2233 = dma.hbm_to_vmem [thread:$0]  (!%p3028_p12), %s677_s10, 512, %s679_s23, [#allocation12], %s2814_s2, %s2814_s2, %s2815_s7  }
  0x34   : > { %s736_s1 = sshll.u32 %s3418_s19, 4  ;;  %s3471_s29 = sld [smem:[#allocation41_spill]]  ;;  %s737_s1 = int_to_ptr.hbm [resolvable:$true] %s736_s1 }
  0x35   : > { %2239 = dma.hbm_to_vmem [thread:$0]  (!%p3028_p12), %s707_s4, 16, %s709_s0, [#allocation15]  }
  0x36   : > { %s2818_s24 = smov [#allocation17]   ;;  %s2819_s10 = smov [#allocation2]  }
  0x37   : > { %s738_s3 = sshll.u32 %s2818_s24, 4  ;;  %s614_s23 = sshll.u32 %s2819_s10, 4  ;;  %s739_s3 = int_to_ptr.vmem [resolvable:$true] %s738_s3  ;;  %s615_s23 = int_to_ptr.vmem [resolvable:$true] %s614_s23 }
  0x38   : > { %2245 = dma.hbm_to_vmem [thread:$0]  (!%p3028_p12), %s737_s1, 16, %s739_s3, [#allocation18]  }
  0x39   : > { %s3472_s9 = sld [smem:[#allocation44_spill]]  ;;  %s665_s0 = sshll.u32 %s3410_s11, 4  ;;  %s666_s0 = int_to_ptr.hbm [resolvable:$true] %s665_s0 }
  0x3a   : > { %s612_s12 = sshll.u32 %s3471_s29, 4  ;;  %s2820_s25 = smov [#allocation7]   ;;  %s613_s12 = int_to_ptr.hbm [resolvable:$true] %s612_s12 }
  0x3b   : > { %2218 = dma.hbm_to_vmem [thread:$0]  (!%p3028_p12), %s613_s12, 16, %s615_s23, [#allocation3]  }
  0x3c   : > { %s641_s28 = sshll.u32 %s2820_s25, 4  ;;  %s2821_s1 = smov [#allocation10]   ;;  %s642_s28 = int_to_ptr.vmem [resolvable:$true] %s641_s28 }
  0x3d   : > { %s667_s27 = sshll.u32 %s2821_s1, 4  ;;  %s691_s3 = sshll.u32 %s3412_s13, 4  ;;  %s668_s27 = int_to_ptr.vmem [resolvable:$true] %s667_s27  ;;  %s692_s3 = int_to_ptr.hbm [resolvable:$true] %s691_s3 }
  0x3e   : > { %2230 = dma.hbm_to_vmem [thread:$0]  (!%p3028_p12), %s666_s0, 16, %s668_s27, [#allocation9]  }
  0x3f   : > { %s639_s7 = sshll.u32 %s3472_s9, 4  ;;  %s721_s23 = sshll.u32 %s3416_s17, 4  ;;  %s640_s7 = int_to_ptr.hbm [resolvable:$true] %s639_s7  ;;  %s722_s23 = int_to_ptr.hbm [resolvable:$true] %s721_s23 }
  0x40   : > { %2224 = dma.hbm_to_vmem [thread:$0]  (!%p3028_p12), %s640_s7, 16, %s642_s28, [#allocation6]  }
  0x41   : > { %s2822_s20 = smov [#allocation13]   ;;  %s2823_s7 = smov [#allocation16]  }
  0x42   : > { %s693_s2 = sshll.u32 %s2822_s20, 4  ;;  %s723_s4 = sshll.u32 %s2823_s7, 4  ;;  %s694_s2 = int_to_ptr.vmem [resolvable:$true] %s693_s2  ;;  %s724_s4 = int_to_ptr.vmem [resolvable:$true] %s723_s4 }
  0x43   : > { %2236 = dma.hbm_to_vmem [thread:$0]  (!%p3028_p12), %s692_s3, 16, %s694_s2, [#allocation12]  }
  0x44   : > { %s751_s28 = sshll.u32 %s3420_s21, 4  ;;  %s2824_s0 = smov [#allocation19]   ;;  %s752_s28 = int_to_ptr.hbm [resolvable:$true] %s751_s28 }
  0x45   : > { %2242 = dma.hbm_to_vmem [thread:$0]  (!%p3028_p12), %s722_s23, 16, %s724_s4, [#allocation15]  }
  0x46   : > { %s753_s1 = sshll.u32 %s2824_s0, 4  ;;  %787 = sbr.rel (%p3014_p10) target bundleno = 3691 (0xe6b), region = 116  ;;  %s754_s1 = int_to_ptr.vmem [resolvable:$true] %s753_s1 }
  0x47   : > { %2248 = dma.hbm_to_vmem [thread:$0]  (!%p3028_p12), %s752_s28, 16, %s754_s1, [#allocation18]  }
  0x4b   : > { %2769 = dma.done.wait (%p2253_p9), [#allocation3], 16  }
  0x4c   : > { %2771 = vsyncadd (%p2253_p9), [#allocation3], 4294967280 }
  0x4d   : > { %2773 = dma.done.wait (%p2253_p9), [#allocation6], 32  }
  0x4e   : > { %2775 = vsyncadd (%p2253_p9), [#allocation6], 4294967264 }
  0x4f   : > { %2777 = dma.done.wait (%p2253_p9), [#allocation9], 528  }
  0x50   : > { %2779 = vsyncadd (%p2253_p9), [#allocation9], 4294966768 }
  0x51   : > { %2781 = dma.done.wait (%p2253_p9), [#allocation12], 528  }
  0x52   : > { %2783 = vsyncadd (%p2253_p9), [#allocation12], 4294966768 }
  0x53   : > { %2785 = dma.done.wait (%p2253_p9), [#allocation15], 32  }
  0x54   : > { %2787 = vsyncadd (%p2253_p9), [#allocation15], 4294967264 }
  0x55   : > { %2789 = dma.done.wait (%p2253_p9), [#allocation18], 32  }
  0x56   : > { %2791 = vsyncadd (%p2253_p9), [#allocation18], 4294967264  ;;  %p908_p13 = scmp.lt.s32.totalorder %s2986_s6, 1  ;;  %s3473_s24 = sld [smem:[#allocation37_spill]]  ;;  %vm928_vm0 = vcmask 261120   ;;  %vm961_vm1 = vcmask 64512  }
  0x57   : > { %s3474_s20 = sld [smem:[#allocation35_spill]]  ;;  %s2826_s27 = smov 112   ;;  %vm1232_vm2 = vcmask 130048   ;;  %vm1234_vm3 = vcmask 195584   ;;  %vm1425_vm8 = vcmask 1041408   ;;  %vm1405_vm9 = vcmask 80896  }
  0x58   : > { %s3109_s5 = scalar_select %p908_p13, %s2986_s6, 1  ;;  %vm1810_vm14 = vcmask 523264  }
  0x59   : > { %s3475_s1 = sld [smem:[#allocation38_spill]]  ;;  %s2827_s29 = smov 120  }
  0x5a   : > { %s2120_s8 = sshll.u32 %s3109_s5, 3  ;;  %s2828_s3 = smov 88  }
  0x5b   : > { %s2829_s12 = smov 72   ;;  %s3436_s10 = smov 80  }
  0x5c   : > { %v923_v0 = vld [vmem:[%s3473_s24 + $0x18] sm:$0xff]  ;;  %v922_v1 = vld [vmem:[%s3473_s24 + $0x10] sm:$0xff]  ;;  %v921_v2 = vld [vmem:[%s3473_s24 + $0x8] sm:$0xff]  ;;  %s2831_s23 = smov 104   ;;  %s2834_s7 = smov 56  }
  0x5d   : > { %s911_s2 = scalar_lea.vmem %s3474_s20, %s2120_s8  ;;  %944 = vmatpush.msra.mxu0 %v923_v0  ;;  %v920_v3 = vld [vmem:[%s3473_s24] sm:$0xff]  ;;  %s2825_s8 = smov 96  }
  0x5e   : > { %v3127_v4 = vld [vmem:[%s911_s2] sm:$0xff]  ;;  %s2832_s20 = smov 64   ;;  %s2833_s2 = smov 40  }
  0x5f   : > { %945 = vmatpush.msra.mxu0 %v922_v1  ;;  %v2336_v5 = vld [vmem:[%s3475_s1] ss:$0 sm:$0xff]  ;;  %s2835_s4 = smov 48   ;;  %s3438_s30 = smov 16  }
  0x60   : > { %s3439_s25 = smov 8   ;;  %s3440_s28 = smov 24  }
  0x61   : > { %946 = vmatpush.msra.mxu0 %v921_v2  ;;  %s3477_s1 = sld [smem:[#allocation40_spill]] }
  0x62   : > { %s3479_s0 = sld [smem:[#allocation43_spill]] }
  0x63   : > { %947 = vmatpush.msra.mxu0 %v920_v3 }
  0x64   : > { %2123 = vmatmul.msk.f32.vlgmr.msra.gmra.mxu0 %vm928_vm0, %v3127_v4 }
  0xe1   : > { %v949_v6 = vpop.f32.mrf.mxu0 }
  0xe2   : > { %v3134_v7 = vadd.f32 %v2336_v5, %v949_v6 }
  0xe4   : > { %959 = vrot.lane.b32.xlu0 %v3134_v7, %s2825_s8  ;;  %v952_v8 = vmul.f32 0.35355338, %v3134_v7 }
  0xe6   : > { %1089 = vrot.lane.b32.xlu2 %v952_v8, %s2826_s27  ;;  %1024 = vrot.lane.b32.xlu1 %v952_v8, %s2827_s29 }
  0xec   : > { %1026 = vrot.lane.b32.xlu0 %v3134_v7, %s2828_s3 }
  0xee   : > { %1156 = vrot.lane.b32.xlu2 %v3134_v7, %s2829_s12  ;;  %1091 = vrot.lane.b32.xlu1 %v3134_v7, %s3436_s10 }
  0xf4   : > { %1154 = vrot.lane.b32.xlu0 %v952_v8, %s2831_s23 }
 0x140   : > { %v1090_v10 = vpop.permute.xlu2 %1089 }
 0x148   : > { %v1157_v14 = vpop.permute.xlu2 %1156 }
 0x156   : > { %v960_v9 = vpop.permute.xlu0 %959 }
 0x157   : > { %2124 = vmatpush.xpose.msk.msra.mxu1 %vm961_vm1, %v960_v9 }
 0x158   : > { %v1025_v11 = vpop.permute.xlu1 %1024 }
 0x15a   : > { %2125 = vmatmul.msk.f32.vlgmr.msra.gmra.mxu1 %vm961_vm1, %v952_v8 }
 0x15e   : > { %v1027_v12 = vpop.permute.xlu0 %1026 }
 0x15f   : > { %2127 = vmatpush.xpose.msk.msra.mxu3 %vm961_vm1, %v1027_v12 }
 0x160   : > { %v1092_v13 = vpop.permute.xlu1 %1091 }
 0x161   : > { %2130 = vmatpush.xpose.msk.msrb.mxu1 %vm961_vm1, %v1092_v13 }
 0x162   : > { %2128 = vmatmul.msk.f32.vlgmr.msra.gmra.mxu3 %vm961_vm1, %v1025_v11  ;;  %v2337_v11 = vld [vmem:[%s3477_s1] ss:$0 sm:$0xff]  ;;  %s3484_s1 = sld [smem:[#allocation47_spill]] }
 0x164   : > { %2131 = vmatmul.msk.f32.vlgmr.msrb.gmra.mxu1 %vm961_vm1, %v1090_v10 }
 0x165   : > { %2133 = vmatpush.xpose.msk.msra.mxu1 %vm961_vm1, %v1157_v14 }
 0x166   : > { %v1155_v15 = vpop.permute.xlu0 %1154 }
 0x16c   : > { %2134 = vmatmul.msk.f32.vlgmr.msra.gmra.mxu1 %vm961_vm1, %v1155_v15 }
 0x1d7   : > { %v984_v16 = vpop.f32.mrf.mxu1 }
 0x1d8   : > { %v987_v17 = vsel %vm961_vm1, %v984_v16, -inf }
 0x1d9   : > { %988 = vmax.xlane.f32.xlu1 %v987_v17  ;;  %v1337_v17 = vld [vmem:[#allocation8 + $0x18] sm:$0xff] }
 0x1da   : > { %1360 = vmatpush.msrb.mxu0 %v1337_v17 }
 0x1e1   : > { %v1114_v18 = vpop.f32.mrf.mxu1 }
 0x1e2   : > { %v1117_v19 = vsel %vm961_vm1, %v1114_v18, -inf }
 0x1e3   : > { %1118 = vmax.xlane.f32.xlu0 %v1117_v19  ;;  %v1335_v19 = vld [vmem:[#allocation8 + $0x8] sm:$0xff] }
 0x1e5   : > { %v1049_v20 = vpop.f32.mrf.mxu3 }
 0x1e6   : > { %v1052_v21 = vsel %vm961_vm1, %v1049_v20, -inf }
 0x1e7   : > { %1053 = vmax.xlane.f32.xlu2 %v1052_v21  ;;  %v1334_v21 = vld [vmem:[#allocation8] sm:$0xff] }
 0x1e9   : > { %v1179_v22 = vpop.f32.mrf.mxu1 }
 0x1ea   : > { %v1182_v23 = vsel %vm961_vm1, %v1179_v22, -inf }
 0x1ef   : > { %1183 = vmax.xlane.f32.xlu2 %v1182_v23 }
 0x1f7   : > { %998 = vrot.lane.b32.xlu0 %v3134_v7, %s2832_s20  ;;  %s3476_s20 = sld [smem:[#allocation39_spill]] }
 0x1fd   : > { %v956_v0 = vld [vmem:[%s3476_s20 + $0x18] sm:$0xff]  ;;  %v955_v1 = vld [vmem:[%s3476_s20 + $0x10] sm:$0xff]  ;;  %v954_v2 = vld [vmem:[%s3476_s20 + $0x8] sm:$0xff] }
 0x1fe   : > { %1254 = vmatpush.msrb.mxu1 %v956_v0  ;;  %v953_v3 = vld [vmem:[%s3476_s20] sm:$0xff] }
 0x1ff   : > { %1193 = vrot.lane.b32.xlu0 %v3134_v7, %s2833_s2  ;;  %s2165_s2 = sshll.u32 %s2986_s6, 3 }
 0x200   : > { %1255 = vmatpush.msrb.mxu1 %v955_v1 }
 0x202   : > { %1256 = vmatpush.msrb.mxu1 %v954_v2 }
 0x204   : > { %1257 = vmatpush.msrb.mxu1 %v953_v3 }
 0x24c   : > { %v989_v24 = vpop.xlane.xlu1 %988 }
 0x24d   : > { %v990_v25 = vsub.f32 %v984_v16, %v989_v24  ;;  %v2839_v16 = vmov 32.0  }
 0x24f   : > { %v991_v26 = vmul.f32 1.442695, %v990_v25 }
 0x251   : > { %2350 = vpow2.f32 %v991_v26 }
 0x256   : > { %v1119_v27 = vpop.xlane.xlu0 %1118 }
 0x257   : > { %v2351_v28 = vpop.eup %2350  ;;  %v1120_v29 = vsub.f32 %v1114_v18, %v1119_v27  ;;  %v1336_v18 = vld [vmem:[#allocation8 + $0x10] sm:$0xff] }
 0x258   : > { %v993_v30 = vsel %vm961_vm1, %v2351_v28, 0.0  ;;  %1361 = vmatpush.msrb.mxu0 %v1336_v18 }
 0x259   : > { %v1121_v31 = vmul.f32 1.442695, %v1120_v29  ;;  %994 = vadd.xlane.f32.xlu1 %v993_v30 }
 0x25a   : > { %v1054_v32 = vpop.xlane.xlu2 %1053  ;;  %1362 = vmatpush.msrb.mxu0 %v1335_v19 }
 0x25b   : > { %2352 = vpow2.f32 %v1121_v31  ;;  %v1055_v33 = vsub.f32 %v1049_v20, %v1054_v32 }
 0x25c   : > { %1363 = vmatpush.msrb.mxu0 %v1334_v21 }
 0x25d   : > { %v1056_v34 = vmul.f32 1.442695, %v1055_v33  ;;  %v1305_v33 = vld [vmem:[%s3479_s0 + $0x18] sm:$0xff] }
 0x25f   : > { %2354 = vpow2.f32 %v1056_v34  ;;  %v1304_v34 = vld [vmem:[%s3479_s0 + $0x10] sm:$0xff] }
 0x261   : > { %v2353_v35 = vpop.eup %2352 }
 0x262   : > { %v1184_v36 = vpop.xlane.xlu2 %1183  ;;  %v1123_v37 = vsel %vm961_vm1, %v2353_v35, 0.0 }
 0x263   : > { %v1185_v38 = vsub.f32 %v1179_v22, %v1184_v36  ;;  %1124 = vadd.xlane.f32.xlu1 %v1123_v37  ;;  %v1302_v36 = vld [vmem:[%s3479_s0] sm:$0xff] }
 0x265   : > { %v2355_v39 = vpop.eup %2354  ;;  %v1186_v40 = vmul.f32 1.442695, %v1185_v38 }
 0x266   : > { %v1058_v41 = vsel %vm961_vm1, %v2355_v39, 0.0 }
 0x267   : > { %2356 = vpow2.f32 %v1186_v40  ;;  %1059 = vadd.xlane.f32.xlu2 %v1058_v41 }
 0x269   : > { %v999_v42 = vpop.permute.xlu0 %998 }
 0x26a   : > { %1019 = vmatpush.msra.mxu2 %v999_v42 }
 0x26d   : > { %v2357_v43 = vpop.eup %2356 }
 0x26e   : > { %v1188_v44 = vsel %vm961_vm1, %v2357_v43, 0.0 }
 0x26f   : > { %1189 = vadd.xlane.f32.xlu2 %v1188_v44 }
 0x271   : > { %v1194_v57 = vpop.permute.xlu0 %1193 }
 0x27c   : > { %1063 = vrot.lane.b32.xlu1 %v3134_v7, %s2834_s7  ;;  %s3478_s7 = sld [smem:[#allocation36_spill]] }
 0x287   : > { %1128 = vrot.lane.b32.xlu2 %v3134_v7, %s2835_s4 }
 0x2cc   : > { %v995_v45 = vpop.xlane.xlu1 %994 }
 0x2cd   : > { %2358 = vrcp.f32 %v995_v45 }
 0x2d3   : > { %v2359_v46 = vpop.eup %2358 }
 0x2d4   : > { %v997_v47 = vmul.f32 %v2359_v46, %v2351_v28  ;;  %v2338_v46 = vld [vmem:[#allocation2] ss:$0 sm:$0xff] }
 0x2d6   : > { %2126 = vmatmul.msk.f32.vlgmr.msra.gmra.mxu2 %vm961_vm1, %v997_v47  ;;  %v1125_v49 = vpop.xlane.xlu1 %1124 }
 0x2d7   : > { %2360 = vrcp.f32 %v1125_v49  ;;  %v2339_v49 = vld [vmem:[#allocation5] ss:$0 sm:$0xff] }
 0x2da   : > { %v1060_v48 = vpop.xlane.xlu2 %1059 }
 0x2db   : > { %2362 = vrcp.f32 %v1060_v48 }
 0x2dd   : > { %v2361_v51 = vpop.eup %2360 }
 0x2de   : > { %v1127_v53 = vmul.f32 %v2361_v51, %v2353_v35  ;;  %v1303_v35 = vld [vmem:[%s3479_s0 + $0x8] sm:$0xff] }
 0x2e1   : > { %v2363_v54 = vpop.eup %2362 }
 0x2e2   : > { %v1190_v50 = vpop.xlane.xlu2 %1189  ;;  %v1062_v56 = vmul.f32 %v2363_v54, %v2355_v39 }
 0x2e3   : > { %2364 = vrcp.f32 %v1190_v50 }
 0x2e4   : > { %2366 = vrcp.f32 %v2839_v16 }
 0x2e9   : > { %v2365_v58 = vpop.eup %2364 }
 0x2ea   : > { %v1129_v52 = vpop.permute.xlu2 %1128  ;;  %v1192_v59 = vmul.f32 %v2365_v58, %v2357_v43  ;;  %v2367_v20 = vpop.eup %2366 }
 0x2eb   : > { %1149 = vmatpush.msrb.mxu3 %v1129_v52  ;;  %vm1273_vm4 = vweird.f32 %v2367_v20 }
 0x2ec   : > { %2132 = vmatmul.msk.f32.vlgmr.msrb.gmra.mxu3 %vm961_vm1, %v1127_v53  ;;  %v2340_v53 = vld [vmem:[#allocation10] ss:$0 sm:$0xff] }
 0x2ed   : > { %1325 = vmatpush.msra.mxu3 %v1305_v33 }
 0x2ee   : > { %v1064_v55 = vpop.permute.xlu1 %1063 }
 0x2ef   : > { %1084 = vmatpush.msrb.mxu2 %v1064_v55  ;;  %1326 = vmatpush.msra.mxu3 %v1304_v34 }
 0x2f0   : > { %2129 = vmatmul.msk.f32.vlgmr.msrb.gmra.mxu2 %vm961_vm1, %v1062_v56 }
 0x2f1   : > { %1214 = vmatpush.msra.mxu2 %v1194_v57  ;;  %1327 = vmatpush.msra.mxu3 %v1303_v35  ;;  %v2341_v57 = vld [vmem:[#allocation7] ss:$0 sm:$0xff] }
 0x2f3   : > { %1328 = vmatpush.msra.mxu3 %v1302_v36 }
 0x2f8   : > { %2135 = vmatmul.msk.f32.vlgmr.msra.gmra.mxu2 %vm961_vm1, %v1192_v59 }
 0x359   : > { %v1021_v60 = vpop.f32.mrf.mxu2 }
 0x36f   : > { %v1151_v61 = vpop.f32.mrf.mxu3 }
 0x370   : > { %1224 = vrot.lane.b32.xlu1 %v1151_v61, %s3438_s30  ;;  %s2168_s30 = sshll.u32 %s3109_s5, 4 }
 0x371   : > { %s916_s4 = scalar_lea.vmem %s3478_s7, %s2168_s30  ;;  %s905_s30 = sand.u32 1, %s2802_s26  }
 0x372   : > { %v918_v22 = vld [vmem:[%s916_s4] sm:$0xff]  ;;  %v919_v32 = vld [vmem:[%s916_s4 + $0x8] sm:$0x3]  ;;  %s3488_s4 = sld [smem:[#allocation48_spill]]  ;;  %s1900_s0 = scalar_lea.sflag [#allocation4], %s905_s30 }
 0x373   : > { %v1086_v62 = vpop.f32.mrf.mxu2  ;;  %2138 = vmatmul.msk.f32.vlgmr.msrb.gmra.mxu0 %vm928_vm0, %v918_v22 }
 0x374   : > { %1220 = vrot.lane.b32.xlu0 %v1086_v62, %s3439_s25  ;;  %s2119_s25 = sshll.u32 %s905_s30, 3 }
 0x375   : > { %s907_s5 = scalar_lea.vmem [#allocation20], %s2119_s25 }
 0x376   : > { %s1912_s10 = sshll.u32 %s907_s5, 4  ;;  %s1913_s10 = int_to_ptr.vmem [resolvable:$true] %s1912_s10 }
 0x37b   : > { %v1216_v63 = vpop.f32.mrf.mxu2  ;;  %2139 = vmatmul.msk.f32.gmra.mxu0 %vm928_vm0, %v919_v32 }
 0x37c   : > { %1228 = vrot.lane.b32.xlu0 %v1216_v63, %s3440_s28 }
 0x3e2   : > { %v1225_v7 = vpop.permute.xlu1 %1224 }
 0x3e6   : > { %v1221_v5 = vpop.permute.xlu0 %1220 }
 0x3e7   : > { %v1231_v6 = vsel %vm961_vm1, %v1021_v60, %v1221_v5 }
 0x3e8   : > { %v1233_v9 = vsel %vm1232_vm2, %v1231_v6, %v1225_v7 }
 0x3ee   : > { %v1229_v8 = vpop.permute.xlu0 %1228 }
 0x3ef   : > { %v1235_v10 = vsel %vm1234_vm3, %v1233_v9, %v1229_v8 }
 0x3f0   : > { %2136 = vmatmul.msk.f32.vlgmr.msrb.gmra.mxu1 %vm928_vm0, %v1235_v10  ;;  %v1365_v52 = vpop.f32.mrf.mxu0 }
 0x3f1   : > { %v3225_v56 = vadd.f32 %v2340_v53, %v1365_v52 }
 0x3f8   : > { %v1368_v54 = vpop.f32.mrf.mxu0 }
 0x3f9   : > { %v3223_v55 = vadd.f32 %v2340_v53, %v1368_v54 }
 0x3fb   : > { %2140 = vmatpush.xpose.msk.msrb.mxu2 %vm961_vm1, %v3223_v55 }
 0x3ff   : > { %2141 = vmatpush.xpose.msk.msrb.mxu2 %vm961_vm1, %v3225_v56 }
 0x46d   : > { %v1259_v12 = vpop.f32.mrf.mxu1 }
 0x46e   : > { %v1260_v13 = vadd.f32 %v2337_v11, %v1259_v12 }
 0x470   : > { %v1262_v14 = vadd.f32 %v1260_v13, %v3127_v4  ;;  %v1269_v4 = vmul.f32 32.0, %v2367_v20 }
 0x472   : > { %v1265_v15 = vsel %vm928_vm0, %v1262_v14, 0.0  ;;  %v1270_v23 = vsub.f32 1.0, %v1269_v4 }
 0x473   : > { %1266 = vadd.xlane.f32.xlu2 %v1265_v15 }
 0x474   : > { %v1271_v24 = vmul.f32 %v2367_v20, %v1270_v23 }
 0x476   : > { %v1272_v25 = vadd.f32 %v2367_v20, %v1271_v24 }
 0x478   : > { %v3201_v26 = vsel %vm1273_vm4, %v2367_v20, %v1272_v25 }
 0x48b   : > { %1452 = vrot.lane.b32.xlu2 %v3223_v55, %s2827_s29 }
 0x493   : > { %1419 = vrot.lane.b32.xlu2 %v3223_v55, %s2825_s8 }
 0x49b   : > { %1525 = vrot.lane.b32.xlu2 %v3223_v55, %s2826_s27 }
 0x4a3   : > { %1596 = vrot.lane.b32.xlu2 %v3225_v56, %s2831_s23 }
 0x4e6   : > { %v1267_v27 = vpop.xlane.xlu2 %1266 }
 0x4e7   : > { %v1275_v28 = vmul.f32 %v3201_v26, %v1267_v27 }
 0x4e9   : > { %v1276_v29 = vsub.f32 %v1262_v14, %v1275_v28 }
 0x4eb   : > { %v1277_v30 = vmul.f32 %v1276_v29, %v1276_v29 }
 0x4ed   : > { %v1278_v31 = vsel %vm928_vm0, %v1277_v30, 0.0 }
 0x4ee   : > { %1279 = vadd.xlane.f32.xlu1 %v1278_v31  ;;  %v1453_v61 = vpop.permute.xlu2 %1452 }
 0x4ef   : > { %2145 = vmatpush.xpose.msk.msrb.mxu3 %vm961_vm1, %v1453_v61  ;;  %v1373_v61 = vld [vmem:[#allocation11 + $0x10] sm:$0xff] }
 0x4f6   : > { %v1420_v62 = vpop.permute.xlu2 %1419 }
 0x4f7   : > { %2143 = vmatpush.msk.msra.mxu1 %vm1425_vm8, %v1420_v62  ;;  %v1372_v62 = vld [vmem:[#allocation11 + $0x8] sm:$0xff] }
 0x4fe   : > { %v1526_v10 = vpop.permute.xlu2 %1525 }
 0x506   : > { %v1597_v13 = vpop.permute.xlu2 %1596 }
 0x561   : > { %v1280_v37 = vpop.xlane.xlu1 %1279 }
 0x562   : > { %v1281_v38 = vmul.f32 %v1280_v37, %v3201_v26 }
 0x564   : > { %v1282_v39 = vadd.f32 1e-05, %v1281_v38 }
 0x566   : > { %2368 = vrsqrt.f32 %v1282_v39  ;;  %vm1289_vm6 = vweird.f32 %v1282_v39 }
 0x56c   : > { %v2369_v40 = vpop.eup %2368 }
 0x56d   : > { %v1284_v41 = vmul.f32 %v2369_v40, %v1282_v39  ;;  %vm1290_vm5 = vweird.f32 %v2369_v40 }
 0x56e   : > { %vm1291_vm7 = vmor %vm1289_vm6, %vm1290_vm5 }
 0x56f   : > { %v1285_v42 = vmul.f32 %v2369_v40, %v1284_v41 }
 0x571   : > { %v1286_v43 = vmul.f32 0.5, %v1285_v42 }
 0x573   : > { %v1287_v44 = vsub.f32 1.5, %v1286_v43 }
 0x575   : > { %v1288_v45 = vmul.f32 %v2369_v40, %v1287_v44 }
 0x577   : > { %v1292_v47 = vsel %vm1291_vm7, %v2369_v40, %v1288_v45 }
 0x578   : > { %v1293_v48 = vmul.f32 %v1292_v47, %v1276_v29 }
 0x57a   : > { %v1297_v50 = vmul.f32 %v2338_v46, %v1293_v48 }
 0x57c   : > { %v3219_v51 = vadd.f32 %v2339_v49, %v1297_v50 }
 0x57e   : > { %2137 = vmatmul.msk.f32.vlgmr.msra.gmra.mxu3 %vm928_vm0, %v3219_v51 }
 0x601   : > { %v1330_v58 = vpop.f32.mrf.mxu3 }
 0x602   : > { %v1331_v59 = vadd.f32 %v2341_v57, %v1330_v58 }
 0x604   : > { %v1333_v60 = vmul.f32 0.35355338, %v1331_v59 }
 0x606   : > { %1448 = vrot.lane.b32.xlu1 %v1333_v60, %s2827_s29  ;;  %2142 = vmatmul.msk.f32.vlgmr.msrb.gmra.mxu2 %vm961_vm1, %v1333_v60 }
 0x60e   : > { %1523 = vrot.lane.b32.xlu1 %v3225_v56, %s2826_s27 }
 0x678   : > { %v1449_v8 = vpop.permute.xlu1 %1448 }
 0x680   : > { %v1524_v11 = vpop.permute.xlu1 %1523 }
 0x689   : > { %v1402_v63 = vpop.f32.mrf.mxu2 }
 0x68a   : > { %v1406_v0 = vsel %vm1405_vm9, %v1402_v63, -inf }
 0x68b   : > { %1407 = vmax.xlane.f32.xlu0 %v1406_v0 }
 0x69f   : > { %1450 = vrot.lane.b32.xlu0 %v3225_v56, %s2827_s29  ;;  %s3482_s29 = smov 16  }
 0x6a7   : > { %1417 = vrot.lane.b32.xlu0 %v3225_v56, %s2825_s8  ;;  %s3480_s8 = smov 80  }
 0x6af   : > { %1598 = vrot.lane.b32.xlu0 %v3223_v55, %s2831_s23 }
 0x6b7   : > { %1521 = vrot.lane.b32.xlu0 %v1333_v60, %s2826_s27  ;;  %s3481_s27 = smov 8  }
 0x6fe   : > { %v1408_v1 = vpop.xlane.xlu0 %1407 }
 0x6ff   : > { %v1409_v2 = vsub.f32 %v1402_v63, %v1408_v1  ;;  %v1371_v63 = vld [vmem:[#allocation11] sm:$0xff] }
 0x701   : > { %v1410_v3 = vmul.f32 1.442695, %v1409_v2 }
 0x703   : > { %2370 = vpow2.f32 %v1410_v3 }
 0x709   : > { %v2371_v5 = vpop.eup %2370 }
 0x70a   : > { %v1412_v6 = vsel %vm1405_vm9, %v2371_v5, 0.0 }
 0x70b   : > { %1413 = vadd.xlane.f32.xlu1 %v1412_v6 }
 0x711   : > { %v1451_v7 = vpop.permute.xlu0 %1450 }
 0x712   : > { %2146 = vmatpush.xpose.msk.msrb.mxu3 %vm961_vm1, %v1451_v7  ;;  %v2342_v7 = vld [vmem:[#allocation13] ss:$0 sm:$0xff] }
 0x715   : > { %2147 = vmatmul.msk.f32.vlgmr.msrb.gmra.mxu3 %vm961_vm1, %v1449_v8 }
 0x719   : > { %v1418_v9 = vpop.permute.xlu0 %1417 }
 0x71a   : > { %1443 = vmatpush.msra.mxu1 %v1418_v9 }
 0x71c   : > { %2150 = vmatpush.xpose.msk.msrb.mxu1 %vm961_vm1, %v1526_v10 }
 0x720   : > { %2151 = vmatpush.xpose.msk.msrb.mxu1 %vm961_vm1, %v1524_v11 }
 0x721   : > { %v1599_v12 = vpop.permute.xlu0 %1598 }
 0x722   : > { %2155 = vmatpush.xpose.msk.msra.mxu0 %vm961_vm1, %v1599_v12 }
 0x724   : > { %1594 = vrot.lane.b32.xlu1 %v1333_v60, %s2831_s23  ;;  %v1374_v60 = vld [vmem:[#allocation11 + $0x18] sm:$0xff] }
 0x726   : > { %2156 = vmatpush.xpose.msk.msra.mxu0 %vm961_vm1, %v1597_v13 }
 0x729   : > { %v1522_v17 = vpop.permute.xlu0 %1521 }
 0x77e   : > { %v1414_v14 = vpop.xlane.xlu1 %1413 }
 0x77f   : > { %2372 = vrcp.f32 %v1414_v14 }
 0x785   : > { %v2373_v15 = vpop.eup %2372 }
 0x786   : > { %v1416_v16 = vmul.f32 %v2373_v15, %v2371_v5 }
 0x788   : > { %2144 = vmatmul.msk.f32.vlgmr.msra.gmra.mxu1 %vm1405_vm9, %v1416_v16 }
 0x789   : > { %1700 = vmatpush.msra.mxu1 %v1374_v60 }
 0x78b   : > { %1701 = vmatpush.msra.mxu1 %v1373_v61 }
 0x78d   : > { %1702 = vmatpush.msra.mxu1 %v1372_v62 }
 0x78f   : > { %1703 = vmatpush.msra.mxu1 %v1371_v63 }
 0x790   : > { %2152 = vmatmul.msk.f32.vlgmr.msrb.gmra.mxu1 %vm961_vm1, %v1522_v17  ;;  %v1744_v17 = vld [vmem:[%s3415_s16 + $0x18] sm:$0xff] }
 0x796   : > { %v1595_v18 = vpop.permute.xlu1 %1594 }
 0x797   : > { %2157 = vmatmul.msk.f32.vlgmr.msra.gmra.mxu0 %vm961_vm1, %v1595_v18  ;;  %v1742_v18 = vld [vmem:[%s3415_s16 + $0x8] sm:$0xff] }
 0x798   : > { %v1477_v19 = vpop.f32.mrf.mxu3 }
 0x799   : > { %v1480_v20 = vsel %vm1405_vm9, %v1477_v19, -inf }
 0x79a   : > { %1481 = vmax.xlane.f32.xlu2 %v1480_v20 }
 0x805   : > { %v3265_v21 = vpop.f32.mrf.mxu1 }
 0x80d   : > { %v1550_v22 = vpop.f32.mrf.mxu1  ;;  %v1482_v4 = vpop.xlane.xlu2 %1481 }
 0x80e   : > { %v1483_v23 = vsub.f32 %v1477_v19, %v1482_v4  ;;  %v1553_v24 = vsel %vm1405_vm9, %v1550_v22, -inf  ;;  %v1741_v19 = vld [vmem:[%s3415_s16] sm:$0xff] }
 0x80f   : > { %1554 = vmax.xlane.f32.xlu0 %v1553_v24 }
 0x810   : > { %v1484_v25 = vmul.f32 1.442695, %v1483_v23 }
 0x812   : > { %2374 = vpow2.f32 %v1484_v25 }
 0x814   : > { %v1623_v27 = vpop.f32.mrf.mxu0 }
 0x815   : > { %v1626_v28 = vsel %vm1405_vm9, %v1623_v27, -inf }
 0x816   : > { %1627 = vmax.xlane.f32.xlu1 %v1626_v28 }
 0x818   : > { %v2375_v29 = vpop.eup %2374 }
 0x819   : > { %v1486_v30 = vsel %vm1405_vm9, %v2375_v29, 0.0 }
 0x81a   : > { %1487 = vadd.xlane.f32.xlu2 %v1486_v30 }
 0x823   : > { %1493 = vrot.lane.b32.xlu0 %v3223_v55, %s2828_s3 }
 0x82b   : > { %1639 = vrot.lane.b32.xlu0 %v3223_v55, %s2829_s12 }
 0x82f   : > { %1491 = vrot.lane.b32.xlu1 %v3225_v56, %s2828_s3  ;;  %s3483_s3 = smov 24  }
 0x833   : > { %1564 = vrot.lane.b32.xlu0 %v3225_v56, %s3480_s8 }
 0x882   : > { %v1555_v31 = vpop.xlane.xlu0 %1554 }
 0x883   : > { %v1556_v32 = vsub.f32 %v1550_v22, %v1555_v31 }
 0x885   : > { %v1557_v33 = vmul.f32 1.442695, %v1556_v32  ;;  %v2344_v32 = vld [vmem:[#allocation14] ss:$0 sm:$0xff] }
 0x887   : > { %2376 = vpow2.f32 %v1557_v33 }
 0x889   : > { %v1628_v34 = vpop.xlane.xlu1 %1627 }
 0x88a   : > { %v1629_v35 = vsub.f32 %v1623_v27, %v1628_v34 }
 0x88c   : > { %v1630_v36 = vmul.f32 1.442695, %v1629_v35  ;;  %v2345_v35 = vld [vmem:[#allocation16] ss:$0 sm:$0xff] }
 0x88d   : > { %v2377_v37 = vpop.eup %2376  ;;  %v1488_v40 = vpop.xlane.xlu2 %1487 }
 0x88e   : > { %2378 = vpow2.f32 %v1630_v36  ;;  %v1559_v38 = vsel %vm1405_vm9, %v2377_v37, 0.0 }
 0x88f   : > { %1560 = vadd.xlane.f32.xlu1 %v1559_v38  ;;  %2380 = vrcp.f32 %v1488_v40 }
 0x894   : > { %v2379_v39 = vpop.eup %2378 }
 0x895   : > { %v1494_v41 = vpop.permute.xlu0 %1493  ;;  %v1632_v42 = vsel %vm1405_vm9, %v2379_v39, 0.0  ;;  %v2381_v43 = vpop.eup %2380 }
 0x896   : > { %2148 = vmatpush.msk.msra.mxu2 %vm1425_vm8, %v1494_v41  ;;  %1633 = vadd.xlane.f32.xlu2 %v1632_v42  ;;  %v1490_v44 = vmul.f32 %v2381_v43, %v2375_v29  ;;  %v2343_v29 = vld [vmem:[%s3413_s14] ss:$0 sm:$0xff]  ;;  %v1803_v41 = vld [vmem:[%s3417_s18 + $0x28] sm:$0xff] }
 0x897   : > { %v1802_v43 = vld [vmem:[%s3417_s18 + $0x20] sm:$0xff] }
 0x89d   : > { %v1640_v46 = vpop.permute.xlu0 %1639 }
 0x8a1   : > { %v1492_v45 = vpop.permute.xlu1 %1491 }
 0x8a2   : > { %1516 = vmatpush.msra.mxu2 %v1492_v45  ;;  %v1801_v45 = vld [vmem:[%s3417_s18 + $0x18] sm:$0xff] }
 0x8a3   : > { %2149 = vmatmul.msk.f32.vlgmr.msra.gmra.mxu2 %vm1405_vm9, %v1490_v44 }
 0x8a4   : > { %2158 = vmatpush.msk.msrb.mxu2 %vm1425_vm8, %v1640_v46 }
 0x8a5   : > { %v1565_v52 = vpop.permute.xlu0 %1564 }
 0x8a8   : > { %1637 = vrot.lane.b32.xlu1 %v3225_v56, %s2829_s12 }
 0x8ae   : > { %1566 = vrot.lane.b32.xlu2 %v3223_v55, %s3480_s8 }
 0x902   : > { %v1561_v47 = vpop.xlane.xlu1 %1560 }
 0x903   : > { %2382 = vrcp.f32 %v1561_v47  ;;  %v1800_v47 = vld [vmem:[%s3417_s18 + $0x10] sm:$0xff] }
 0x909   : > { %v1634_v48 = vpop.xlane.xlu2 %1633  ;;  %v2383_v49 = vpop.eup %2382 }
 0x90a   : > { %2384 = vrcp.f32 %v1634_v48  ;;  %v1563_v53 = vmul.f32 %v2383_v49, %v2377_v37  ;;  %v1805_v37 = vld [vmem:[%s3417_s18 + $0x38] sm:$0xff]  ;;  %v1799_v48 = vld [vmem:[%s3417_s18 + $0x8] sm:$0xff]  ;;  %v1798_v49 = vld [vmem:[%s3417_s18] sm:$0xff] }
 0x90b   : > { %1822 = vmatpush.msrb.mxu0 %v1805_v37 }
 0x910   : > { %v2385_v54 = vpop.eup %2384 }
 0x911   : > { %v1567_v50 = vpop.permute.xlu2 %1566  ;;  %v1636_v57 = vmul.f32 %v2385_v54, %v2379_v39  ;;  %v1804_v39 = vld [vmem:[%s3417_s18 + $0x30] sm:$0xff] }
 0x912   : > { %2153 = vmatpush.msk.msra.mxu3 %vm1425_vm8, %v1567_v50  ;;  %1823 = vmatpush.msrb.mxu0 %v1804_v39 }
 0x914   : > { %1589 = vmatpush.msra.mxu3 %v1565_v52  ;;  %1824 = vmatpush.msrb.mxu0 %v1803_v41 }
 0x915   : > { %2154 = vmatmul.msk.f32.vlgmr.msra.gmra.mxu3 %vm1405_vm9, %v1563_v53 }
 0x916   : > { %1764 = vmatpush.msrb.mxu3 %v1744_v17  ;;  %1825 = vmatpush.msrb.mxu0 %v1802_v43 }
 0x918   : > { %1826 = vmatpush.msrb.mxu0 %v1801_v45 }
 0x91a   : > { %v1638_v58 = vpop.permute.xlu1 %1637  ;;  %1827 = vmatpush.msrb.mxu0 %v1800_v47 }
 0x91b   : > { %1662 = vmatpush.msrb.mxu2 %v1638_v58 }
 0x91c   : > { %2159 = vmatmul.msk.f32.vlgmr.msrb.gmra.mxu2 %vm1405_vm9, %v1636_v57  ;;  %1828 = vmatpush.msrb.mxu0 %v1799_v48 }
 0x91e   : > { %1829 = vmatpush.msrb.mxu0 %v1798_v49 }
 0x926   : > { %v1518_v55 = vpop.f32.mrf.mxu2 }
 0x927   : > { %1668 = vrot.lane.b32.xlu0 %v1518_v55, %s3481_s27  ;;  %s3485_s27 = sld [smem:[#allocation49_spill]] }
 0x92d   : > { %s1910_s12 = scalar_lea.hbm %s3485_s27, %s2165_s2 }
 0x998   : > { %v1591_v56 = vpop.f32.mrf.mxu3 }
 0x999   : > { %1672 = vrot.lane.b32.xlu2 %v1591_v56, %s3482_s29  ;;  %v1669_v0 = vpop.permute.xlu0 %1668  ;;  %s3486_s29 = smov %s3485_s27 }
 0x99a   : > { %v1679_v2 = vsel %vm961_vm1, %v3265_v21, %v1669_v0  ;;  %s2744_s25 = scalar_lea.hbm %s3486_s29, 16 }
 0x99f   : > { %v1664_v59 = vpop.f32.mrf.mxu2 }
 0x9a0   : > { %1676 = vrot.lane.b32.xlu1 %v1664_v59, %s3483_s3 }
 0x9f3   : > { %v1673_v1 = vpop.permute.xlu2 %1672 }
 0x9f4   : > { %v1680_v3 = vsel %vm1232_vm2, %v1679_v2, %v1673_v1 }
 0xa12   : > { %v1677_v5 = vpop.permute.xlu1 %1676 }
 0xa13   : > { %v1681_v6 = vsel %vm1234_vm3, %v1680_v3, %v1677_v5 }
 0xa14   : > { %2160 = vmatmul.msk.f32.vlgmr.msra.gmra.mxu1 %vm928_vm0, %v1681_v6 }
 0xa91   : > { %v1705_v8 = vpop.f32.mrf.mxu1 }
 0xa92   : > { %v1706_v9 = vadd.f32 %v2342_v7, %v1705_v8 }
 0xa94   : > { %v1708_v10 = vadd.f32 %v1706_v9, %v3219_v51  ;;  %v1743_v51 = vld [vmem:[%s3415_s16 + $0x10] sm:$0xff]  ;;  %v2346_v9 = vld [vmem:[#allocation17] ss:$0 sm:$0xff] }
 0xa95   : > { %1765 = vmatpush.msrb.mxu3 %v1743_v51 }
 0xa96   : > { %v1711_v11 = vsel %vm928_vm0, %v1708_v10, 0.0 }
 0xa97   : > { %1712 = vadd.xlane.f32.xlu0 %v1711_v11  ;;  %1766 = vmatpush.msrb.mxu3 %v1742_v18  ;;  %v1870_v18 = vld [vmem:[%s3421_s22 + $0x18] sm:$0xff] }
 0xa98   : > { %1890 = vmatpush.msra.mxu2 %v1870_v18 }
 0xa99   : > { %1767 = vmatpush.msrb.mxu3 %v1741_v19  ;;  %v1869_v19 = vld [vmem:[%s3421_s22 + $0x10] sm:$0xff] }
 0xa9a   : > { %1891 = vmatpush.msra.mxu2 %v1869_v19 }
 0xb0a   : > { %v1713_v12 = vpop.xlane.xlu0 %1712 }
 0xb0b   : > { %v1714_v13 = vmul.f32 %v1713_v12, %v3201_v26 }
 0xb0d   : > { %v1715_v14 = vsub.f32 %v1708_v10, %v1714_v13 }
 0xb0f   : > { %v1716_v15 = vmul.f32 %v1715_v14, %v1715_v14 }
 0xb11   : > { %v1717_v16 = vsel %vm928_vm0, %v1716_v15, 0.0 }
 0xb12   : > { %1718 = vadd.xlane.f32.xlu2 %v1717_v16 }
 0xb85   : > { %v1719_v20 = vpop.xlane.xlu2 %1718 }
 0xb86   : > { %v1720_v21 = vmul.f32 %v1719_v20, %v3201_v26  ;;  %v1868_v20 = vld [vmem:[%s3421_s22 + $0x8] sm:$0xff] }
 0xb87   : > { %1892 = vmatpush.msra.mxu2 %v1868_v20 }
 0xb88   : > { %v1721_v22 = vadd.f32 1e-05, %v1720_v21  ;;  %v1867_v21 = vld [vmem:[%s3421_s22] sm:$0xff] }
 0xb89   : > { %1893 = vmatpush.msra.mxu2 %v1867_v21 }
 0xb8a   : > { %2386 = vrsqrt.f32 %v1721_v22  ;;  %vm1728_vm11 = vweird.f32 %v1721_v22 }
 0xb90   : > { %v2387_v4 = vpop.eup %2386 }
 0xb91   : > { %v1723_v23 = vmul.f32 %v2387_v4, %v1721_v22  ;;  %vm1729_vm10 = vweird.f32 %v2387_v4 }
 0xb92   : > { %vm1730_vm12 = vmor %vm1728_vm11, %vm1729_vm10 }
 0xb93   : > { %v1724_v24 = vmul.f32 %v2387_v4, %v1723_v23 }
 0xb95   : > { %v1725_v25 = vmul.f32 0.5, %v1724_v24 }
 0xb97   : > { %v1726_v27 = vsub.f32 1.5, %v1725_v25 }
 0xb99   : > { %v1727_v28 = vmul.f32 %v2387_v4, %v1726_v27 }
 0xb9b   : > { %v1731_v30 = vsel %vm1730_vm12, %v2387_v4, %v1727_v28 }
 0xb9c   : > { %v1732_v31 = vmul.f32 %v1731_v30, %v1715_v14 }
 0xb9e   : > { %v1736_v33 = vmul.f32 %v2343_v29, %v1732_v31  ;;  %v2347_v31 = vld [vmem:[%s3484_s1] ss:$0 sm:$0xff]  ;;  %s1914_s1 = sshll.u32 %s1910_s12, 4  ;;  %s1915_s1 = int_to_ptr.hbm [resolvable:$true] %s1914_s1 }
 0xb9f   : > { %s2738_s6 = sshra.s32 %s1915_s1, 4  ;;  %s2739_s6 = int_to_ptr.hbm [resolvable:$true] %s2738_s6 }
 0xba0   : > { %v1740_v34 = vadd.f32 %v2344_v32, %v1736_v33  ;;  %s2740_s9 = scalar_lea.hbm %s2739_s6, 8  ;;  %p2745_p3 = scmp.lt.s32.totalorder %s2739_s6, %s3486_s29 }
 0xba1   : > { %p2741_p0 = scmp.ne.s32.totalorder %s2739_s6, %s2740_s9  ;;  %p2746_p4 = scmp.lt.s32.totalorder %s2744_s25, %s2740_s9 }
 0xba2   : > { %2161 = vmatmul.msk.f32.vlgmr.msrb.gmra.mxu3 %vm928_vm0, %v1740_v34 }
 0xba3   : > { %p2742_p1 = pnand %p2741_p0, %p3003_p5  ;;  %p2747_p7 = por %p2746_p4, %p2745_p3 }
 0xba5   : > { %p2743_p2 = pneg %p2742_p1 }
 0xba7   : > { %p2748_p8 = pnand %p2747_p7, %p2743_p2 }
 0xc25   : > { %v1769_v36 = vpop.f32.mrf.mxu3 }
 0xc26   : > { %v1770_v38 = vadd.f32 %v2345_v35, %v1769_v36  ;;  %v2349_v36 = vld [vmem:[%s3488_s4] ss:$0 sm:$0xff] }
 0xc28   : > { %v1773_v40 = vmul.f32 0.70710677, %v1770_v38  ;;  %v1772_v6 = vmul.f32 0.5, %v1770_v38 }
 0xc2a   : > { %v1774_v42 = vand.u32 2147483647, %v1773_v40  ;;  %vm1793_vm13 = vcmp.ge.f32.partialorder %v1773_v40, 0.0 }
 0xc2c   : > { %v1775_v44 = vmul.f32 0.3275911, %v1774_v42  ;;  %v1787_v52 = vsub.f32 0.0, %v1774_v42 }
 0xc2e   : > { %v1776_v46 = vadd.f32 1.0, %v1775_v44  ;;  %v1788_v57 = vmul.f32 %v1787_v52, %v1774_v42 }
 0xc30   : > { %2388 = vrcp.f32 %v1776_v46  ;;  %v1789_v56 = vmul.f32 1.442695, %v1788_v57 }
 0xc32   : > { %2390 = vpow2.f32 %v1789_v56 }
 0xc36   : > { %v2389_v50 = vpop.eup %2388 }
 0xc37   : > { %v1778_v53 = vmul.f32 1.0614054, %v2389_v50 }
 0xc38   : > { %v2391_v0 = vpop.eup %2390 }
 0xc39   : > { %v1779_v54 = vadd.f32 -1.4531521, %v1778_v53 }
 0xc3b   : > { %v1780_v58 = vmul.f32 %v2389_v50, %v1779_v54 }
 0xc3d   : > { %v1781_v55 = vadd.f32 1.4214138, %v1780_v58 }
 0xc3f   : > { %v1782_v59 = vmul.f32 %v2389_v50, %v1781_v55 }
 0xc41   : > { %v1783_v60 = vadd.f32 -0.28449672, %v1782_v59 }
 0xc43   : > { %v1784_v61 = vmul.f32 %v2389_v50, %v1783_v60 }
 0xc45   : > { %v1785_v62 = vadd.f32 0.2548296, %v1784_v61 }
 0xc47   : > { %v1786_v63 = vmul.f32 %v2389_v50, %v1785_v62 }
 0xc49   : > { %v1791_v1 = vmul.f32 %v2391_v0, %v1786_v63 }
 0xc4b   : > { %v1792_v2 = vsub.f32 1.0, %v1791_v1 }
 0xc4d   : > { %v1794_v3 = vsub.f32 0.0, %v1792_v2 }
 0xc4f   : > { %v1795_v5 = vsel %vm1793_vm13, %v1792_v2, %v1794_v3 }
 0xc50   : > { %v1796_v7 = vadd.f32 1.0, %v1795_v5 }
 0xc52   : > { %v1797_v8 = vmul.f32 %v1796_v7, %v1772_v6 }
 0xc54   : > { %2162 = vmatmul.msk.f32.vlgmr.msrb.gmra.mxu0 %vm1810_vm14, %v1797_v8 }
 0xcd1   : > { %v1831_v10 = vpop.f32.mrf.mxu0 }
 0xcd2   : > { %v1832_v11 = vadd.f32 %v2346_v9, %v1831_v10 }
 0xcd4   : > { %v1834_v12 = vadd.f32 %v1832_v11, %v1740_v34 }
 0xcd6   : > { %v1837_v13 = vsel %vm928_vm0, %v1834_v12, 0.0 }
 0xcd7   : > { %1838 = vadd.xlane.f32.xlu1 %v1837_v13 }
 0xd4a   : > { %v1839_v14 = vpop.xlane.xlu1 %1838 }
 0xd4b   : > { %v1840_v15 = vmul.f32 %v1839_v14, %v3201_v26 }
 0xd4d   : > { %v1841_v16 = vsub.f32 %v1834_v12, %v1840_v15 }
 0xd4f   : > { %v1842_v17 = vmul.f32 %v1841_v16, %v1841_v16 }
 0xd51   : > { %v1843_v51 = vsel %vm928_vm0, %v1842_v17, 0.0 }
 0xd52   : > { %1844 = vadd.xlane.f32.xlu0 %v1843_v51 }
 0xdc5   : > { %v1845_v22 = vpop.xlane.xlu0 %1844 }
 0xdc6   : > { %v1846_v4 = vmul.f32 %v1845_v22, %v3201_v26  ;;  %v2348_v26 = vld [vmem:[#allocation19] ss:$0 sm:$0xff] }
 0xdc8   : > { %v1847_v23 = vadd.f32 1e-05, %v1846_v4 }
 0xdca   : > { %2392 = vrsqrt.f32 %v1847_v23  ;;  %vm1854_vm1 = vweird.f32 %v1847_v23 }
 0xdd0   : > { %v2393_v24 = vpop.eup %2392 }
 0xdd1   : > { %v1849_v25 = vmul.f32 %v2393_v24, %v1847_v23  ;;  %vm1855_vm15 = vweird.f32 %v2393_v24 }
 0xdd2   : > { %vm1856_vm3 = vmor %vm1854_vm1, %vm1855_vm15 }
 0xdd3   : > { %v1850_v27 = vmul.f32 %v2393_v24, %v1849_v25 }
 0xdd5   : > { %v1851_v28 = vmul.f32 0.5, %v1850_v27 }
 0xdd7   : > { %v1852_v29 = vsub.f32 1.5, %v1851_v28 }
 0xdd9   : > { %v1853_v30 = vmul.f32 %v2393_v24, %v1852_v29 }
 0xddb   : > { %v1857_v32 = vsel %vm1856_vm3, %v2393_v24, %v1853_v30 }
 0xddc   : > { %v1858_v33 = vmul.f32 %v1857_v32, %v1841_v16 }
 0xdde   : > { %v1862_v34 = vmul.f32 %v2347_v31, %v1858_v33 }
 0xde0   : > { %v1866_v35 = vadd.f32 %v2348_v26, %v1862_v34 }
 0xde2   : > { %2163 = vmatmul.msk.f32.vlgmr.msra.gmra.mxu2 %vm928_vm0, %v1866_v35 }
 0xe65   : > { %v1895_v37 = vpop.f32.mrf.mxu2 }
 0xe66   : > { %v1896_v38 = vadd.f32 %v2349_v36, %v1895_v37 }
 0xe68   : > { %1898 = vst.msk [vmem:[%s907_s5] sm:$0xff] %vm1232_vm2, %v1896_v38 }
 0xe69   : > { %2751 = shalt.err (!%p2748_p8)
}
 0xe6a   : > { %2213 = dma.vmem_to_hbm [thread:$0]  (%p3003_p5), %s1913_s10, 128, %s1915_s1, %s1900_s0  }
 0xe6b PF: > { %s3489_s30 = sld [smem:[#allocation30_spill]] }
 0xe6c   : > { %s3490_s12 = sld [smem:[#allocation28_spill]] }
 0xe71   : > { %p2275_p9 = scmp.ge.s32.totalorder %s3489_s30, 2 }
 0xe72   : > { %s1926_s28 = sand.u32 1, %s3490_s12  }
 0xe73   : > { %p2250_p10 = pnand %p2275_p9, %p3007_p6  ;;  %s1927_s4 = scalar_lea.sflag [#allocation4], %s1926_s28 }
 0xe75   : > { %p2251_p11 = pneg %p2250_p10 }
 0xe77   : > { %2793 = dma.done.wait (%p2251_p11), %s1927_s4, 128  }
 0xe78   : > { %2795 = vsyncadd (%p2251_p11), %s1927_s4, 4294967168  ;;  %s3492_s28 = sld [smem:[#allocation31_spill]]  ;;  %s3495_s5 = smov %s2802_s26 }
 0xe79   : > { %s3493_s9 = sld [smem:[#allocation29_spill]] }
 0xe7a   : > { %s3494_s27 = sld [smem:[#allocation32_spill]] }
 0xe7e   : > { %p40_p12 = scmp.ge.s32.totalorder %s3492_s28, 4  }
 0xe7f   : > { %s3496_s26 = smov %s3493_s9 }
 0xe80   :  { %42 = sbr.rel (!%p40_p12) target bundleno = 25 (0x19), region = 199 }
 0xe85   :  { %1933 = vsyncpa [#allocation3], 1 }
 0xe86   :  { %1935 = vsyncpa [#allocation3 + $0x1], 1 }
 0xe87   :  { %1936 = vsyncpa [#allocation6], 1 }
 0xe88   :  { %1937 = vsyncpa [#allocation9], 1 }
 0xe89   :  { %1938 = vsyncpa [#allocation12], 1 }
 0xe8a   :  { %1939 = vsyncpa [#allocation15], 1 }
 0xe8b   :  { %1940 = vsyncpa [#allocation18], 1 }
 0xe8c   :  { %1941 = vsyncpa [#allocation4], 1 }
 0xe8d   :  { %1943 = vsyncpa [#allocation4 + $0x1], 1 }

// kernel: transformer_decoder.2
= control target key start
LH: loop header
LB: loop body
LE: loop exit
PB: predicated region body
PF: predicated region fallthrough
CT: control target
= control target key end

     0   :  { %s3109_s0 = inlined_call_operand.vmem [shape: f32[2,8,32], index: 0, kind: input, shape index: {}]   ;;  %s3110_s1 = inlined_call_operand.vmem [shape: f32[2,10,32], index: 1, kind: input, shape index: {}]   ;;  %s3111_s2 = inlined_call_operand.vmem [shape: f32[32,96], index: 2, kind: input, shape index: {}]   ;;  %s3112_s3 = inlined_call_operand.vmem [shape: f32[1,96], index: 3, kind: input, shape index: {}]   ;;  %s3113_s4 = inlined_call_operand.vmem [shape: f32[32,32], index: 4, kind: input, shape index: {}]   ;;  %s3114_s5 = inlined_call_operand.vmem [shape: f32[1,32], index: 5, kind: input, shape index: {}]   ;;  %s3115_s6 = inlined_call_operand.vmem [shape: f32[1,32], index: 6, kind: input, shape index: {}]   ;;  %s3116_s7 = inlined_call_operand.vmem [shape: f32[1,32], index: 7, kind: input, shape index: {}]   ;;  %s3117_s8 = inlined_call_operand.vmem [shape: f32[32,32], index: 8, kind: input, shape index: {}]   ;;  %s3118_s9 = inlined_call_operand.vmem [shape: f32[1,32], index: 9, kind: input, shape index: {}]   ;;  %s3119_s10 = inlined_call_operand.hbm [shape: f32[32,64], index: 10, kind: input, shape index: {}]   ;;  %s3120_s11 = inlined_call_operand.hbm [shape: f32[1,64], index: 11, kind: input, shape index: {}]   ;;  %s3121_s12 = inlined_call_operand.hbm [shape: f32[32,32], index: 12, kind: input, shape index: {}]   ;;  %s3122_s13 = inlined_call_operand.hbm [shape: f32[1,32], index: 13, kind: input, shape index: {}]   ;;  %s3123_s14 = inlined_call_operand.hbm [shape: f32[1,32], index: 14, kind: input, shape index: {}]   ;;  %s3124_s15 = inlined_call_operand.hbm [shape: f32[1,32], index: 15, kind: input, shape index: {}]   ;;  %s3125_s16 = inlined_call_operand.hbm [shape: f32[32,64], index: 16, kind: input, shape index: {}]   ;;  %s3126_s17 = inlined_call_operand.hbm [shape: f32[1,64], index: 17, kind: input, shape index: {}]   ;;  %s3127_s18 = inlined_call_operand.vmem [shape: f32[64,32], index: 18, kind: input, shape index: {}]   ;;  %s3128_s19 = inlined_call_operand.hbm [shape: f32[1,32], index: 19, kind: input, shape index: {}]   ;;  %s3129_s20 = inlined_call_operand.hbm [shape: f32[1,32], index: 20, kind: input, shape index: {}]   ;;  %s3130_s21 = inlined_call_operand.hbm [shape: f32[1,32], index: 21, kind: input, shape index: {}]   ;;  %s3131_s22 = inlined_call_operand.vmem [shape: f32[2,8,32], index: 22, kind: output, shape index: {}]  }
   0x1   :  { %3141 = sst [smem:[#allocation26_spill]] %s3109_s0 }
   0x2   :  { %3142 = sst [smem:[#allocation27_spill]] %s3110_s1 }
   0x3   :  { %3143 = sst [smem:[#allocation28_spill]] %s3111_s2 }
   0x4   :  { %3144 = sst [smem:[#allocation29_spill]] %s3112_s3 }
   0x5   :  { %3145 = sst [smem:[#allocation30_spill]] %s3113_s4 }
   0x6   :  { %3146 = sst [smem:[#allocation31_spill]] %s3114_s5 }
   0x7   :  { %3147 = sst [smem:[#allocation32_spill]] %s3115_s6 }
   0x8   :  { %3148 = sst [smem:[#allocation33_spill]] %s3120_s11 }
   0x9   :  { %3149 = sst [smem:[#allocation34_spill]] %s3122_s13 }
   0xa   :  { %3150 = sst [smem:[#allocation35_spill]] %s3124_s15 }
   0xb   :  { %27 = vsyncpa [#allocation3], 0 }
   0xc   :  { %28 = vsyncpa [#allocation5], 0 }
   0xd   :  { %29 = vsyncpa [#allocation8], 0 }
   0xe   :  { %30 = vsyncpa [#allocation11], 0 }
   0xf   :  { %31 = vsyncpa [#allocation14], 0 }
  0x10   :  { %32 = vsyncpa [#allocation17], 0  ;;  %s2760_s3 = smov 0  }
  0x11 LB: > { %3151 = sst [smem:[#allocation25_spill]] %s2615_s3  ;;  %s2769_s4 = sadd.s32 4294967295, %s2615_s3   ;;  %s2615_s3 = sphi %s2760_s3, %s38_s3  }
  0x12   : > { %s3152_s11 = sld [smem:[#allocation33_spill]]  ;;  %p1990_p0 = scmp.ge.s32.totalorder %s2615_s3, 1 }
  0x13   : > { %p541_p1 = scmp.lt.s32.totalorder %s2615_s3, 3  ;;  %p2140_p2 = scmp.eq.s32.totalorder %s2769_s4, 0 }
  0x14   : > { %s2617_s23 = smov [#allocation4]   ;;  %s3154_s13 = sld [smem:[#allocation34_spill]] }
  0x15   : > { %p2774_p3 = pnand %p1990_p0, %p541_p1  ;;  %s593_s1 = sshll.u32 %s2617_s23, 4  ;;  %s594_s1 = int_to_ptr.vmem [resolvable:$true] %s593_s1 }
  0x16   : > { %s3155_s15 = sld [smem:[#allocation35_spill]]  ;;  %s2618_s28 = smov [#allocation7]  }
  0x17   : > { %p2106_p4 = pneg %p2774_p3  ;;  %s619_s29 = sshll.u32 %s2618_s28, 4  ;;  %s620_s29 = int_to_ptr.vmem [resolvable:$true] %s619_s29 }
  0x18   : > { %s591_s30 = sshll.u32 %s3152_s11, 4  ;;  %s2619_s23 = smov [#allocation10]   ;;  %s592_s30 = int_to_ptr.hbm [resolvable:$true] %s591_s30 }
  0x19   : > { %p2788_p5 = pnand %p2140_p2, %p2106_p4  ;;  %s643_s5 = sshll.u32 %s2619_s23, 4  ;;  %s644_s5 = int_to_ptr.vmem [resolvable:$true] %s643_s5 }
  0x1a   : > { %s617_s6 = sshll.u32 %s3154_s13, 4  ;;  %s667_s26 = sshll.u32 %s3126_s17, 4  ;;  %s618_s6 = int_to_ptr.hbm [resolvable:$true] %s617_s6  ;;  %s668_s26 = int_to_ptr.hbm [resolvable:$true] %s667_s26 }
  0x1b   : > { %2112 = dma.hbm_to_vmem [thread:$0]  (!%p2788_p5), %s592_s30, 16, %s594_s1, [#allocation5]  }
  0x1c   : > { %s641_s2 = sshll.u32 %s3155_s15, 4  ;;  %s694_s13 = sshll.u32 %s3129_s20, 4  ;;  %s642_s2 = int_to_ptr.hbm [resolvable:$true] %s641_s2  ;;  %s695_s13 = int_to_ptr.hbm [resolvable:$true] %s694_s13 }
  0x1d   : > { %2118 = dma.hbm_to_vmem [thread:$0]  (!%p2788_p5), %s618_s6, 16, %s620_s29, [#allocation8]  }
  0x1e   : > { %2124 = dma.hbm_to_vmem [thread:$0]  (!%p2788_p5), %s642_s2, 16, %s644_s5, [#allocation11]  }
  0x1f   : > { %s2620_s15 = smov [#allocation13]   ;;  %s2621_s30 = smov [#allocation16]  }
  0x20   : > { %s669_s3 = sshll.u32 %s2620_s15, 4  ;;  %s696_s1 = sshll.u32 %s2621_s30, 4  ;;  %s670_s3 = int_to_ptr.vmem [resolvable:$true] %s669_s3  ;;  %s697_s1 = int_to_ptr.vmem [resolvable:$true] %s696_s1 }
  0x21   : > { %2130 = dma.hbm_to_vmem [thread:$0]  (!%p2788_p5), %s668_s26, 16, %s670_s3, [#allocation14]  }
  0x22   : > { %s576_s23 = sshll.u32 %s3119_s10, 4  ;;  %s2622_s11 = smov [#allocation2]   ;;  %s577_s23 = int_to_ptr.hbm [resolvable:$true] %s576_s23 }
  0x23   : > { %2136 = dma.hbm_to_vmem [thread:$0]  (!%p2788_p5), %s695_s13, 16, %s697_s1, [#allocation17]  }
  0x24   : > { %s578_s2 = sshll.u32 %s2622_s11, 4  ;;  %s602_s24 = sshll.u32 %s3121_s12, 4  ;;  %s579_s2 = int_to_ptr.vmem [resolvable:$true] %s578_s2  ;;  %s603_s24 = int_to_ptr.hbm [resolvable:$true] %s602_s24 }
  0x25   : > { %s2623_s3 = smov 128   ;;  %s2624_s25 = smov 8  }
  0x26   : > { %2109 = dma.hbm_to_vmem [thread:$0]  (!%p2788_p5), %s577_s23, 512, %s579_s2, [#allocation3], %s2623_s3, %s2623_s3, %s2624_s25  }
  0x27   : > { %s2625_s26 = smov [#allocation6]   ;;  %s629_s13 = sshll.u32 %s3123_s14, 4  ;;  %s630_s13 = int_to_ptr.hbm [resolvable:$true] %s629_s13 }
  0x28   : > { %s604_s28 = sshll.u32 %s2625_s26, 4  ;;  %s652_s11 = sshll.u32 %s3125_s16, 4  ;;  %s605_s28 = int_to_ptr.vmem [resolvable:$true] %s604_s28  ;;  %s653_s11 = int_to_ptr.hbm [resolvable:$true] %s652_s11 }
  0x29   : > { %2115 = dma.hbm_to_vmem [thread:$0]  (!%p2788_p5), %s603_s24, 512, %s605_s28, [#allocation5], %s2623_s3, %s2623_s3, %s2624_s25  }
  0x2a   : > { %s2626_s15 = smov [#allocation9]   ;;  %s2627_s23 = smov [#allocation12]  }
  0x2b   : > { %s631_s5 = sshll.u32 %s2626_s15, 4  ;;  %s654_s2 = sshll.u32 %s2627_s23, 4  ;;  %s632_s5 = int_to_ptr.vmem [resolvable:$true] %s631_s5  ;;  %s655_s2 = int_to_ptr.vmem [resolvable:$true] %s654_s2 }
  0x2c   : > { %2121 = dma.hbm_to_vmem [thread:$0]  (!%p2788_p5), %s630_s13, 16, %s632_s5, [#allocation8]  }
  0x2d   : > { %s682_s6 = sshll.u32 %s3128_s19, 4  ;;  %s706_s1 = sshll.u32 %s3130_s21, 4  ;;  %s683_s6 = int_to_ptr.hbm [resolvable:$true] %s682_s6  ;;  %s707_s1 = int_to_ptr.hbm [resolvable:$true] %s706_s1 }
  0x2e   : > { %2127 = dma.hbm_to_vmem [thread:$0]  (!%p2788_p5), %s653_s11, 512, %s655_s2, [#allocation11], %s2623_s3, %s2623_s3, %s2624_s25  }
  0x2f   : > { %s2628_s29 = smov [#allocation15]   ;;  %s2629_s13 = smov [#allocation18]  }
  0x30   : > { %s684_s15 = sshll.u32 %s2628_s29, 4  ;;  %s708_s5 = sshll.u32 %s2629_s13, 4  ;;  %s685_s15 = int_to_ptr.vmem [resolvable:$true] %s684_s15  ;;  %s709_s5 = int_to_ptr.vmem [resolvable:$true] %s708_s5 }
  0x31   : > { %2133 = dma.hbm_to_vmem [thread:$0]  (!%p2788_p5), %s683_s6, 16, %s685_s15, [#allocation14]  }
  0x32   : > { %2139 = dma.hbm_to_vmem [thread:$0]  (!%p2788_p5), %s707_s1, 16, %s709_s5, [#allocation17]  }
  0x33   : > { %736 = sbr.rel (%p2774_p3) target bundleno = 3901 (0xf3d), region = 108 }
  0x38   : > { %2590 = dma.done.wait (%p2140_p2), [#allocation3], 512  }
  0x39   : > { %2592 = vsyncadd (%p2140_p2), [#allocation3], 4294966784 }
  0x3a   : > { %2594 = dma.done.wait (%p2140_p2), [#allocation5], 528  }
  0x3b   : > { %2596 = vsyncadd (%p2140_p2), [#allocation5], 4294966768 }
  0x3c   : > { %2598 = dma.done.wait (%p2140_p2), [#allocation8], 32  }
  0x3d   : > { %2600 = vsyncadd (%p2140_p2), [#allocation8], 4294967264 }
  0x3e   : > { %2602 = dma.done.wait (%p2140_p2), [#allocation11], 528  }
  0x3f   : > { %2604 = vsyncadd (%p2140_p2), [#allocation11], 4294966768 }
  0x40   : > { %2606 = dma.done.wait (%p2140_p2), [#allocation14], 32  }
  0x41   : > { %2608 = vsyncadd (%p2140_p2), [#allocation14], 4294967264 }
  0x42   : > { %2610 = dma.done.wait (%p2140_p2), [#allocation17], 32  }
  0x43   : > { %2612 = vsyncadd (%p2140_p2), [#allocation17], 4294967264  ;;  %p852_p6 = scmp.lt.s32.totalorder %s2769_s4, 1  ;;  %s3157_s25 = sld [smem:[#allocation28_spill]]  ;;  %vm876_vm0 = vcmask 261120   ;;  %vm909_vm1 = vcmask 64512  }
  0x44   : > { %s3158_s30 = sld [smem:[#allocation26_spill]]  ;;  %s2630_s27 = smov 64   ;;  %vm1180_vm2 = vcmask 130048   ;;  %vm1182_vm3 = vcmask 195584   ;;  %vm1373_vm8 = vcmask 1041408   ;;  %vm1353_vm9 = vcmask 80896  }
  0x45   : > { %s3170_s4 = smov (!%p852_p6, %s2769_s4), 1  ;;  %s3159_s5 = sld [smem:[#allocation29_spill]]  ;;  %vm1758_vm14 = vcmask 523264  }
  0x46   : > { %s3135_s0 = sshll.u32 %s3170_s4, 3  ;;  %s2631_s3 = smov 96  }
  0x47   : > { %s2632_s11 = smov 120   ;;  %s2633_s23 = smov 56  }
  0x48   : > { %s2634_s2 = smov 88   ;;  %s2635_s26 = smov 104  }
  0x49   : > { %v871_v0 = vld [vmem:[%s3157_s25 + $0x18] sm:$0xff]  ;;  %v870_v1 = vld [vmem:[%s3157_s25 + $0x10] sm:$0xff]  ;;  %v869_v2 = vld [vmem:[%s3157_s25 + $0x8] sm:$0xff]  ;;  %s2638_s24 = smov 112   ;;  %s2639_s28 = smov 40  }
  0x4a   : > { %s855_s6 = scalar_lea.vmem %s3158_s30, %s3135_s0  ;;  %892 = vmatpush.msra.mxu0 %v871_v0  ;;  %v868_v3 = vld [vmem:[%s3157_s25] sm:$0xff]  ;;  %s3139_s30 = smov 72  }
  0x4b   : > { %v2886_v4 = vld [vmem:[%s855_s6] sm:$0xff]  ;;  %s3137_s6 = smov 80   ;;  %s3136_s1 = smov 8  }
  0x4c   : > { %893 = vmatpush.msra.mxu0 %v870_v1  ;;  %v2198_v5 = vld [vmem:[%s3159_s5] ss:$0 sm:$0xff]  ;;  %s2641_s29 = smov 48   ;;  %s2642_s15 = smov 16  }
  0x4d   : > { %s2643_s13 = smov 24  }
  0x4e   : > { %894 = vmatpush.msra.mxu0 %v869_v2 }
  0x50   : > { %895 = vmatpush.msra.mxu0 %v868_v3 }
  0x51   : > { %2019 = vmatmul.msk.f32.vlgmr.msra.gmra.mxu0 %vm876_vm0, %v2886_v4 }
  0xce   : > { %v897_v6 = vpop.f32.mrf.mxu0 }
  0xcf   : > { %v2893_v7 = vadd.f32 %v2198_v5, %v897_v6 }
  0xd1   : > { %946 = vrot.lane.b32.xlu2 %v2893_v7, %s2630_s27  ;;  %907 = vrot.lane.b32.xlu0 %v2893_v7, %s2631_s3  ;;  %v900_v8 = vmul.f32 0.35355338, %v2893_v7 }
  0xd3   : > { %972 = vrot.lane.b32.xlu1 %v900_v8, %s2632_s11 }
  0xd9   : > { %1011 = vrot.lane.b32.xlu2 %v2893_v7, %s2633_s23  ;;  %974 = vrot.lane.b32.xlu0 %v2893_v7, %s2634_s2  ;;  %s3160_s23 = sld [smem:[#allocation30_spill]] }
  0xdf   : > { %v904_v0 = vld [vmem:[%s3160_s23 + $0x18] sm:$0xff]  ;;  %v903_v1 = vld [vmem:[%s3160_s23 + $0x10] sm:$0xff]  ;;  %v902_v2 = vld [vmem:[%s3160_s23 + $0x8] sm:$0xff] }
  0xe0   : > { %v901_v3 = vld [vmem:[%s3160_s23] sm:$0xff] }
 0x12b   : > { %v947_v9 = vpop.permute.xlu2 %946 }
 0x12c   : > { %967 = vmatpush.msra.mxu2 %v947_v9 }
 0x133   : > { %v1012_v10 = vpop.permute.xlu2 %1011 }
 0x134   : > { %1032 = vmatpush.msrb.mxu2 %v1012_v10 }
 0x143   : > { %v908_v11 = vpop.permute.xlu0 %907 }
 0x144   : > { %2020 = vmatpush.xpose.msk.msra.mxu1 %vm909_vm1, %v908_v11 }
 0x145   : > { %v973_v13 = vpop.permute.xlu1 %972 }
 0x147   : > { %2021 = vmatmul.msk.f32.vlgmr.msra.gmra.mxu1 %vm909_vm1, %v900_v8 }
 0x14b   : > { %v975_v12 = vpop.permute.xlu0 %974 }
 0x14c   : > { %2023 = vmatpush.xpose.msk.msra.mxu3 %vm909_vm1, %v975_v12 }
 0x14f   : > { %2024 = vmatmul.msk.f32.vlgmr.msra.gmra.mxu3 %vm909_vm1, %v973_v13 }
 0x1c4   : > { %v932_v14 = vpop.f32.mrf.mxu1 }
 0x1c5   : > { %v935_v15 = vsel %vm909_vm1, %v932_v14, -inf }
 0x1c6   : > { %936 = vmax.xlane.f32.xlu1 %v935_v15 }
 0x1d2   : > { %v997_v16 = vpop.f32.mrf.mxu3 }
 0x1d3   : > { %v1000_v17 = vsel %vm909_vm1, %v997_v16, -inf }
 0x1d4   : > { %1001 = vmax.xlane.f32.xlu2 %v1000_v17  ;;  %v1285_v17 = vld [vmem:[#allocation2 + $0x18] sm:$0xff] }
 0x1d5   : > { %1308 = vmatpush.msrb.mxu0 %v1285_v17 }
 0x1df   : > { %1102 = vrot.lane.b32.xlu1 %v900_v8, %s2635_s26 }
 0x1ec   : > { %1104 = vrot.lane.b32.xlu2 %v2893_v7, %s3139_s30  ;;  %s3161_s30 = sld [smem:[#allocation31_spill]] }
 0x1f2   : > { %v2199_v11 = vld [vmem:[%s3161_s30] ss:$0 sm:$0xff]  ;;  %s3163_s30 = sld [smem:[#allocation32_spill]] }
 0x239   : > { %v937_v18 = vpop.xlane.xlu1 %936 }
 0x23a   : > { %v938_v19 = vsub.f32 %v932_v14, %v937_v18  ;;  %v1284_v18 = vld [vmem:[#allocation2 + $0x10] sm:$0xff] }
 0x23b   : > { %1309 = vmatpush.msrb.mxu0 %v1284_v18 }
 0x23c   : > { %v939_v20 = vmul.f32 1.442695, %v938_v19  ;;  %v1283_v19 = vld [vmem:[#allocation2 + $0x8] sm:$0xff] }
 0x23d   : > { %1310 = vmatpush.msrb.mxu0 %v1283_v19 }
 0x23e   : > { %2211 = vpow2.f32 %v939_v20 }
 0x244   : > { %v2212_v21 = vpop.eup %2211 }
 0x245   : > { %v941_v22 = vsel %vm909_vm1, %v2212_v21, 0.0 }
 0x246   : > { %942 = vadd.xlane.f32.xlu2 %v941_v22 }
 0x247   : > { %v1002_v23 = vpop.xlane.xlu2 %1001 }
 0x248   : > { %v1003_v24 = vsub.f32 %v997_v16, %v1002_v23  ;;  %v2644_v16 = vmov 32.0  }
 0x24a   : > { %v1004_v25 = vmul.f32 1.442695, %v1003_v24 }
 0x24c   : > { %2213 = vpow2.f32 %v1004_v25 }
 0x24f   : > { %v1105_v28 = vpop.permute.xlu2 %1104 }
 0x251   : > { %v1103_v36 = vpop.permute.xlu1 %1102 }
 0x252   : > { %v2214_v26 = vpop.eup %2213 }
 0x253   : > { %v1006_v27 = vsel %vm909_vm1, %v2214_v26, 0.0 }
 0x254   : > { %1007 = vadd.xlane.f32.xlu0 %v1006_v27 }
 0x25e   : > { %1039 = vrot.lane.b32.xlu2 %v2893_v7, %s3137_s6  ;;  %s2061_s6 = sshll.u32 %s3170_s4, 4 }
 0x268   : > { %1037 = vrot.lane.b32.xlu0 %v900_v8, %s2638_s24 }
 0x2b9   : > { %v943_v29 = vpop.xlane.xlu2 %942 }
 0x2ba   : > { %2215 = vrcp.f32 %v943_v29 }
 0x2c0   : > { %v2216_v30 = vpop.eup %2215 }
 0x2c1   : > { %v1040_v31 = vpop.permute.xlu2 %1039  ;;  %v945_v32 = vmul.f32 %v2216_v30, %v2212_v21  ;;  %v1282_v21 = vld [vmem:[#allocation2] sm:$0xff] }
 0x2c2   : > { %2026 = vmatpush.xpose.msk.msrb.mxu1 %vm909_vm1, %v1040_v31  ;;  %1311 = vmatpush.msrb.mxu0 %v1282_v21 }
 0x2c3   : > { %2022 = vmatmul.msk.f32.vlgmr.msra.gmra.mxu2 %vm909_vm1, %v945_v32 }
 0x2c4   : > { %2029 = vmatpush.xpose.msk.msra.mxu2 %vm909_vm1, %v1105_v28 }
 0x2c6   : > { %1202 = vmatpush.msra.mxu1 %v904_v0 }
 0x2c7   : > { %v1008_v33 = vpop.xlane.xlu0 %1007 }
 0x2c8   : > { %2217 = vrcp.f32 %v1008_v33  ;;  %1203 = vmatpush.msra.mxu1 %v903_v1  ;;  %v1253_v33 = vld [vmem:[%s3117_s8 + $0x18] sm:$0xff] }
 0x2ca   : > { %1204 = vmatpush.msra.mxu1 %v902_v2 }
 0x2cc   : > { %1205 = vmatpush.msra.mxu1 %v901_v3 }
 0x2ce   : > { %v2218_v34 = vpop.eup %2217 }
 0x2cf   : > { %v1010_v35 = vmul.f32 %v2218_v34, %v2214_v26  ;;  %v1252_v34 = vld [vmem:[%s3117_s8 + $0x10] sm:$0xff] }
 0x2d1   : > { %2025 = vmatmul.msk.f32.vlgmr.msrb.gmra.mxu2 %vm909_vm1, %v1010_v35  ;;  %v1251_v35 = vld [vmem:[%s3117_s8 + $0x8] sm:$0xff] }
 0x2d9   : > { %2030 = vmatmul.msk.f32.vlgmr.msra.gmra.mxu2 %vm909_vm1, %v1103_v36  ;;  %v1250_v36 = vld [vmem:[%s3117_s8] sm:$0xff] }
 0x2da   : > { %v1038_v37 = vpop.permute.xlu0 %1037 }
 0x2db   : > { %2027 = vmatmul.msk.f32.vlgmr.msrb.gmra.mxu1 %vm909_vm1, %v1038_v37 }
 0x346   : > { %v969_v38 = vpop.f32.mrf.mxu2 }
 0x354   : > { %v1034_v39 = vpop.f32.mrf.mxu2 }
 0x358   : > { %v1062_v40 = vpop.f32.mrf.mxu1 }
 0x359   : > { %v1065_v41 = vsel %vm909_vm1, %v1062_v40, -inf }
 0x35a   : > { %1066 = vmax.xlane.f32.xlu2 %v1065_v41 }
 0x35c   : > { %v1127_v42 = vpop.f32.mrf.mxu2 }
 0x35d   : > { %v1130_v43 = vsel %vm909_vm1, %v1127_v42, -inf }
 0x35e   : > { %1131 = vmax.xlane.f32.xlu1 %v1130_v43 }
 0x377   : > { %1141 = vrot.lane.b32.xlu1 %v2893_v7, %s2639_s28  ;;  %s3162_s28 = sld [smem:[#allocation27_spill]] }
 0x3cd   : > { %v1067_v44 = vpop.xlane.xlu2 %1066 }
 0x3ce   : > { %v1068_v45 = vsub.f32 %v1062_v40, %v1067_v44  ;;  %v2202_v40 = vld [vmem:[#allocation4] ss:$0 sm:$0xff] }
 0x3d0   : > { %v1069_v46 = vmul.f32 1.442695, %v1068_v45 }
 0x3d1   : > { %v1132_v47 = vpop.xlane.xlu1 %1131 }
 0x3d2   : > { %2219 = vpow2.f32 %v1069_v46  ;;  %v1133_v48 = vsub.f32 %v1127_v42, %v1132_v47 }
 0x3d4   : > { %v1134_v49 = vmul.f32 1.442695, %v1133_v48 }
 0x3d6   : > { %2221 = vpow2.f32 %v1134_v49 }
 0x3d8   : > { %v2220_v50 = vpop.eup %2219 }
 0x3d9   : > { %v1071_v51 = vsel %vm909_vm1, %v2220_v50, 0.0 }
 0x3da   : > { %1072 = vadd.xlane.f32.xlu0 %v1071_v51  ;;  %v2200_v51 = vld [vmem:[%s3163_s30] ss:$0 sm:$0xff] }
 0x3dc   : > { %v2222_v52 = vpop.eup %2221 }
 0x3dd   : > { %v1136_v53 = vsel %vm909_vm1, %v2222_v52, 0.0 }
 0x3de   : > { %1137 = vadd.xlane.f32.xlu2 %v1136_v53 }
 0x3e9   : > { %v1142_v54 = vpop.permute.xlu1 %1141 }
 0x3ea   : > { %1162 = vmatpush.msrb.mxu2 %v1142_v54  ;;  %v2201_v54 = vld [vmem:[%s3116_s7] ss:$0 sm:$0xff] }
 0x3ee   : > { %1168 = vrot.lane.b32.xlu0 %v1034_v39, %s3136_s1 }
 0x3f6   : > { %1076 = vrot.lane.b32.xlu2 %v2893_v7, %s2641_s29  ;;  %s860_s29 = scalar_lea.vmem %s3162_s28, %s2061_s6 }
 0x3f7   : > { %v866_v22 = vld [vmem:[%s860_s29] sm:$0xff]  ;;  %v867_v24 = vld [vmem:[%s860_s29 + $0x8] sm:$0x3] }
 0x3f8   : > { %2034 = vmatmul.msk.f32.vlgmr.msrb.gmra.mxu0 %vm876_vm0, %v866_v22 }
 0x400   : > { %2035 = vmatmul.msk.f32.gmra.mxu0 %vm876_vm0, %v867_v24 }
 0x44d   : > { %v1073_v55 = vpop.xlane.xlu0 %1072 }
 0x44e   : > { %2223 = vrcp.f32 %v1073_v55 }
 0x451   : > { %v1138_v56 = vpop.xlane.xlu2 %1137 }
 0x452   : > { %2225 = vrcp.f32 %v1138_v56 }
 0x453   : > { %2227 = vrcp.f32 %v2644_v16 }
 0x454   : > { %v2224_v57 = vpop.eup %2223 }
 0x455   : > { %v1075_v61 = vmul.f32 %v2224_v57, %v2220_v50 }
 0x458   : > { %v2226_v58 = vpop.eup %2225 }
 0x459   : > { %v1140_v59 = vmul.f32 %v2226_v58, %v2222_v52  ;;  %v1077_v60 = vpop.permute.xlu2 %1076  ;;  %v2228_v20 = vpop.eup %2227  ;;  %v2203_v58 = vld [vmem:[%s3118_s9] ss:$0 sm:$0xff] }
 0x45a   : > { %1097 = vmatpush.msrb.mxu3 %v1077_v60  ;;  %vm1221_vm4 = vweird.f32 %v2228_v20 }
 0x45b   : > { %2028 = vmatmul.msk.f32.vlgmr.msrb.gmra.mxu3 %vm909_vm1, %v1075_v61  ;;  %2031 = vmatmul.msk.f32.vlgmr.msrb.gmra.mxu2 %vm909_vm1, %v1140_v59 }
 0x45c   : > { %1273 = vmatpush.msra.mxu3 %v1253_v33 }
 0x45e   : > { %1274 = vmatpush.msra.mxu3 %v1252_v34 }
 0x460   : > { %v1169_v5 = vpop.permute.xlu0 %1168  ;;  %1275 = vmatpush.msra.mxu3 %v1251_v35 }
 0x461   : > { %v1179_v7 = vsel %vm909_vm1, %v969_v38, %v1169_v5 }
 0x462   : > { %1276 = vmatpush.msra.mxu3 %v1250_v36 }
 0x475   : > { %v1313_v37 = vpop.f32.mrf.mxu0 }
 0x476   : > { %v2980_v44 = vadd.f32 %v2202_v40, %v1313_v37 }
 0x47d   : > { %v1316_v42 = vpop.f32.mrf.mxu0 }
 0x47e   : > { %v2978_v43 = vadd.f32 %v2202_v40, %v1316_v42 }
 0x480   : > { %2036 = vmatpush.xpose.msk.msra.mxu2 %vm909_vm1, %v2978_v43 }
 0x484   : > { %2037 = vmatpush.xpose.msk.msra.mxu2 %vm909_vm1, %v2980_v44 }
 0x4de   : > { %v1099_v62 = vpop.f32.mrf.mxu3  ;;  %v1164_v63 = vpop.f32.mrf.mxu2 }
 0x4df   : > { %1172 = vrot.lane.b32.xlu2 %v1099_v62, %s2642_s15  ;;  %1176 = vrot.lane.b32.xlu0 %v1164_v63, %s2643_s13 }
 0x539   : > { %v1173_v6 = vpop.permute.xlu2 %1172 }
 0x53a   : > { %v1181_v8 = vsel %vm1180_vm2, %v1179_v7, %v1173_v6 }
 0x551   : > { %v1177_v9 = vpop.permute.xlu0 %1176 }
 0x552   : > { %v1183_v10 = vsel %vm1182_vm3, %v1181_v8, %v1177_v9 }
 0x553   : > { %2032 = vmatmul.msk.f32.vlgmr.msra.gmra.mxu1 %vm876_vm0, %v1183_v10 }
 0x5d0   : > { %v1207_v12 = vpop.f32.mrf.mxu1 }
 0x5d1   : > { %v1208_v13 = vadd.f32 %v2199_v11, %v1207_v12 }
 0x5d3   : > { %v1210_v14 = vadd.f32 %v1208_v13, %v2886_v4  ;;  %v1217_v4 = vmul.f32 32.0, %v2228_v20 }
 0x5d5   : > { %v1213_v15 = vsel %vm876_vm0, %v1210_v14, 0.0  ;;  %v1218_v23 = vsub.f32 1.0, %v1217_v4 }
 0x5d6   : > { %1214 = vadd.xlane.f32.xlu1 %v1213_v15 }
 0x5d7   : > { %v1219_v25 = vmul.f32 %v2228_v20, %v1218_v23 }
 0x5d9   : > { %v1220_v26 = vadd.f32 %v2228_v20, %v1219_v25 }
 0x5db   : > { %v2961_v27 = vsel %vm1221_vm4, %v2228_v20, %v1220_v26 }
 0x5ef   : > { %1400 = vrot.lane.b32.xlu1 %v2978_v43, %s2632_s11 }
 0x5f7   : > { %1367 = vrot.lane.b32.xlu1 %v2978_v43, %s2631_s3 }
 0x5ff   : > { %1473 = vrot.lane.b32.xlu1 %v2978_v43, %s2638_s24 }
 0x607   : > { %1544 = vrot.lane.b32.xlu1 %v2980_v44, %s2635_s26 }
 0x649   : > { %v1215_v28 = vpop.xlane.xlu1 %1214 }
 0x64a   : > { %v1223_v29 = vmul.f32 %v2961_v27, %v1215_v28 }
 0x64c   : > { %v1224_v30 = vsub.f32 %v1210_v14, %v1223_v29 }
 0x64e   : > { %v1225_v31 = vmul.f32 %v1224_v30, %v1224_v30 }
 0x650   : > { %v1226_v32 = vsel %vm876_vm0, %v1225_v31, 0.0 }
 0x651   : > { %1227 = vadd.xlane.f32.xlu2 %v1226_v32 }
 0x661   : > { %v1401_v57 = vpop.permute.xlu1 %1400 }
 0x662   : > { %2041 = vmatpush.xpose.msk.msrb.mxu3 %vm909_vm1, %v1401_v57 }
 0x669   : > { %v1368_v62 = vpop.permute.xlu1 %1367 }
 0x66a   : > { %2039 = vmatpush.msk.msrb.mxu1 %vm1373_vm8, %v1368_v62  ;;  %v1320_v62 = vld [vmem:[#allocation6 + $0x8] sm:$0xff] }
 0x671   : > { %v1474_v10 = vpop.permute.xlu1 %1473 }
 0x679   : > { %v1545_v13 = vpop.permute.xlu1 %1544 }
 0x6c4   : > { %v1228_v38 = vpop.xlane.xlu2 %1227 }
 0x6c5   : > { %v1229_v39 = vmul.f32 %v1228_v38, %v2961_v27 }
 0x6c7   : > { %v1230_v41 = vadd.f32 1e-05, %v1229_v39 }
 0x6c9   : > { %2229 = vrsqrt.f32 %v1230_v41  ;;  %vm1237_vm6 = vweird.f32 %v1230_v41 }
 0x6cf   : > { %v2230_v45 = vpop.eup %2229 }
 0x6d0   : > { %v1232_v46 = vmul.f32 %v2230_v45, %v1230_v41  ;;  %vm1238_vm5 = vweird.f32 %v2230_v45 }
 0x6d1   : > { %vm1239_vm7 = vmor %vm1237_vm6, %vm1238_vm5 }
 0x6d2   : > { %v1233_v47 = vmul.f32 %v2230_v45, %v1232_v46 }
 0x6d4   : > { %v1234_v48 = vmul.f32 0.5, %v1233_v47 }
 0x6d6   : > { %v1235_v49 = vsub.f32 1.5, %v1234_v48 }
 0x6d8   : > { %v1236_v50 = vmul.f32 %v2230_v45, %v1235_v49 }
 0x6da   : > { %v1240_v52 = vsel %vm1239_vm7, %v2230_v45, %v1236_v50 }
 0x6db   : > { %v1241_v53 = vmul.f32 %v1240_v52, %v1224_v30 }
 0x6dd   : > { %v1245_v55 = vmul.f32 %v2200_v51, %v1241_v53 }
 0x6df   : > { %v2998_v56 = vadd.f32 %v2201_v54, %v1245_v55 }
 0x6e1   : > { %2033 = vmatmul.msk.f32.vlgmr.msra.gmra.mxu3 %vm876_vm0, %v2998_v56 }
 0x764   : > { %v1278_v59 = vpop.f32.mrf.mxu3 }
 0x765   : > { %v1279_v60 = vadd.f32 %v2203_v58, %v1278_v59 }
 0x767   : > { %v1281_v61 = vmul.f32 0.35355338, %v1279_v60  ;;  %v1322_v60 = vld [vmem:[#allocation6 + $0x18] sm:$0xff] }
 0x769   : > { %1396 = vrot.lane.b32.xlu2 %v1281_v61, %s2632_s11  ;;  %2038 = vmatmul.msk.f32.vlgmr.msra.gmra.mxu2 %vm909_vm1, %v1281_v61 }
 0x771   : > { %1471 = vrot.lane.b32.xlu2 %v2980_v44, %s2638_s24 }
 0x7c3   : > { %v1397_v8 = vpop.permute.xlu2 %1396 }
 0x7cb   : > { %v1472_v11 = vpop.permute.xlu2 %1471 }
 0x7ec   : > { %v1350_v63 = vpop.f32.mrf.mxu2 }
 0x7ed   : > { %v1354_v0 = vsel %vm1353_vm9, %v1350_v63, -inf }
 0x7ee   : > { %1355 = vmax.xlane.f32.xlu0 %v1354_v0 }
 0x802   : > { %1398 = vrot.lane.b32.xlu0 %v2980_v44, %s2632_s11  ;;  %s3165_s11 = smov 80  }
 0x80a   : > { %1365 = vrot.lane.b32.xlu0 %v2980_v44, %s2631_s3  ;;  %s3164_s3 = smov 72  }
 0x812   : > { %1546 = vrot.lane.b32.xlu0 %v2978_v43, %s2635_s26 }
 0x81a   : > { %1469 = vrot.lane.b32.xlu0 %v1281_v61, %s2638_s24  ;;  %s3167_s24 = sshll.u32 %s3170_s4, 3 }
 0x81b   : > { %s864_s29 = scalar_lea.vmem %s3131_s22, %s3167_s24 }
 0x861   : > { %v1356_v1 = vpop.xlane.xlu0 %1355 }
 0x862   : > { %v1357_v2 = vsub.f32 %v1350_v63, %v1356_v1  ;;  %v1319_v63 = vld [vmem:[#allocation6] sm:$0xff] }
 0x864   : > { %v1358_v3 = vmul.f32 1.442695, %v1357_v2 }
 0x866   : > { %2231 = vpow2.f32 %v1358_v3 }
 0x86c   : > { %v2232_v5 = vpop.eup %2231 }
 0x86d   : > { %v1360_v6 = vsel %vm1353_vm9, %v2232_v5, 0.0 }
 0x86e   : > { %1361 = vadd.xlane.f32.xlu2 %v1360_v6 }
 0x874   : > { %v1399_v7 = vpop.permute.xlu0 %1398 }
 0x875   : > { %2042 = vmatpush.xpose.msk.msrb.mxu3 %vm909_vm1, %v1399_v7  ;;  %v2204_v7 = vld [vmem:[#allocation7] ss:$0 sm:$0xff] }
 0x878   : > { %2043 = vmatmul.msk.f32.vlgmr.msrb.gmra.mxu3 %vm909_vm1, %v1397_v8 }
 0x87c   : > { %v1366_v9 = vpop.permute.xlu0 %1365 }
 0x87d   : > { %1391 = vmatpush.msrb.mxu1 %v1366_v9 }
 0x87f   : > { %2046 = vmatpush.xpose.msk.msra.mxu1 %vm909_vm1, %v1474_v10 }
 0x883   : > { %2047 = vmatpush.xpose.msk.msra.mxu1 %vm909_vm1, %v1472_v11 }
 0x884   : > { %v1547_v12 = vpop.permute.xlu0 %1546 }
 0x885   : > { %2051 = vmatpush.xpose.msk.msra.mxu0 %vm909_vm1, %v1547_v12 }
 0x886   : > { %1542 = vrot.lane.b32.xlu2 %v1281_v61, %s2635_s26  ;;  %v1321_v61 = vld [vmem:[#allocation6 + $0x10] sm:$0xff] }
 0x889   : > { %2052 = vmatpush.xpose.msk.msra.mxu0 %vm909_vm1, %v1545_v13 }
 0x88c   : > { %v1470_v18 = vpop.permute.xlu0 %1469 }
 0x8e1   : > { %v1362_v14 = vpop.xlane.xlu2 %1361 }
 0x8e2   : > { %2233 = vrcp.f32 %v1362_v14 }
 0x8e8   : > { %v2234_v15 = vpop.eup %2233 }
 0x8e9   : > { %v1364_v16 = vmul.f32 %v2234_v15, %v2232_v5  ;;  %v1543_v17 = vpop.permute.xlu2 %1542 }
 0x8ea   : > { %2053 = vmatmul.msk.f32.vlgmr.msra.gmra.mxu0 %vm909_vm1, %v1543_v17  ;;  %v1692_v17 = vld [vmem:[#allocation12 + $0x18] sm:$0xff] }
 0x8eb   : > { %2040 = vmatmul.msk.f32.vlgmr.msrb.gmra.mxu1 %vm1353_vm9, %v1364_v16 }
 0x8ec   : > { %1648 = vmatpush.msrb.mxu1 %v1322_v60 }
 0x8ee   : > { %1649 = vmatpush.msrb.mxu1 %v1321_v61 }
 0x8f0   : > { %1650 = vmatpush.msrb.mxu1 %v1320_v62 }
 0x8f2   : > { %1651 = vmatpush.msrb.mxu1 %v1319_v63 }
 0x8f3   : > { %2048 = vmatmul.msk.f32.vlgmr.msra.gmra.mxu1 %vm909_vm1, %v1470_v18  ;;  %v1691_v18 = vld [vmem:[#allocation12 + $0x10] sm:$0xff] }
 0x8fb   : > { %v1425_v19 = vpop.f32.mrf.mxu3 }
 0x8fc   : > { %v1428_v20 = vsel %vm1353_vm9, %v1425_v19, -inf }
 0x8fd   : > { %1429 = vmax.xlane.f32.xlu1 %v1428_v20  ;;  %v1689_v20 = vld [vmem:[#allocation12] sm:$0xff] }
 0x967   : > { %v1571_v21 = vpop.f32.mrf.mxu0 }
 0x968   : > { %v3033_v22 = vpop.f32.mrf.mxu1  ;;  %v1574_v4 = vsel %vm1353_vm9, %v1571_v21, -inf }
 0x969   : > { %1575 = vmax.xlane.f32.xlu2 %v1574_v4 }
 0x970   : > { %v1498_v23 = vpop.f32.mrf.mxu1  ;;  %v1430_v25 = vpop.xlane.xlu1 %1429 }
 0x971   : > { %v1501_v24 = vsel %vm1353_vm9, %v1498_v23, -inf  ;;  %v1431_v29 = vsub.f32 %v1425_v19, %v1430_v25  ;;  %v1690_v19 = vld [vmem:[#allocation12 + $0x8] sm:$0xff] }
 0x972   : > { %1502 = vmax.xlane.f32.xlu0 %v1501_v24 }
 0x973   : > { %v1432_v31 = vmul.f32 1.442695, %v1431_v29  ;;  %v2205_v29 = vld [vmem:[#allocation9] ss:$0 sm:$0xff] }
 0x981   : > { %1441 = vrot.lane.b32.xlu2 %v2978_v43, %s2634_s2 }
 0x986   : > { %1439 = vrot.lane.b32.xlu0 %v2980_v44, %s2634_s2  ;;  %s3166_s2 = smov 8  }
 0x989   : > { %1587 = vrot.lane.b32.xlu2 %v2978_v43, %s3164_s3 }
 0x991   : > { %1585 = vrot.lane.b32.xlu2 %v2980_v44, %s3164_s3 }
 0x9dc   : > { %v1576_v26 = vpop.xlane.xlu2 %1575 }
 0x9dd   : > { %v1577_v28 = vsub.f32 %v1571_v21, %v1576_v26 }
 0x9df   : > { %v1578_v30 = vmul.f32 1.442695, %v1577_v28 }
 0x9e1   : > { %2235 = vpow2.f32 %v1578_v30 }
 0x9e2   : > { %2237 = vpow2.f32 %v1432_v31 }
 0x9e4   : > { %v1442_v32 = vpop.permute.xlu2 %1441 }
 0x9e5   : > { %v1503_v33 = vpop.xlane.xlu0 %1502  ;;  %2044 = vmatpush.msk.msrb.mxu2 %vm1373_vm8, %v1442_v32  ;;  %v2206_v32 = vld [vmem:[#allocation10] ss:$0 sm:$0xff] }
 0x9e6   : > { %v1504_v34 = vsub.f32 %v1498_v23, %v1503_v33 }
 0x9e7   : > { %v2236_v35 = vpop.eup %2235 }
 0x9e8   : > { %v1505_v36 = vmul.f32 1.442695, %v1504_v34  ;;  %v1580_v37 = vsel %vm1353_vm9, %v2236_v35, 0.0  ;;  %v2238_v38 = vpop.eup %2237 }
 0x9e9   : > { %1581 = vadd.xlane.f32.xlu1 %v1580_v37  ;;  %v1434_v40 = vsel %vm1353_vm9, %v2238_v38, 0.0  ;;  %v1753_v37 = vld [vmem:[%s3127_s18 + $0x38] sm:$0xff] }
 0x9ea   : > { %2239 = vpow2.f32 %v1505_v36  ;;  %1770 = vmatpush.msrb.mxu0 %v1753_v37 }
 0x9ec   : > { %v1588_v41 = vpop.permute.xlu2 %1587 }
 0x9f0   : > { %v2240_v39 = vpop.eup %2239 }
 0x9f1   : > { %1435 = vadd.xlane.f32.xlu1 %v1434_v40  ;;  %v1507_v42 = vsel %vm1353_vm9, %v2240_v39, 0.0 }
 0x9f2   : > { %1508 = vadd.xlane.f32.xlu0 %v1507_v42 }
 0x9f4   : > { %v1586_v46 = vpop.permute.xlu2 %1585 }
 0x9f8   : > { %v1440_v45 = vpop.permute.xlu0 %1439 }
 0x9f9   : > { %1464 = vmatpush.msrb.mxu2 %v1440_v45  ;;  %v1750_v45 = vld [vmem:[%s3127_s18 + $0x20] sm:$0xff] }
 0x9fb   : > { %2054 = vmatpush.msk.msra.mxu2 %vm1373_vm8, %v1588_v41  ;;  %v1751_v41 = vld [vmem:[%s3127_s18 + $0x28] sm:$0xff] }
 0x9fd   : > { %1610 = vmatpush.msra.mxu2 %v1586_v46 }
 0xa06   : > { %1512 = vrot.lane.b32.xlu0 %v2980_v44, %s3165_s11 }
 0xa0a   : > { %1514 = vrot.lane.b32.xlu1 %v2978_v43, %s3165_s11 }
 0xa5c   : > { %v1582_v47 = vpop.xlane.xlu1 %1581 }
 0xa64   : > { %v1436_v48 = vpop.xlane.xlu1 %1435 }
 0xa65   : > { %2241 = vrcp.f32 %v1436_v48  ;;  %v1509_v52 = vpop.xlane.xlu0 %1508 }
 0xa66   : > { %2243 = vrcp.f32 %v1582_v47  ;;  %v1749_v47 = vld [vmem:[%s3127_s18 + $0x18] sm:$0xff] }
 0xa67   : > { %2245 = vrcp.f32 %v1509_v52 }
 0xa6b   : > { %v2242_v49 = vpop.eup %2241 }
 0xa6c   : > { %v1438_v50 = vmul.f32 %v2242_v49, %v2238_v38  ;;  %v2244_v51 = vpop.eup %2243  ;;  %v1748_v49 = vld [vmem:[%s3127_s18 + $0x10] sm:$0xff] }
 0xa6d   : > { %v1584_v53 = vmul.f32 %v2244_v51, %v2236_v35  ;;  %v2246_v54 = vpop.eup %2245  ;;  %v2207_v35 = vld [vmem:[#allocation13] ss:$0 sm:$0xff]  ;;  %v1746_v51 = vld [vmem:[%s3127_s18] sm:$0xff] }
 0xa6e   : > { %2045 = vmatmul.msk.f32.vlgmr.msrb.gmra.mxu2 %vm1353_vm9, %v1438_v50  ;;  %v1511_v44 = vmul.f32 %v2246_v54, %v2240_v39  ;;  %v1752_v39 = vld [vmem:[%s3127_s18 + $0x30] sm:$0xff]  ;;  %v1747_v50 = vld [vmem:[%s3127_s18 + $0x8] sm:$0xff] }
 0xa6f   : > { %1771 = vmatpush.msrb.mxu0 %v1752_v39 }
 0xa71   : > { %1772 = vmatpush.msrb.mxu0 %v1751_v41 }
 0xa73   : > { %1773 = vmatpush.msrb.mxu0 %v1750_v45 }
 0xa75   : > { %1774 = vmatpush.msrb.mxu0 %v1749_v47 }
 0xa76   : > { %2055 = vmatmul.msk.f32.vlgmr.msra.gmra.mxu2 %vm1353_vm9, %v1584_v53 }
 0xa77   : > { %1775 = vmatpush.msrb.mxu0 %v1748_v49 }
 0xa78   : > { %v1513_v43 = vpop.permute.xlu0 %1512 }
 0xa79   : > { %1776 = vmatpush.msrb.mxu0 %v1747_v50 }
 0xa7b   : > { %1777 = vmatpush.msrb.mxu0 %v1746_v51 }
 0xa7c   : > { %v1515_v55 = vpop.permute.xlu1 %1514 }
 0xa7d   : > { %2049 = vmatpush.msk.msra.mxu3 %vm1373_vm8, %v1515_v55 }
 0xa7f   : > { %1537 = vmatpush.msra.mxu3 %v1513_v43 }
 0xa80   : > { %2050 = vmatmul.msk.f32.vlgmr.msra.gmra.mxu3 %vm1353_vm9, %v1511_v44 }
 0xa81   : > { %1712 = vmatpush.msrb.mxu3 %v1692_v17 }
 0xa83   : > { %1713 = vmatpush.msrb.mxu3 %v1691_v18 }
 0xa85   : > { %1714 = vmatpush.msrb.mxu3 %v1690_v19 }
 0xa87   : > { %1715 = vmatpush.msrb.mxu3 %v1689_v20 }
 0xaf1   : > { %v1466_v57 = vpop.f32.mrf.mxu2 }
 0xaf2   : > { %1616 = vrot.lane.b32.xlu0 %v1466_v57, %s3166_s2 }
 0xaf9   : > { %v1612_v58 = vpop.f32.mrf.mxu2 }
 0xafa   : > { %1624 = vrot.lane.b32.xlu1 %v1612_v58, %s2643_s13 }
 0xb03   : > { %v1539_v59 = vpop.f32.mrf.mxu3 }
 0xb04   : > { %1620 = vrot.lane.b32.xlu2 %v1539_v59, %s2642_s15 }
 0xb5e   : > { %v1621_v2 = vpop.permute.xlu2 %1620 }
 0xb64   : > { %v1617_v0 = vpop.permute.xlu0 %1616 }
 0xb65   : > { %v1627_v1 = vsel %vm909_vm1, %v3033_v22, %v1617_v0 }
 0xb66   : > { %v1628_v3 = vsel %vm1180_vm2, %v1627_v1, %v1621_v2 }
 0xb6c   : > { %v1625_v5 = vpop.permute.xlu1 %1624 }
 0xb6d   : > { %v1629_v6 = vsel %vm1182_vm3, %v1628_v3, %v1625_v5 }
 0xb6e   : > { %2056 = vmatmul.msk.f32.vlgmr.msrb.gmra.mxu1 %vm876_vm0, %v1629_v6 }
 0xbeb   : > { %v1653_v8 = vpop.f32.mrf.mxu1 }
 0xbec   : > { %v1654_v9 = vadd.f32 %v2204_v7, %v1653_v8 }
 0xbee   : > { %v1656_v10 = vadd.f32 %v1654_v9, %v2998_v56  ;;  %v2208_v9 = vld [vmem:[#allocation15] ss:$0 sm:$0xff] }
 0xbf0   : > { %v1659_v11 = vsel %vm876_vm0, %v1656_v10, 0.0 }
 0xbf1   : > { %1660 = vadd.xlane.f32.xlu0 %v1659_v11 }
 0xc64   : > { %v1661_v12 = vpop.xlane.xlu0 %1660 }
 0xc65   : > { %v1662_v13 = vmul.f32 %v1661_v12, %v2961_v27 }
 0xc67   : > { %v1663_v14 = vsub.f32 %v1656_v10, %v1662_v13 }
 0xc69   : > { %v1664_v15 = vmul.f32 %v1663_v14, %v1663_v14 }
 0xc6b   : > { %v1665_v16 = vsel %vm876_vm0, %v1664_v15, 0.0 }
 0xc6c   : > { %1666 = vadd.xlane.f32.xlu2 %v1665_v16 }
 0xcdf   : > { %v1667_v56 = vpop.xlane.xlu2 %1666 }
 0xce0   : > { %v1668_v21 = vmul.f32 %v1667_v56, %v2961_v27 }
 0xce2   : > { %v1669_v22 = vadd.f32 1e-05, %v1668_v21 }
 0xce4   : > { %2247 = vrsqrt.f32 %v1669_v22  ;;  %vm1676_vm11 = vweird.f32 %v1669_v22 }
 0xcea   : > { %v2248_v4 = vpop.eup %2247 }
 0xceb   : > { %v1671_v23 = vmul.f32 %v2248_v4, %v1669_v22  ;;  %vm1677_vm10 = vweird.f32 %v2248_v4 }
 0xcec   : > { %vm1678_vm12 = vmor %vm1676_vm11, %vm1677_vm10 }
 0xced   : > { %v1672_v24 = vmul.f32 %v2248_v4, %v1671_v23 }
 0xcef   : > { %v1673_v25 = vmul.f32 0.5, %v1672_v24 }
 0xcf1   : > { %v1674_v26 = vsub.f32 1.5, %v1673_v25 }
 0xcf3   : > { %v1675_v28 = vmul.f32 %v2248_v4, %v1674_v26  ;;  %v2209_v26 = vld [vmem:[#allocation16] ss:$0 sm:$0xff] }
 0xcf5   : > { %v1679_v30 = vsel %vm1678_vm12, %v2248_v4, %v1675_v28 }
 0xcf6   : > { %v1680_v31 = vmul.f32 %v1679_v30, %v1663_v14 }
 0xcf8   : > { %v1684_v33 = vmul.f32 %v2205_v29, %v1680_v31  ;;  %v2210_v29 = vld [vmem:[#allocation18] ss:$0 sm:$0xff] }
 0xcfa   : > { %v1688_v34 = vadd.f32 %v2206_v32, %v1684_v33 }
 0xcfc   : > { %2057 = vmatmul.msk.f32.vlgmr.msrb.gmra.mxu3 %vm876_vm0, %v1688_v34 }
 0xd7f   : > { %v1717_v36 = vpop.f32.mrf.mxu3 }
 0xd80   : > { %v1718_v38 = vadd.f32 %v2207_v35, %v1717_v36 }
 0xd82   : > { %v1721_v40 = vmul.f32 0.70710677, %v1718_v38  ;;  %v1720_v6 = vmul.f32 0.5, %v1718_v38 }
 0xd84   : > { %v1722_v42 = vand.u32 2147483647, %v1721_v40  ;;  %vm1741_vm13 = vcmp.ge.f32.partialorder %v1721_v40, 0.0 }
 0xd86   : > { %v1723_v46 = vmul.f32 0.3275911, %v1722_v42  ;;  %v1735_v53 = vsub.f32 0.0, %v1722_v42 }
 0xd88   : > { %v1724_v48 = vadd.f32 1.0, %v1723_v46  ;;  %v1736_v44 = vmul.f32 %v1735_v53, %v1722_v42 }
 0xd8a   : > { %2249 = vrcp.f32 %v1724_v48  ;;  %v1737_v58 = vmul.f32 1.442695, %v1736_v44 }
 0xd8c   : > { %2251 = vpow2.f32 %v1737_v58 }
 0xd90   : > { %v2250_v52 = vpop.eup %2249 }
 0xd91   : > { %v1726_v54 = vmul.f32 1.0614054, %v2250_v52 }
 0xd92   : > { %v2252_v0 = vpop.eup %2251 }
 0xd93   : > { %v1727_v55 = vadd.f32 -1.4531521, %v1726_v54 }
 0xd95   : > { %v1728_v43 = vmul.f32 %v2250_v52, %v1727_v55 }
 0xd97   : > { %v1729_v57 = vadd.f32 1.4214138, %v1728_v43 }
 0xd99   : > { %v1730_v59 = vmul.f32 %v2250_v52, %v1729_v57 }
 0xd9b   : > { %v1731_v60 = vadd.f32 -0.28449672, %v1730_v59 }
 0xd9d   : > { %v1732_v61 = vmul.f32 %v2250_v52, %v1731_v60 }
 0xd9f   : > { %v1733_v62 = vadd.f32 0.2548296, %v1732_v61 }
 0xda1   : > { %v1734_v63 = vmul.f32 %v2250_v52, %v1733_v62 }
 0xda3   : > { %v1739_v1 = vmul.f32 %v2252_v0, %v1734_v63 }
 0xda5   : > { %v1740_v2 = vsub.f32 1.0, %v1739_v1 }
 0xda7   : > { %v1742_v3 = vsub.f32 0.0, %v1740_v2 }
 0xda9   : > { %v1743_v5 = vsel %vm1741_vm13, %v1740_v2, %v1742_v3 }
 0xdaa   : > { %v1744_v7 = vadd.f32 1.0, %v1743_v5 }
 0xdac   : > { %v1745_v8 = vmul.f32 %v1744_v7, %v1720_v6 }
 0xdae   : > { %2058 = vmatmul.msk.f32.vlgmr.msrb.gmra.mxu0 %vm1758_vm14, %v1745_v8 }
 0xe2b   : > { %v1779_v10 = vpop.f32.mrf.mxu0 }
 0xe2c   : > { %v1780_v11 = vadd.f32 %v2208_v9, %v1779_v10 }
 0xe2e   : > { %v1782_v12 = vadd.f32 %v1780_v11, %v1688_v34 }
 0xe30   : > { %v1785_v13 = vsel %vm876_vm0, %v1782_v12, 0.0 }
 0xe31   : > { %1786 = vadd.xlane.f32.xlu1 %v1785_v13 }
 0xea4   : > { %v1787_v14 = vpop.xlane.xlu1 %1786 }
 0xea5   : > { %v1788_v15 = vmul.f32 %v1787_v14, %v2961_v27 }
 0xea7   : > { %v1789_v16 = vsub.f32 %v1782_v12, %v1788_v15 }
 0xea9   : > { %v1790_v17 = vmul.f32 %v1789_v16, %v1789_v16 }
 0xeab   : > { %v1791_v18 = vsel %vm876_vm0, %v1790_v17, 0.0 }
 0xeac   : > { %1792 = vadd.xlane.f32.xlu0 %v1791_v18 }
 0xf1f   : > { %v1793_v19 = vpop.xlane.xlu0 %1792 }
 0xf20   : > { %v1794_v20 = vmul.f32 %v1793_v19, %v2961_v27 }
 0xf22   : > { %v1795_v56 = vadd.f32 1e-05, %v1794_v20 }
 0xf24   : > { %2253 = vrsqrt.f32 %v1795_v56  ;;  %vm1802_vm1 = vweird.f32 %v1795_v56 }
 0xf2a   : > { %v2254_v21 = vpop.eup %2253 }
 0xf2b   : > { %v1797_v22 = vmul.f32 %v2254_v21, %v1795_v56  ;;  %vm1803_vm15 = vweird.f32 %v2254_v21 }
 0xf2c   : > { %vm1804_vm2 = vmor %vm1802_vm1, %vm1803_vm15 }
 0xf2d   : > { %v1798_v4 = vmul.f32 %v2254_v21, %v1797_v22 }
 0xf2f   : > { %v1799_v23 = vmul.f32 0.5, %v1798_v4 }
 0xf31   : > { %v1800_v24 = vsub.f32 1.5, %v1799_v23 }
 0xf33   : > { %v1801_v25 = vmul.f32 %v2254_v21, %v1800_v24 }
 0xf35   : > { %v1805_v28 = vsel %vm1804_vm2, %v2254_v21, %v1801_v25 }
 0xf36   : > { %v1806_v30 = vmul.f32 %v1805_v28, %v1789_v16 }
 0xf38   : > { %v1810_v31 = vmul.f32 %v2209_v26, %v1806_v30 }
 0xf3a   : > { %v1814_v27 = vadd.f32 %v2210_v29, %v1810_v31 }
 0xf3c   : > { %1815 = vst.msk [vmem:[%s864_s29] sm:$0xff] %vm876_vm0, %v1814_v27 }
 0xf3d PF: > { %s3168_s0 = sld [smem:[#allocation25_spill]] }
 0xf43   : > { %s38_s3 = sadd.s32 1, %s3168_s0  }
 0xf44   : > { %p35_p7 = scmp.ge.s32.totalorder %s38_s3, 4  }
 0xf46   :  { %37 = sbr.rel (!%p35_p7) target bundleno = 17 (0x11), region = 186 }
 0xf4b   :  { %1835 = vsyncpa [#allocation3], 1 }
 0xf4c   :  { %1837 = vsyncpa [#allocation3 + $0x1], 1 }
 0xf4d   :  { %1838 = vsyncpa [#allocation5], 1 }
 0xf4e   :  { %1839 = vsyncpa [#allocation8], 1 }
 0xf4f   :  { %1840 = vsyncpa [#allocation11], 1 }
 0xf50   :  { %1841 = vsyncpa [#allocation14], 1 }
 0xf51   :  { %1842 = vsyncpa [#allocation17], 1 }

</bundles_post_ra>
